<compile_context>
chip_gen: v5e
topology: v5e:2x2
jax: 0.10.0
libtpu: 0.0.40
codegen_flags: <defaults>
</compile_context>

<pallas_src>
import functools

import numpy as np
import jax
import jax.numpy as jnp
from jax import lax
from jax.experimental import pallas as pl
from jax.experimental.pallas import tpu as pltpu

# ----------------------------- config ---------------------------------------
D_MODEL = 32
D_INNER = 64
N_HEAD = 4
N_LAYERS = 2
VOCAB = 50
V_PAD = 128        # lane-dense padding of the vocab projection output
MAX_POS = 64
EPS = 1e-6         # nn.LayerNorm(d_model, eps=1e-6)


# ------------------------------ fused kernel ---------------------------------
def decoder_kernel(x_ref, enc_ref, trg_bias_ref, src_bias_ref,
                   attn_ref, misc_ref, vec_ref, o_ref,
                   *, B, T, S, H, L, D, DI):
    """Whole Decoder forward with the (B*T, D) activation resident in VMEM."""
    N = B * T
    M = B * S
    MR = D + DI                      # misc-slab rows per layer (w1 + w2)
    bf16 = jnp.bfloat16
    f32 = jnp.float32

    def vrow(i):                     # (1, D) f32 row of the packed vector slab
        return vec_ref[i:i + 1, :D]

    def layer_norm(y, g, b):         # PyTorch LayerNorm: biased var, eps=1e-6
        mu = jnp.mean(y, axis=-1, keepdims=True)
        var = jnp.mean(jnp.square(y - mu), axis=-1, keepdims=True)
        return (y - mu) * lax.rsqrt(var + EPS) * g + b

    def attention(q_src, kv_src, a_w, b_w, bias):
        # q_src : (H, N, D) bf16   query-side activations (head-broadcast)
        # kv_src: (H, Mk, D) bf16  key/value-side activations (head-broadcast)
        # a_w   : (H, D, D) bf16   Wq_h Wk_h^T / sqrt(dk)   (pack-time composite)
        # b_w   : (H, D, D) bf16   Wv_h Wo_h                (pack-time composite)
        # bias  : (N, Mk) f32      0 where attending allowed, -1e9 elsewhere
        t = jnp.einsum('hnd,hdf->hnf', q_src, a_w,
                       preferred_element_type=f32)                  # (H, N, D)
        s = jnp.einsum('hnf,hmf->hnm', t.astype(bf16), kv_src,
                       preferred_element_type=f32) + bias           # (H, N, Mk)
        s = s - jnp.max(s, axis=-1, keepdims=True)
        e = jnp.exp(s)
        p = e * pl.reciprocal(jnp.sum(e, axis=-1, keepdims=True), approx=True)
        c = jnp.einsum('hnm,hmd->hnd', p.astype(bf16), kv_src,
                       preferred_element_type=f32)                  # (H, N, D)
        o = jnp.einsum('hnd,hdf->hnf', c.astype(bf16), b_w,
                       preferred_element_type=f32)                  # (H, N, D)
        return jnp.sum(o, axis=0)                                   # (N, D) f32

    # Decoder-level LayerNorm of (embedding + positional encoding); dropout is
    # identity in eval mode.
    x = layer_norm(x_ref[...], vrow(0), vrow(1))                     # (N, D) f32
    # Encoder activations are the K/V source of every layer -> broadcast once.
    enc_b = jnp.broadcast_to(enc_ref[...].astype(bf16)[None], (H, M, D))
    trg_bias = trg_bias_ref[...]                                     # (N, N)
    src_bias = src_bias_ref[...]                                     # (N, M)

    for l in range(L):                                               # static unroll
        vb = 2 + 8 * l

        # -------- masked self attention --------
        x_b = jnp.broadcast_to(x.astype(bf16)[None], (H, N, D))
        o = attention(x_b, x_b, attn_ref[4 * l + 0], attn_ref[4 * l + 1],
                      trg_bias)
        x = layer_norm(o + x, vrow(vb + 0), vrow(vb + 1))

        # -------- encoder-decoder attention --------
        x_b = jnp.broadcast_to(x.astype(bf16)[None], (H, N, D))
        o = attention(x_b, enc_b, attn_ref[4 * l + 2], attn_ref[4 * l + 3],
                      src_bias)
        x = layer_norm(o + x, vrow(vb + 2), vrow(vb + 3))

        # -------- position-wise FFN --------
        w1 = misc_ref[MR * l: MR * l + D, :DI]                       # (D, DI)
        w2 = misc_ref[MR * l + D: MR * (l + 1), :D]                  # (DI, D)
        h1 = jnp.dot(x.astype(bf16), w1, preferred_element_type=f32)
        h1 = jnp.maximum(h1 + vec_ref[vb + 7:vb + 8, :], 0.0)        # + b1, relu
        y = jnp.dot(h1.astype(bf16), w2,
                    preferred_element_type=f32) + vrow(vb + 4)       # + b2
        x = layer_norm(y + x, vrow(vb + 5), vrow(vb + 6))

    # Final bias-free vocab projection; single lane-dense (N, 128) store.
    fc_w = misc_ref[MR * L: MR * L + D, :]                           # (D, V_PAD)
    o_ref[...] = jnp.dot(x.astype(bf16), fc_w, preferred_element_type=f32)


# --------------------------- model plumbing ----------------------------------
def positional_table(n_position, d):
    pos = np.arange(n_position)[:, None].astype(np.float64)
    i = np.arange(d)[None, :].astype(np.float64)
    angle = pos / np.power(10000.0, 2.0 * (i // 2) / d)
    table = np.zeros((n_position, d), dtype=np.float64)
    table[:, 0::2] = np.sin(angle[:, 0::2])
    table[:, 1::2] = np.cos(angle[:, 1::2])
    return jnp.asarray(table, dtype=jnp.float32)


def init_params(key):
    def nrm(k, shape, scale=0.1):
        return scale * jax.random.normal(k, shape, dtype=jnp.float32)

    keys = jax.random.split(key, 2 + N_LAYERS)
    params = {
        'embedding': nrm(keys[0], (VOCAB, D_MODEL), 1.0),
        'fc_w': nrm(keys[1], (D_MODEL, VOCAB)),
        'ln_gamma': jnp.ones((D_MODEL,), jnp.float32),
        'ln_beta': jnp.zeros((D_MODEL,), jnp.float32),
        'layers': [],
    }

    def mha_params(k):
        ks = jax.random.split(k, 4)
        return {
            'wq': nrm(ks[0], (D_MODEL, D_MODEL)),
            'wk': nrm(ks[1], (D_MODEL, D_MODEL)),
            'wv': nrm(ks[2], (D_MODEL, D_MODEL)),
            'wo': nrm(ks[3], (D_MODEL, D_MODEL)),
            'gamma': jnp.ones((D_MODEL,), jnp.float32),
            'beta': jnp.zeros((D_MODEL,), jnp.float32),
        }

    for li in range(N_LAYERS):
        ks = jax.random.split(keys[2 + li], 4)
        params['layers'].append({
            'slf': mha_params(ks[0]),
            'enc': mha_params(ks[1]),
            'ffn': {
                'w1': nrm(ks[2], (D_MODEL, D_INNER)),
                'b1': jnp.zeros((D_INNER,), jnp.float32),
                'w2': nrm(ks[3], (D_INNER, D_MODEL)),
                'b2': jnp.zeros((D_MODEL,), jnp.float32),
                'gamma': jnp.ones((D_MODEL,), jnp.float32),
                'beta': jnp.zeros((D_MODEL,), jnp.float32),
            },
        })
    return params


def pack_params(params):
    """Compose per-head attention weights and pack everything into 3 slabs."""
    dk = D_MODEL // N_HEAD
    scale = 1.0 / (dk ** 0.5)

    def head_cols(w):                       # (D, D) -> (H, D, dk) per-head cols
        return jnp.transpose(w.reshape(D_MODEL, N_HEAD, dk), (1, 0, 2))

    def composite(mha):
        wq_h = head_cols(mha['wq']) * scale     # fold 1/sqrt(dk) into the q side
        wk_h = head_cols(mha['wk'])
        wv_h = head_cols(mha['wv'])
        wo_h = mha['wo'].reshape(N_HEAD, dk, D_MODEL)
        a = jnp.einsum('hde,hfe->hdf', wq_h, wk_h)      # (H, D, D) Wq_h Wk_h^T/√dk
        b = jnp.einsum('hde,hef->hdf', wv_h, wo_h)      # (H, D, D) Wv_h Wo_h
        return a, b

    def pad_lanes(w, n):
        return jnp.pad(w, ((0, 0), (0, n - w.shape[1])))

    def pad_vec(v, n):
        return jnp.pad(v, (0, n - v.shape[0]))

    attn_blocks, misc_rows = [], []
    vec_rows = [params['ln_gamma'], params['ln_beta']]
    for lp in params['layers']:
        a_s, b_s = composite(lp['slf'])
        a_e, b_e = composite(lp['enc'])
        attn_blocks += [a_s, b_s, a_e, b_e]
        ffn = lp['ffn']
        misc_rows += [pad_lanes(ffn['w1'], V_PAD), pad_lanes(ffn['w2'], V_PAD)]
        vec_rows += [lp['slf']['gamma'], lp['slf']['beta'],
                     lp['enc']['gamma'], lp['enc']['beta'],
                     ffn['b2'], ffn['gamma'], ffn['beta'], ffn['b1']]
    misc_rows.append(pad_lanes(params['fc_w'], V_PAD))

    return {
        'embedding': params['embedding'],
        'pos_table': positional_table(MAX_POS, D_MODEL),  # hoisted out of fwd
        'attn_w': jnp.stack(attn_blocks, 0).astype(jnp.bfloat16),      # (4L,H,D,D)
        'misc_w': jnp.concatenate(misc_rows, 0).astype(jnp.bfloat16),  # (96L+32,128)
        'vec': jnp.stack([pad_vec(v, D_INNER) for v in vec_rows],
                         0).astype(jnp.float32),                       # (2+8L, DI)
    }


@jax.jit
def decoder_forward(packed, trg_seqs, trg_mask, enc_outputs, src_mask):
    B, T = trg_seqs.shape
    S = enc_outputs.shape[1]
    N, M = B * T, B * S

    # TODO(synk): the token-id embedding gather stays as an XLA `take`; an
    # in-kernel one-hot matmul would only waste MXU cycles at vocab=50.
    emb = packed['embedding'][trg_seqs]                               # (B, T, D)
    x0 = (emb + packed['pos_table'][:T]).reshape(N, D_MODEL).astype(jnp.float32)
    enc_flat = enc_outputs.astype(jnp.float32).reshape(M, D_MODEL)

    # Additive attention biases, built once per call at their FINAL shape
    # (batch folded into rows/cols, block-diagonal across the batch).  The
    # kernel consumes them directly (implicit broadcast over heads), so no mask
    # concat/select/broadcast happens inside the layer loop.
    row_b = jnp.arange(N, dtype=jnp.int32)[:, None] // T              # query batch
    tm = trg_mask.astype(jnp.float32) > 0.5                           # (B, T, T)
    tm_full = jnp.broadcast_to(tm[:, :, None, :], (B, T, B, T)).reshape(N, N)
    same_t = row_b == (jnp.arange(N, dtype=jnp.int32)[None, :] // T)
    trg_bias = jnp.where(same_t & tm_full, 0.0, -1e9).astype(jnp.float32)

    sm = src_mask.astype(jnp.float32) > 0.5                           # (B, 1, S)
    sm_full = jnp.broadcast_to(sm[:, :, None, :], (B, T, B, S)).reshape(N, M)
    same_s = row_b == (jnp.arange(M, dtype=jnp.int32)[None, :] // S)
    src_bias = jnp.where(same_s & sm_full, 0.0, -1e9).astype(jnp.float32)

    kernel = functools.partial(decoder_kernel, B=B, T=T, S=S, H=N_HEAD,
                               L=N_LAYERS, D=D_MODEL, DI=D_INNER)
    vmem = pl.BlockSpec(memory_space=pltpu.MemorySpace.VMEM)
    logits_pad = pl.pallas_call(
        kernel,
        out_shape=jax.ShapeDtypeStruct((N, V_PAD), jnp.float32),
        in_specs=[vmem] * 7,
        out_specs=vmem,
    )(x0, enc_flat, trg_bias, src_bias,
      packed['attn_w'], packed['misc_w'], packed['vec'])

    return logits_pad[:, :VOCAB].reshape(B, T, VOCAB)


# ------------------------------- main -----------------------------------------
if __name__ == "__main__":
    B, T, S = 2, 8, 10

    key = jax.random.PRNGKey(0)
    k_p, k_trg, k_enc = jax.random.split(key, 3)

    params = init_params(k_p)
    packed = pack_params(params)

    trg_seqs = jax.random.randint(k_trg, (B, T), 1, VOCAB, dtype=jnp.int32)
    enc_outputs = 0.1 * jax.random.normal(k_enc, (B, S, D_MODEL), dtype=jnp.float32)

    # Causal self-attention mask (B, T, T) and encoder padding mask (B, 1, S).
    causal = jnp.tril(jnp.ones((T, T), jnp.float32))
    trg_mask = jnp.broadcast_to(causal[None], (B, T, T))
    src_mask = jnp.concatenate(
        [jnp.ones((B, 1, S - 2), jnp.float32), jnp.zeros((B, 1, 2), jnp.float32)],
        axis=-1)                                           # last 2 src tokens padded

    logits = decoder_forward(packed, trg_seqs, trg_mask, enc_outputs, src_mask)
    jax.block_until_ready(logits)

    assert logits.shape == (B, T, VOCAB)
    assert bool(jnp.all(jnp.isfinite(logits)))
    print("KERNEL_OK")
</pallas_src>

<mosaic_0001>
module attributes {stable_mosaic.version = 11 : i64} {
  func.func @decoder_kernel(%arg0: memref<16x32xf32, #tpu.memory_space<vmem>>, %arg1: memref<20x32xf32, #tpu.memory_space<vmem>>, %arg2: memref<16x16xf32, #tpu.memory_space<vmem>>, %arg3: memref<16x20xf32, #tpu.memory_space<vmem>>, %arg4: memref<8x4x32x32xbf16, #tpu.memory_space<vmem>>, %arg5: memref<224x128xbf16, #tpu.memory_space<vmem>>, %arg6: memref<18x64xf32, #tpu.memory_space<vmem>>, %arg7: memref<16x128xf32, #tpu.memory_space<vmem>>) attributes {dimension_semantics = [], scalar_prefetch = 0 : i64, scratch_operands = 0 : i64, tpu.core_type = #tpu.core_type<tc>} {
    %c0 = arith.constant 0 : index
    %c0_0 = arith.constant 0 : index
    %0 = vector.load %arg0[%c0, %c0_0] : memref<16x32xf32, #tpu.memory_space<vmem>>, vector<16x32xf32>
    %c0_1 = arith.constant 0 : index
    %c0_2 = arith.constant 0 : index
    %1 = vector.load %arg6[%c0_1, %c0_2] : memref<18x64xf32, #tpu.memory_space<vmem>>, vector<1x32xf32>
    %c1 = arith.constant 1 : index
    %c0_3 = arith.constant 0 : index
    %2 = vector.load %arg6[%c1, %c0_3] : memref<18x64xf32, #tpu.memory_space<vmem>>, vector<1x32xf32>
    %cst = arith.constant dense<0.000000e+00> : vector<16xf32>
    %3 = vector.multi_reduction <add>, %0, %cst [1] : vector<16x32xf32> to vector<16xf32>
    %4 = vector.shape_cast %3 : vector<16xf32> to vector<16x1xf32>
    %cst_4 = arith.constant 3.200000e+01 : f32
    %5 = vector.broadcast %cst_4 : f32 to vector<16x1xf32>
    %6 = arith.divf %4, %5 : vector<16x1xf32>
    %7 = vector.broadcast %6 : vector<16x1xf32> to vector<16x32xf32>
    %8 = arith.subf %0, %7 : vector<16x32xf32>
    %9 = arith.mulf %8, %8 : vector<16x32xf32>
    %cst_5 = arith.constant dense<0.000000e+00> : vector<16xf32>
    %10 = vector.multi_reduction <add>, %9, %cst_5 [1] : vector<16x32xf32> to vector<16xf32>
    %11 = vector.shape_cast %10 : vector<16xf32> to vector<16x1xf32>
    %cst_6 = arith.constant 3.200000e+01 : f32
    %12 = vector.broadcast %cst_6 : f32 to vector<16x1xf32>
    %13 = arith.divf %11, %12 : vector<16x1xf32>
    %14 = vector.broadcast %6 : vector<16x1xf32> to vector<16x32xf32>
    %15 = arith.subf %0, %14 : vector<16x32xf32>
    %cst_7 = arith.constant 9.99999997E-7 : f32
    %16 = vector.broadcast %cst_7 : f32 to vector<16x1xf32>
    %17 = arith.addf %13, %16 : vector<16x1xf32>
    %18 = math.rsqrt %17 : vector<16x1xf32>
    %19 = vector.broadcast %18 : vector<16x1xf32> to vector<16x32xf32>
    %20 = arith.mulf %15, %19 : vector<16x32xf32>
    %21 = vector.broadcast %1 : vector<1x32xf32> to vector<16x32xf32>
    %22 = arith.mulf %20, %21 : vector<16x32xf32>
    %23 = vector.broadcast %2 : vector<1x32xf32> to vector<16x32xf32>
    %24 = arith.addf %22, %23 : vector<16x32xf32>
    %c0_8 = arith.constant 0 : index
    %c0_9 = arith.constant 0 : index
    %25 = vector.load %arg1[%c0_8, %c0_9] : memref<20x32xf32, #tpu.memory_space<vmem>>, vector<20x32xf32>
    %26 = arith.truncf %25 : vector<20x32xf32> to vector<20x32xbf16>
    %27 = vector.shape_cast %26 : vector<20x32xbf16> to vector<1x20x32xbf16>
    %28 = vector.shape_cast %27 : vector<1x20x32xbf16> to vector<1x20x32xbf16>
    %29 = vector.broadcast %28 : vector<1x20x32xbf16> to vector<4x20x32xbf16>
    %c0_10 = arith.constant 0 : index
    %c0_11 = arith.constant 0 : index
    %30 = vector.load %arg2[%c0_10, %c0_11] : memref<16x16xf32, #tpu.memory_space<vmem>>, vector<16x16xf32>
    %c0_12 = arith.constant 0 : index
    %c0_13 = arith.constant 0 : index
    %31 = vector.load %arg3[%c0_12, %c0_13] : memref<16x20xf32, #tpu.memory_space<vmem>>, vector<16x20xf32>
    %32 = arith.truncf %24 : vector<16x32xf32> to vector<16x32xbf16>
    %33 = vector.shape_cast %32 : vector<16x32xbf16> to vector<1x16x32xbf16>
    %34 = vector.shape_cast %33 : vector<1x16x32xbf16> to vector<1x16x32xbf16>
    %35 = vector.broadcast %34 : vector<1x16x32xbf16> to vector<4x16x32xbf16>
    %c0_14 = arith.constant 0 : index
    %c0_15 = arith.constant 0 : index
    %c0_16 = arith.constant 0 : index
    %c0_17 = arith.constant 0 : index
    %36 = vector.load %arg4[%c0_14, %c0_15, %c0_16, %c0_17] : memref<8x4x32x32xbf16, #tpu.memory_space<vmem>>, vector<1x4x32x32xbf16>
    %37 = vector.shape_cast %36 : vector<1x4x32x32xbf16> to vector<4x32x32xbf16>
    %c1_18 = arith.constant 1 : index
    %c0_19 = arith.constant 0 : index
    %c0_20 = arith.constant 0 : index
    %c0_21 = arith.constant 0 : index
    %38 = vector.load %arg4[%c1_18, %c0_19, %c0_20, %c0_21] : memref<8x4x32x32xbf16, #tpu.memory_space<vmem>>, vector<1x4x32x32xbf16>
    %39 = vector.shape_cast %38 : vector<1x4x32x32xbf16> to vector<4x32x32xbf16>
    "tpu.trace_start"() <{level = 10 : i32, message = "hnd,hdf->hnf"}> : () -> ()
    %cst_22 = arith.constant dense<0.000000e+00> : vector<4x16x32xf32>
    %40 = tpu.matmul %35, %37, %cst_22 {dimension_numbers = #tpu.dot_dimension_numbers<[2], [1], [1], [2], [0, 0, 0, 1, 1, 2], [0], [0]>} : vector<4x16x32xbf16>, vector<4x32x32xbf16>, vector<4x16x32xf32> -> vector<4x16x32xf32>
    "tpu.trace_stop"() : () -> ()
    %41 = arith.truncf %40 : vector<4x16x32xf32> to vector<4x16x32xbf16>
    "tpu.trace_start"() <{level = 10 : i32, message = "hnf,hmf->hnm"}> : () -> ()
    %cst_23 = arith.constant dense<0.000000e+00> : vector<4x16x16xf32>
    %42 = tpu.matmul %41, %35, %cst_23 {dimension_numbers = #tpu.dot_dimension_numbers<[2], [2], [1], [1], [0, 0, 0, 1, 1, 1], [0], [0]>} : vector<4x16x32xbf16>, vector<4x16x32xbf16>, vector<4x16x16xf32> -> vector<4x16x16xf32>
    "tpu.trace_stop"() : () -> ()
    %43 = vector.shape_cast %30 : vector<16x16xf32> to vector<1x16x16xf32>
    %44 = vector.broadcast %43 : vector<1x16x16xf32> to vector<4x16x16xf32>
    %45 = arith.addf %42, %44 : vector<4x16x16xf32>
    %cst_24 = arith.constant dense<0xFF800000> : vector<4x16xf32>
    %46 = vector.multi_reduction <maximumf>, %45, %cst_24 [2] : vector<4x16x16xf32> to vector<4x16xf32>
    %47 = vector.shape_cast %46 : vector<4x16xf32> to vector<4x16x1xf32>
    %48 = vector.broadcast %47 : vector<4x16x1xf32> to vector<4x16x16xf32>
    %49 = arith.subf %45, %48 : vector<4x16x16xf32>
    %50 = math.exp %49 : vector<4x16x16xf32>
    %cst_25 = arith.constant dense<0.000000e+00> : vector<4x16xf32>
    %51 = vector.multi_reduction <add>, %50, %cst_25 [2] : vector<4x16x16xf32> to vector<4x16xf32>
    %52 = vector.shape_cast %51 : vector<4x16xf32> to vector<4x16x1xf32>
    %53 = tpu.reciprocal %52 {approx = true} : vector<4x16x1xf32> -> vector<4x16x1xf32>
    %54 = vector.broadcast %53 : vector<4x16x1xf32> to vector<4x16x16xf32>
    %55 = arith.mulf %50, %54 : vector<4x16x16xf32>
    %56 = arith.truncf %55 : vector<4x16x16xf32> to vector<4x16x16xbf16>
    "tpu.trace_start"() <{level = 10 : i32, message = "hnm,hmd->hnd"}> : () -> ()
    %cst_26 = arith.constant dense<0.000000e+00> : vector<4x16x32xf32>
    %57 = tpu.matmul %56, %35, %cst_26 {dimension_numbers = #tpu.dot_dimension_numbers<[2], [1], [1], [2], [0, 0, 0, 1, 1, 2], [0], [0]>} : vector<4x16x16xbf16>, vector<4x16x32xbf16>, vector<4x16x32xf32> -> vector<4x16x32xf32>
    "tpu.trace_stop"() : () -> ()
    %58 = arith.truncf %57 : vector<4x16x32xf32> to vector<4x16x32xbf16>
    "tpu.trace_start"() <{level = 10 : i32, message = "hnd,hdf->hnf"}> : () -> ()
    %cst_27 = arith.constant dense<0.000000e+00> : vector<4x16x32xf32>
    %59 = tpu.matmul %58, %39, %cst_27 {dimension_numbers = #tpu.dot_dimension_numbers<[2], [1], [1], [2], [0, 0, 0, 1, 1, 2], [0], [0]>} : vector<4x16x32xbf16>, vector<4x32x32xbf16>, vector<4x16x32xf32> -> vector<4x16x32xf32>
    "tpu.trace_stop"() : () -> ()
    %cst_28 = arith.constant dense<0.000000e+00> : vector<16x32xf32>
    %60 = vector.multi_reduction <add>, %59, %cst_28 [0] : vector<4x16x32xf32> to vector<16x32xf32>
    %61 = arith.addf %60, %24 : vector<16x32xf32>
    %c2 = arith.constant 2 : index
    %c0_29 = arith.constant 0 : index
    %62 = vector.load %arg6[%c2, %c0_29] : memref<18x64xf32, #tpu.memory_space<vmem>>, vector<1x32xf32>
    %c3 = arith.constant 3 : index
    %c0_30 = arith.constant 0 : index
    %63 = vector.load %arg6[%c3, %c0_30] : memref<18x64xf32, #tpu.memory_space<vmem>>, vector<1x32xf32>
    %cst_31 = arith.constant dense<0.000000e+00> : vector<16xf32>
    %64 = vector.multi_reduction <add>, %61, %cst_31 [1] : vector<16x32xf32> to vector<16xf32>
    %65 = vector.shape_cast %64 : vector<16xf32> to vector<16x1xf32>
    %cst_32 = arith.constant 3.200000e+01 : f32
    %66 = vector.broadcast %cst_32 : f32 to vector<16x1xf32>
    %67 = arith.divf %65, %66 : vector<16x1xf32>
    %68 = vector.broadcast %67 : vector<16x1xf32> to vector<16x32xf32>
    %69 = arith.subf %61, %68 : vector<16x32xf32>
    %70 = arith.mulf %69, %69 : vector<16x32xf32>
    %cst_33 = arith.constant dense<0.000000e+00> : vector<16xf32>
    %71 = vector.multi_reduction <add>, %70, %cst_33 [1] : vector<16x32xf32> to vector<16xf32>
    %72 = vector.shape_cast %71 : vector<16xf32> to vector<16x1xf32>
    %cst_34 = arith.constant 3.200000e+01 : f32
    %73 = vector.broadcast %cst_34 : f32 to vector<16x1xf32>
    %74 = arith.divf %72, %73 : vector<16x1xf32>
    %75 = vector.broadcast %67 : vector<16x1xf32> to vector<16x32xf32>
    %76 = arith.subf %61, %75 : vector<16x32xf32>
    %cst_35 = arith.constant 9.99999997E-7 : f32
    %77 = vector.broadcast %cst_35 : f32 to vector<16x1xf32>
    %78 = arith.addf %74, %77 : vector<16x1xf32>
    %79 = math.rsqrt %78 : vector<16x1xf32>
    %80 = vector.broadcast %79 : vector<16x1xf32> to vector<16x32xf32>
    %81 = arith.mulf %76, %80 : vector<16x32xf32>
    %82 = vector.broadcast %62 : vector<1x32xf32> to vector<16x32xf32>
    %83 = arith.mulf %81, %82 : vector<16x32xf32>
    %84 = vector.broadcast %63 : vector<1x32xf32> to vector<16x32xf32>
    %85 = arith.addf %83, %84 : vector<16x32xf32>
    %86 = arith.truncf %85 : vector<16x32xf32> to vector<16x32xbf16>
    %87 = vector.shape_cast %86 : vector<16x32xbf16> to vector<1x16x32xbf16>
    %88 = vector.shape_cast %87 : vector<1x16x32xbf16> to vector<1x16x32xbf16>
    %89 = vector.broadcast %88 : vector<1x16x32xbf16> to vector<4x16x32xbf16>
    %c2_36 = arith.constant 2 : index
    %c0_37 = arith.constant 0 : index
    %c0_38 = arith.constant 0 : index
    %c0_39 = arith.constant 0 : index
    %90 = vector.load %arg4[%c2_36, %c0_37, %c0_38, %c0_39] : memref<8x4x32x32xbf16, #tpu.memory_space<vmem>>, vector<1x4x32x32xbf16>
    %91 = vector.shape_cast %90 : vector<1x4x32x32xbf16> to vector<4x32x32xbf16>
    %c3_40 = arith.constant 3 : index
    %c0_41 = arith.constant 0 : index
    %c0_42 = arith.constant 0 : index
    %c0_43 = arith.constant 0 : index
    %92 = vector.load %arg4[%c3_40, %c0_41, %c0_42, %c0_43] : memref<8x4x32x32xbf16, #tpu.memory_space<vmem>>, vector<1x4x32x32xbf16>
    %93 = vector.shape_cast %92 : vector<1x4x32x32xbf16> to vector<4x32x32xbf16>
    "tpu.trace_start"() <{level = 10 : i32, message = "hnd,hdf->hnf"}> : () -> ()
    %cst_44 = arith.constant dense<0.000000e+00> : vector<4x16x32xf32>
    %94 = tpu.matmul %89, %91, %cst_44 {dimension_numbers = #tpu.dot_dimension_numbers<[2], [1], [1], [2], [0, 0, 0, 1, 1, 2], [0], [0]>} : vector<4x16x32xbf16>, vector<4x32x32xbf16>, vector<4x16x32xf32> -> vector<4x16x32xf32>
    "tpu.trace_stop"() : () -> ()
    %95 = arith.truncf %94 : vector<4x16x32xf32> to vector<4x16x32xbf16>
    "tpu.trace_start"() <{level = 10 : i32, message = "hnf,hmf->hnm"}> : () -> ()
    %cst_45 = arith.constant dense<0.000000e+00> : vector<4x16x20xf32>
    %96 = tpu.matmul %95, %29, %cst_45 {dimension_numbers = #tpu.dot_dimension_numbers<[2], [2], [1], [1], [0, 0, 0, 1, 1, 1], [0], [0]>} : vector<4x16x32xbf16>, vector<4x20x32xbf16>, vector<4x16x20xf32> -> vector<4x16x20xf32>
    "tpu.trace_stop"() : () -> ()
    %97 = vector.shape_cast %31 : vector<16x20xf32> to vector<1x16x20xf32>
    %98 = vector.broadcast %97 : vector<1x16x20xf32> to vector<4x16x20xf32>
    %99 = arith.addf %96, %98 : vector<4x16x20xf32>
    %cst_46 = arith.constant dense<0xFF800000> : vector<4x16xf32>
    %100 = vector.multi_reduction <maximumf>, %99, %cst_46 [2] : vector<4x16x20xf32> to vector<4x16xf32>
    %101 = vector.shape_cast %100 : vector<4x16xf32> to vector<4x16x1xf32>
    %102 = vector.broadcast %101 : vector<4x16x1xf32> to vector<4x16x20xf32>
    %103 = arith.subf %99, %102 : vector<4x16x20xf32>
    %104 = math.exp %103 : vector<4x16x20xf32>
    %cst_47 = arith.constant dense<0.000000e+00> : vector<4x16xf32>
    %105 = vector.multi_reduction <add>, %104, %cst_47 [2] : vector<4x16x20xf32> to vector<4x16xf32>
    %106 = vector.shape_cast %105 : vector<4x16xf32> to vector<4x16x1xf32>
    %107 = tpu.reciprocal %106 {approx = true} : vector<4x16x1xf32> -> vector<4x16x1xf32>
    %108 = vector.broadcast %107 : vector<4x16x1xf32> to vector<4x16x20xf32>
    %109 = arith.mulf %104, %108 : vector<4x16x20xf32>
    %110 = arith.truncf %109 : vector<4x16x20xf32> to vector<4x16x20xbf16>
    "tpu.trace_start"() <{level = 10 : i32, message = "hnm,hmd->hnd"}> : () -> ()
    %cst_48 = arith.constant dense<0.000000e+00> : vector<4x16x32xf32>
    %111 = tpu.matmul %110, %29, %cst_48 {dimension_numbers = #tpu.dot_dimension_numbers<[2], [1], [1], [2], [0, 0, 0, 1, 1, 2], [0], [0]>} : vector<4x16x20xbf16>, vector<4x20x32xbf16>, vector<4x16x32xf32> -> vector<4x16x32xf32>
    "tpu.trace_stop"() : () -> ()
    %112 = arith.truncf %111 : vector<4x16x32xf32> to vector<4x16x32xbf16>
    "tpu.trace_start"() <{level = 10 : i32, message = "hnd,hdf->hnf"}> : () -> ()
    %cst_49 = arith.constant dense<0.000000e+00> : vector<4x16x32xf32>
    %113 = tpu.matmul %112, %93, %cst_49 {dimension_numbers = #tpu.dot_dimension_numbers<[2], [1], [1], [2], [0, 0, 0, 1, 1, 2], [0], [0]>} : vector<4x16x32xbf16>, vector<4x32x32xbf16>, vector<4x16x32xf32> -> vector<4x16x32xf32>
    "tpu.trace_stop"() : () -> ()
    %cst_50 = arith.constant dense<0.000000e+00> : vector<16x32xf32>
    %114 = vector.multi_reduction <add>, %113, %cst_50 [0] : vector<4x16x32xf32> to vector<16x32xf32>
    %115 = arith.addf %114, %85 : vector<16x32xf32>
    %c4 = arith.constant 4 : index
    %c0_51 = arith.constant 0 : index
    %116 = vector.load %arg6[%c4, %c0_51] : memref<18x64xf32, #tpu.memory_space<vmem>>, vector<1x32xf32>
    %c5 = arith.constant 5 : index
    %c0_52 = arith.constant 0 : index
    %117 = vector.load %arg6[%c5, %c0_52] : memref<18x64xf32, #tpu.memory_space<vmem>>, vector<1x32xf32>
    %cst_53 = arith.constant dense<0.000000e+00> : vector<16xf32>
    %118 = vector.multi_reduction <add>, %115, %cst_53 [1] : vector<16x32xf32> to vector<16xf32>
    %119 = vector.shape_cast %118 : vector<16xf32> to vector<16x1xf32>
    %cst_54 = arith.constant 3.200000e+01 : f32
    %120 = vector.broadcast %cst_54 : f32 to vector<16x1xf32>
    %121 = arith.divf %119, %120 : vector<16x1xf32>
    %122 = vector.broadcast %121 : vector<16x1xf32> to vector<16x32xf32>
    %123 = arith.subf %115, %122 : vector<16x32xf32>
    %124 = arith.mulf %123, %123 : vector<16x32xf32>
    %cst_55 = arith.constant dense<0.000000e+00> : vector<16xf32>
    %125 = vector.multi_reduction <add>, %124, %cst_55 [1] : vector<16x32xf32> to vector<16xf32>
    %126 = vector.shape_cast %125 : vector<16xf32> to vector<16x1xf32>
    %cst_56 = arith.constant 3.200000e+01 : f32
    %127 = vector.broadcast %cst_56 : f32 to vector<16x1xf32>
    %128 = arith.divf %126, %127 : vector<16x1xf32>
    %129 = vector.broadcast %121 : vector<16x1xf32> to vector<16x32xf32>
    %130 = arith.subf %115, %129 : vector<16x32xf32>
    %cst_57 = arith.constant 9.99999997E-7 : f32
    %131 = vector.broadcast %cst_57 : f32 to vector<16x1xf32>
    %132 = arith.addf %128, %131 : vector<16x1xf32>
    %133 = math.rsqrt %132 : vector<16x1xf32>
    %134 = vector.broadcast %133 : vector<16x1xf32> to vector<16x32xf32>
    %135 = arith.mulf %130, %134 : vector<16x32xf32>
    %136 = vector.broadcast %116 : vector<1x32xf32> to vector<16x32xf32>
    %137 = arith.mulf %135, %136 : vector<16x32xf32>
    %138 = vector.broadcast %117 : vector<1x32xf32> to vector<16x32xf32>
    %139 = arith.addf %137, %138 : vector<16x32xf32>
    %c0_58 = arith.constant 0 : index
    %c0_59 = arith.constant 0 : index
    %140 = vector.load %arg5[%c0_58, %c0_59] : memref<224x128xbf16, #tpu.memory_space<vmem>>, vector<32x64xbf16>
    %c32 = arith.constant 32 : index
    %c0_60 = arith.constant 0 : index
    %141 = vector.load %arg5[%c32, %c0_60] : memref<224x128xbf16, #tpu.memory_space<vmem>>, vector<64x32xbf16>
    %142 = arith.truncf %139 : vector<16x32xf32> to vector<16x32xbf16>
    %cst_61 = arith.constant dense<0.000000e+00> : vector<16x64xf32>
    %143 = tpu.matmul %142, %140, %cst_61 {dimension_numbers = #tpu.dot_dimension_numbers<[1], [0], [0], [1], [0, 0, 1, 1], [], []>} : vector<16x32xbf16>, vector<32x64xbf16>, vector<16x64xf32> -> vector<16x64xf32>
    %c9 = arith.constant 9 : index
    %c0_62 = arith.constant 0 : index
    %144 = vector.load %arg6[%c9, %c0_62] : memref<18x64xf32, #tpu.memory_space<vmem>>, vector<1x64xf32>
    %145 = vector.broadcast %144 : vector<1x64xf32> to vector<16x64xf32>
    %146 = arith.addf %143, %145 : vector<16x64xf32>
    %cst_63 = arith.constant 0.000000e+00 : f32
    %147 = vector.broadcast %cst_63 : f32 to vector<16x64xf32>
    %148 = arith.maximumf %146, %147 : vector<16x64xf32>
    %149 = arith.truncf %148 : vector<16x64xf32> to vector<16x64xbf16>
    %cst_64 = arith.constant dense<0.000000e+00> : vector<16x32xf32>
    %150 = tpu.matmul %149, %141, %cst_64 {dimension_numbers = #tpu.dot_dimension_numbers<[1], [0], [0], [1], [0, 0, 1, 1], [], []>} : vector<16x64xbf16>, vector<64x32xbf16>, vector<16x32xf32> -> vector<16x32xf32>
    %c6 = arith.constant 6 : index
    %c0_65 = arith.constant 0 : index
    %151 = vector.load %arg6[%c6, %c0_65] : memref<18x64xf32, #tpu.memory_space<vmem>>, vector<1x32xf32>
    %152 = vector.broadcast %151 : vector<1x32xf32> to vector<16x32xf32>
    %153 = arith.addf %150, %152 : vector<16x32xf32>
    %154 = arith.addf %153, %139 : vector<16x32xf32>
    %c7 = arith.constant 7 : index
    %c0_66 = arith.constant 0 : index
    %155 = vector.load %arg6[%c7, %c0_66] : memref<18x64xf32, #tpu.memory_space<vmem>>, vector<1x32xf32>
    %c8 = arith.constant 8 : index
    %c0_67 = arith.constant 0 : index
    %156 = vector.load %arg6[%c8, %c0_67] : memref<18x64xf32, #tpu.memory_space<vmem>>, vector<1x32xf32>
    %cst_68 = arith.constant dense<0.000000e+00> : vector<16xf32>
    %157 = vector.multi_reduction <add>, %154, %cst_68 [1] : vector<16x32xf32> to vector<16xf32>
    %158 = vector.shape_cast %157 : vector<16xf32> to vector<16x1xf32>
    %cst_69 = arith.constant 3.200000e+01 : f32
    %159 = vector.broadcast %cst_69 : f32 to vector<16x1xf32>
    %160 = arith.divf %158, %159 : vector<16x1xf32>
    %161 = vector.broadcast %160 : vector<16x1xf32> to vector<16x32xf32>
    %162 = arith.subf %154, %161 : vector<16x32xf32>
    %163 = arith.mulf %162, %162 : vector<16x32xf32>
    %cst_70 = arith.constant dense<0.000000e+00> : vector<16xf32>
    %164 = vector.multi_reduction <add>, %163, %cst_70 [1] : vector<16x32xf32> to vector<16xf32>
    %165 = vector.shape_cast %164 : vector<16xf32> to vector<16x1xf32>
    %cst_71 = arith.constant 3.200000e+01 : f32
    %166 = vector.broadcast %cst_71 : f32 to vector<16x1xf32>
    %167 = arith.divf %165, %166 : vector<16x1xf32>
    %168 = vector.broadcast %160 : vector<16x1xf32> to vector<16x32xf32>
    %169 = arith.subf %154, %168 : vector<16x32xf32>
    %cst_72 = arith.constant 9.99999997E-7 : f32
    %170 = vector.broadcast %cst_72 : f32 to vector<16x1xf32>
    %171 = arith.addf %167, %170 : vector<16x1xf32>
    %172 = math.rsqrt %171 : vector<16x1xf32>
    %173 = vector.broadcast %172 : vector<16x1xf32> to vector<16x32xf32>
    %174 = arith.mulf %169, %173 : vector<16x32xf32>
    %175 = vector.broadcast %155 : vector<1x32xf32> to vector<16x32xf32>
    %176 = arith.mulf %174, %175 : vector<16x32xf32>
    %177 = vector.broadcast %156 : vector<1x32xf32> to vector<16x32xf32>
    %178 = arith.addf %176, %177 : vector<16x32xf32>
    %179 = arith.truncf %178 : vector<16x32xf32> to vector<16x32xbf16>
    %180 = vector.shape_cast %179 : vector<16x32xbf16> to vector<1x16x32xbf16>
    %181 = vector.shape_cast %180 : vector<1x16x32xbf16> to vector<1x16x32xbf16>
    %182 = vector.broadcast %181 : vector<1x16x32xbf16> to vector<4x16x32xbf16>
    %c4_73 = arith.constant 4 : index
    %c0_74 = arith.constant 0 : index
    %c0_75 = arith.constant 0 : index
    %c0_76 = arith.constant 0 : index
    %183 = vector.load %arg4[%c4_73, %c0_74, %c0_75, %c0_76] : memref<8x4x32x32xbf16, #tpu.memory_space<vmem>>, vector<1x4x32x32xbf16>
    %184 = vector.shape_cast %183 : vector<1x4x32x32xbf16> to vector<4x32x32xbf16>
    %c5_77 = arith.constant 5 : index
    %c0_78 = arith.constant 0 : index
    %c0_79 = arith.constant 0 : index
    %c0_80 = arith.constant 0 : index
    %185 = vector.load %arg4[%c5_77, %c0_78, %c0_79, %c0_80] : memref<8x4x32x32xbf16, #tpu.memory_space<vmem>>, vector<1x4x32x32xbf16>
    %186 = vector.shape_cast %185 : vector<1x4x32x32xbf16> to vector<4x32x32xbf16>
    "tpu.trace_start"() <{level = 10 : i32, message = "hnd,hdf->hnf"}> : () -> ()
    %cst_81 = arith.constant dense<0.000000e+00> : vector<4x16x32xf32>
    %187 = tpu.matmul %182, %184, %cst_81 {dimension_numbers = #tpu.dot_dimension_numbers<[2], [1], [1], [2], [0, 0, 0, 1, 1, 2], [0], [0]>} : vector<4x16x32xbf16>, vector<4x32x32xbf16>, vector<4x16x32xf32> -> vector<4x16x32xf32>
    "tpu.trace_stop"() : () -> ()
    %188 = arith.truncf %187 : vector<4x16x32xf32> to vector<4x16x32xbf16>
    "tpu.trace_start"() <{level = 10 : i32, message = "hnf,hmf->hnm"}> : () -> ()
    %cst_82 = arith.constant dense<0.000000e+00> : vector<4x16x16xf32>
    %189 = tpu.matmul %188, %182, %cst_82 {dimension_numbers = #tpu.dot_dimension_numbers<[2], [2], [1], [1], [0, 0, 0, 1, 1, 1], [0], [0]>} : vector<4x16x32xbf16>, vector<4x16x32xbf16>, vector<4x16x16xf32> -> vector<4x16x16xf32>
    "tpu.trace_stop"() : () -> ()
    %190 = vector.shape_cast %30 : vector<16x16xf32> to vector<1x16x16xf32>
    %191 = vector.broadcast %190 : vector<1x16x16xf32> to vector<4x16x16xf32>
    %192 = arith.addf %189, %191 : vector<4x16x16xf32>
    %cst_83 = arith.constant dense<0xFF800000> : vector<4x16xf32>
    %193 = vector.multi_reduction <maximumf>, %192, %cst_83 [2] : vector<4x16x16xf32> to vector<4x16xf32>
    %194 = vector.shape_cast %193 : vector<4x16xf32> to vector<4x16x1xf32>
    %195 = vector.broadcast %194 : vector<4x16x1xf32> to vector<4x16x16xf32>
    %196 = arith.subf %192, %195 : vector<4x16x16xf32>
    %197 = math.exp %196 : vector<4x16x16xf32>
    %cst_84 = arith.constant dense<0.000000e+00> : vector<4x16xf32>
    %198 = vector.multi_reduction <add>, %197, %cst_84 [2] : vector<4x16x16xf32> to vector<4x16xf32>
    %199 = vector.shape_cast %198 : vector<4x16xf32> to vector<4x16x1xf32>
    %200 = tpu.reciprocal %199 {approx = true} : vector<4x16x1xf32> -> vector<4x16x1xf32>
    %201 = vector.broadcast %200 : vector<4x16x1xf32> to vector<4x16x16xf32>
    %202 = arith.mulf %197, %201 : vector<4x16x16xf32>
    %203 = arith.truncf %202 : vector<4x16x16xf32> to vector<4x16x16xbf16>
    "tpu.trace_start"() <{level = 10 : i32, message = "hnm,hmd->hnd"}> : () -> ()
    %cst_85 = arith.constant dense<0.000000e+00> : vector<4x16x32xf32>
    %204 = tpu.matmul %203, %182, %cst_85 {dimension_numbers = #tpu.dot_dimension_numbers<[2], [1], [1], [2], [0, 0, 0, 1, 1, 2], [0], [0]>} : vector<4x16x16xbf16>, vector<4x16x32xbf16>, vector<4x16x32xf32> -> vector<4x16x32xf32>
    "tpu.trace_stop"() : () -> ()
    %205 = arith.truncf %204 : vector<4x16x32xf32> to vector<4x16x32xbf16>
    "tpu.trace_start"() <{level = 10 : i32, message = "hnd,hdf->hnf"}> : () -> ()
    %cst_86 = arith.constant dense<0.000000e+00> : vector<4x16x32xf32>
    %206 = tpu.matmul %205, %186, %cst_86 {dimension_numbers = #tpu.dot_dimension_numbers<[2], [1], [1], [2], [0, 0, 0, 1, 1, 2], [0], [0]>} : vector<4x16x32xbf16>, vector<4x32x32xbf16>, vector<4x16x32xf32> -> vector<4x16x32xf32>
    "tpu.trace_stop"() : () -> ()
    %cst_87 = arith.constant dense<0.000000e+00> : vector<16x32xf32>
    %207 = vector.multi_reduction <add>, %206, %cst_87 [0] : vector<4x16x32xf32> to vector<16x32xf32>
    %208 = arith.addf %207, %178 : vector<16x32xf32>
    %c10 = arith.constant 10 : index
    %c0_88 = arith.constant 0 : index
    %209 = vector.load %arg6[%c10, %c0_88] : memref<18x64xf32, #tpu.memory_space<vmem>>, vector<1x32xf32>
    %c11 = arith.constant 11 : index
    %c0_89 = arith.constant 0 : index
    %210 = vector.load %arg6[%c11, %c0_89] : memref<18x64xf32, #tpu.memory_space<vmem>>, vector<1x32xf32>
    %cst_90 = arith.constant dense<0.000000e+00> : vector<16xf32>
    %211 = vector.multi_reduction <add>, %208, %cst_90 [1] : vector<16x32xf32> to vector<16xf32>
    %212 = vector.shape_cast %211 : vector<16xf32> to vector<16x1xf32>
    %cst_91 = arith.constant 3.200000e+01 : f32
    %213 = vector.broadcast %cst_91 : f32 to vector<16x1xf32>
    %214 = arith.divf %212, %213 : vector<16x1xf32>
    %215 = vector.broadcast %214 : vector<16x1xf32> to vector<16x32xf32>
    %216 = arith.subf %208, %215 : vector<16x32xf32>
    %217 = arith.mulf %216, %216 : vector<16x32xf32>
    %cst_92 = arith.constant dense<0.000000e+00> : vector<16xf32>
    %218 = vector.multi_reduction <add>, %217, %cst_92 [1] : vector<16x32xf32> to vector<16xf32>
    %219 = vector.shape_cast %218 : vector<16xf32> to vector<16x1xf32>
    %cst_93 = arith.constant 3.200000e+01 : f32
    %220 = vector.broadcast %cst_93 : f32 to vector<16x1xf32>
    %221 = arith.divf %219, %220 : vector<16x1xf32>
    %222 = vector.broadcast %214 : vector<16x1xf32> to vector<16x32xf32>
    %223 = arith.subf %208, %222 : vector<16x32xf32>
    %cst_94 = arith.constant 9.99999997E-7 : f32
    %224 = vector.broadcast %cst_94 : f32 to vector<16x1xf32>
    %225 = arith.addf %221, %224 : vector<16x1xf32>
    %226 = math.rsqrt %225 : vector<16x1xf32>
    %227 = vector.broadcast %226 : vector<16x1xf32> to vector<16x32xf32>
    %228 = arith.mulf %223, %227 : vector<16x32xf32>
    %229 = vector.broadcast %209 : vector<1x32xf32> to vector<16x32xf32>
    %230 = arith.mulf %228, %229 : vector<16x32xf32>
    %231 = vector.broadcast %210 : vector<1x32xf32> to vector<16x32xf32>
    %232 = arith.addf %230, %231 : vector<16x32xf32>
    %233 = arith.truncf %232 : vector<16x32xf32> to vector<16x32xbf16>
    %234 = vector.shape_cast %233 : vector<16x32xbf16> to vector<1x16x32xbf16>
    %235 = vector.shape_cast %234 : vector<1x16x32xbf16> to vector<1x16x32xbf16>
    %236 = vector.broadcast %235 : vector<1x16x32xbf16> to vector<4x16x32xbf16>
    %c6_95 = arith.constant 6 : index
    %c0_96 = arith.constant 0 : index
    %c0_97 = arith.constant 0 : index
    %c0_98 = arith.constant 0 : index
    %237 = vector.load %arg4[%c6_95, %c0_96, %c0_97, %c0_98] : memref<8x4x32x32xbf16, #tpu.memory_space<vmem>>, vector<1x4x32x32xbf16>
    %238 = vector.shape_cast %237 : vector<1x4x32x32xbf16> to vector<4x32x32xbf16>
    %c7_99 = arith.constant 7 : index
    %c0_100 = arith.constant 0 : index
    %c0_101 = arith.constant 0 : index
    %c0_102 = arith.constant 0 : index
    %239 = vector.load %arg4[%c7_99, %c0_100, %c0_101, %c0_102] : memref<8x4x32x32xbf16, #tpu.memory_space<vmem>>, vector<1x4x32x32xbf16>
    %240 = vector.shape_cast %239 : vector<1x4x32x32xbf16> to vector<4x32x32xbf16>
    "tpu.trace_start"() <{level = 10 : i32, message = "hnd,hdf->hnf"}> : () -> ()
    %cst_103 = arith.constant dense<0.000000e+00> : vector<4x16x32xf32>
    %241 = tpu.matmul %236, %238, %cst_103 {dimension_numbers = #tpu.dot_dimension_numbers<[2], [1], [1], [2], [0, 0, 0, 1, 1, 2], [0], [0]>} : vector<4x16x32xbf16>, vector<4x32x32xbf16>, vector<4x16x32xf32> -> vector<4x16x32xf32>
    "tpu.trace_stop"() : () -> ()
    %242 = arith.truncf %241 : vector<4x16x32xf32> to vector<4x16x32xbf16>
    "tpu.trace_start"() <{level = 10 : i32, message = "hnf,hmf->hnm"}> : () -> ()
    %cst_104 = arith.constant dense<0.000000e+00> : vector<4x16x20xf32>
    %243 = tpu.matmul %242, %29, %cst_104 {dimension_numbers = #tpu.dot_dimension_numbers<[2], [2], [1], [1], [0, 0, 0, 1, 1, 1], [0], [0]>} : vector<4x16x32xbf16>, vector<4x20x32xbf16>, vector<4x16x20xf32> -> vector<4x16x20xf32>
    "tpu.trace_stop"() : () -> ()
    %244 = vector.shape_cast %31 : vector<16x20xf32> to vector<1x16x20xf32>
    %245 = vector.broadcast %244 : vector<1x16x20xf32> to vector<4x16x20xf32>
    %246 = arith.addf %243, %245 : vector<4x16x20xf32>
    %cst_105 = arith.constant dense<0xFF800000> : vector<4x16xf32>
    %247 = vector.multi_reduction <maximumf>, %246, %cst_105 [2] : vector<4x16x20xf32> to vector<4x16xf32>
    %248 = vector.shape_cast %247 : vector<4x16xf32> to vector<4x16x1xf32>
    %249 = vector.broadcast %248 : vector<4x16x1xf32> to vector<4x16x20xf32>
    %250 = arith.subf %246, %249 : vector<4x16x20xf32>
    %251 = math.exp %250 : vector<4x16x20xf32>
    %cst_106 = arith.constant dense<0.000000e+00> : vector<4x16xf32>
    %252 = vector.multi_reduction <add>, %251, %cst_106 [2] : vector<4x16x20xf32> to vector<4x16xf32>
    %253 = vector.shape_cast %252 : vector<4x16xf32> to vector<4x16x1xf32>
    %254 = tpu.reciprocal %253 {approx = true} : vector<4x16x1xf32> -> vector<4x16x1xf32>
    %255 = vector.broadcast %254 : vector<4x16x1xf32> to vector<4x16x20xf32>
    %256 = arith.mulf %251, %255 : vector<4x16x20xf32>
    %257 = arith.truncf %256 : vector<4x16x20xf32> to vector<4x16x20xbf16>
    "tpu.trace_start"() <{level = 10 : i32, message = "hnm,hmd->hnd"}> : () -> ()
    %cst_107 = arith.constant dense<0.000000e+00> : vector<4x16x32xf32>
    %258 = tpu.matmul %257, %29, %cst_107 {dimension_numbers = #tpu.dot_dimension_numbers<[2], [1], [1], [2], [0, 0, 0, 1, 1, 2], [0], [0]>} : vector<4x16x20xbf16>, vector<4x20x32xbf16>, vector<4x16x32xf32> -> vector<4x16x32xf32>
    "tpu.trace_stop"() : () -> ()
    %259 = arith.truncf %258 : vector<4x16x32xf32> to vector<4x16x32xbf16>
    "tpu.trace_start"() <{level = 10 : i32, message = "hnd,hdf->hnf"}> : () -> ()
    %cst_108 = arith.constant dense<0.000000e+00> : vector<4x16x32xf32>
    %260 = tpu.matmul %259, %240, %cst_108 {dimension_numbers = #tpu.dot_dimension_numbers<[2], [1], [1], [2], [0, 0, 0, 1, 1, 2], [0], [0]>} : vector<4x16x32xbf16>, vector<4x32x32xbf16>, vector<4x16x32xf32> -> vector<4x16x32xf32>
    "tpu.trace_stop"() : () -> ()
    %cst_109 = arith.constant dense<0.000000e+00> : vector<16x32xf32>
    %261 = vector.multi_reduction <add>, %260, %cst_109 [0] : vector<4x16x32xf32> to vector<16x32xf32>
    %262 = arith.addf %261, %232 : vector<16x32xf32>
    %c12 = arith.constant 12 : index
    %c0_110 = arith.constant 0 : index
    %263 = vector.load %arg6[%c12, %c0_110] : memref<18x64xf32, #tpu.memory_space<vmem>>, vector<1x32xf32>
    %c13 = arith.constant 13 : index
    %c0_111 = arith.constant 0 : index
    %264 = vector.load %arg6[%c13, %c0_111] : memref<18x64xf32, #tpu.memory_space<vmem>>, vector<1x32xf32>
    %cst_112 = arith.constant dense<0.000000e+00> : vector<16xf32>
    %265 = vector.multi_reduction <add>, %262, %cst_112 [1] : vector<16x32xf32> to vector<16xf32>
    %266 = vector.shape_cast %265 : vector<16xf32> to vector<16x1xf32>
    %cst_113 = arith.constant 3.200000e+01 : f32
    %267 = vector.broadcast %cst_113 : f32 to vector<16x1xf32>
    %268 = arith.divf %266, %267 : vector<16x1xf32>
    %269 = vector.broadcast %268 : vector<16x1xf32> to vector<16x32xf32>
    %270 = arith.subf %262, %269 : vector<16x32xf32>
    %271 = arith.mulf %270, %270 : vector<16x32xf32>
    %cst_114 = arith.constant dense<0.000000e+00> : vector<16xf32>
    %272 = vector.multi_reduction <add>, %271, %cst_114 [1] : vector<16x32xf32> to vector<16xf32>
    %273 = vector.shape_cast %272 : vector<16xf32> to vector<16x1xf32>
    %cst_115 = arith.constant 3.200000e+01 : f32
    %274 = vector.broadcast %cst_115 : f32 to vector<16x1xf32>
    %275 = arith.divf %273, %274 : vector<16x1xf32>
    %276 = vector.broadcast %268 : vector<16x1xf32> to vector<16x32xf32>
    %277 = arith.subf %262, %276 : vector<16x32xf32>
    %cst_116 = arith.constant 9.99999997E-7 : f32
    %278 = vector.broadcast %cst_116 : f32 to vector<16x1xf32>
    %279 = arith.addf %275, %278 : vector<16x1xf32>
    %280 = math.rsqrt %279 : vector<16x1xf32>
    %281 = vector.broadcast %280 : vector<16x1xf32> to vector<16x32xf32>
    %282 = arith.mulf %277, %281 : vector<16x32xf32>
    %283 = vector.broadcast %263 : vector<1x32xf32> to vector<16x32xf32>
    %284 = arith.mulf %282, %283 : vector<16x32xf32>
    %285 = vector.broadcast %264 : vector<1x32xf32> to vector<16x32xf32>
    %286 = arith.addf %284, %285 : vector<16x32xf32>
    %c96 = arith.constant 96 : index
    %c0_117 = arith.constant 0 : index
    %287 = vector.load %arg5[%c96, %c0_117] : memref<224x128xbf16, #tpu.memory_space<vmem>>, vector<32x64xbf16>
    %c128 = arith.constant 128 : index
    %c0_118 = arith.constant 0 : index
    %288 = vector.load %arg5[%c128, %c0_118] : memref<224x128xbf16, #tpu.memory_space<vmem>>, vector<64x32xbf16>
    %289 = arith.truncf %286 : vector<16x32xf32> to vector<16x32xbf16>
    %cst_119 = arith.constant dense<0.000000e+00> : vector<16x64xf32>
    %290 = tpu.matmul %289, %287, %cst_119 {dimension_numbers = #tpu.dot_dimension_numbers<[1], [0], [0], [1], [0, 0, 1, 1], [], []>} : vector<16x32xbf16>, vector<32x64xbf16>, vector<16x64xf32> -> vector<16x64xf32>
    %c17 = arith.constant 17 : index
    %c0_120 = arith.constant 0 : index
    %291 = vector.load %arg6[%c17, %c0_120] : memref<18x64xf32, #tpu.memory_space<vmem>>, vector<1x64xf32>
    %292 = vector.broadcast %291 : vector<1x64xf32> to vector<16x64xf32>
    %293 = arith.addf %290, %292 : vector<16x64xf32>
    %cst_121 = arith.constant 0.000000e+00 : f32
    %294 = vector.broadcast %cst_121 : f32 to vector<16x64xf32>
    %295 = arith.maximumf %293, %294 : vector<16x64xf32>
    %296 = arith.truncf %295 : vector<16x64xf32> to vector<16x64xbf16>
    %cst_122 = arith.constant dense<0.000000e+00> : vector<16x32xf32>
    %297 = tpu.matmul %296, %288, %cst_122 {dimension_numbers = #tpu.dot_dimension_numbers<[1], [0], [0], [1], [0, 0, 1, 1], [], []>} : vector<16x64xbf16>, vector<64x32xbf16>, vector<16x32xf32> -> vector<16x32xf32>
    %c14 = arith.constant 14 : index
    %c0_123 = arith.constant 0 : index
    %298 = vector.load %arg6[%c14, %c0_123] : memref<18x64xf32, #tpu.memory_space<vmem>>, vector<1x32xf32>
    %299 = vector.broadcast %298 : vector<1x32xf32> to vector<16x32xf32>
    %300 = arith.addf %297, %299 : vector<16x32xf32>
    %301 = arith.addf %300, %286 : vector<16x32xf32>
    %c15 = arith.constant 15 : index
    %c0_124 = arith.constant 0 : index
    %302 = vector.load %arg6[%c15, %c0_124] : memref<18x64xf32, #tpu.memory_space<vmem>>, vector<1x32xf32>
    %c16 = arith.constant 16 : index
    %c0_125 = arith.constant 0 : index
    %303 = vector.load %arg6[%c16, %c0_125] : memref<18x64xf32, #tpu.memory_space<vmem>>, vector<1x32xf32>
    %cst_126 = arith.constant dense<0.000000e+00> : vector<16xf32>
    %304 = vector.multi_reduction <add>, %301, %cst_126 [1] : vector<16x32xf32> to vector<16xf32>
    %305 = vector.shape_cast %304 : vector<16xf32> to vector<16x1xf32>
    %cst_127 = arith.constant 3.200000e+01 : f32
    %306 = vector.broadcast %cst_127 : f32 to vector<16x1xf32>
    %307 = arith.divf %305, %306 : vector<16x1xf32>
    %308 = vector.broadcast %307 : vector<16x1xf32> to vector<16x32xf32>
    %309 = arith.subf %301, %308 : vector<16x32xf32>
    %310 = arith.mulf %309, %309 : vector<16x32xf32>
    %cst_128 = arith.constant dense<0.000000e+00> : vector<16xf32>
    %311 = vector.multi_reduction <add>, %310, %cst_128 [1] : vector<16x32xf32> to vector<16xf32>
    %312 = vector.shape_cast %311 : vector<16xf32> to vector<16x1xf32>
    %cst_129 = arith.constant 3.200000e+01 : f32
    %313 = vector.broadcast %cst_129 : f32 to vector<16x1xf32>
    %314 = arith.divf %312, %313 : vector<16x1xf32>
    %315 = vector.broadcast %307 : vector<16x1xf32> to vector<16x32xf32>
    %316 = arith.subf %301, %315 : vector<16x32xf32>
    %cst_130 = arith.constant 9.99999997E-7 : f32
    %317 = vector.broadcast %cst_130 : f32 to vector<16x1xf32>
    %318 = arith.addf %314, %317 : vector<16x1xf32>
    %319 = math.rsqrt %318 : vector<16x1xf32>
    %320 = vector.broadcast %319 : vector<16x1xf32> to vector<16x32xf32>
    %321 = arith.mulf %316, %320 : vector<16x32xf32>
    %322 = vector.broadcast %302 : vector<1x32xf32> to vector<16x32xf32>
    %323 = arith.mulf %321, %322 : vector<16x32xf32>
    %324 = vector.broadcast %303 : vector<1x32xf32> to vector<16x32xf32>
    %325 = arith.addf %323, %324 : vector<16x32xf32>
    %c192 = arith.constant 192 : index
    %c0_131 = arith.constant 0 : index
    %326 = vector.load %arg5[%c192, %c0_131] : memref<224x128xbf16, #tpu.memory_space<vmem>>, vector<32x128xbf16>
    %327 = arith.truncf %325 : vector<16x32xf32> to vector<16x32xbf16>
    %cst_132 = arith.constant dense<0.000000e+00> : vector<16x128xf32>
    %328 = tpu.matmul %327, %326, %cst_132 {dimension_numbers = #tpu.dot_dimension_numbers<[1], [0], [0], [1], [0, 0, 1, 1], [], []>} : vector<16x32xbf16>, vector<32x128xbf16>, vector<16x128xf32> -> vector<16x128xf32>
    %c0_133 = arith.constant 0 : index
    %c0_134 = arith.constant 0 : index
    %329 = vector.load %arg7[%c0_133, %c0_134] : memref<16x128xf32, #tpu.memory_space<vmem>>, vector<16x128xf32>
    tpu.vector_store %arg7[%c0_133, %c0_134], %328 {strides = array<i32>} : memref<16x128xf32, #tpu.memory_space<vmem>>, vector<16x128xf32>,
    return
  }
}

</mosaic_0001>

<bundles_post_ra>
// kernel: decoder_forward.1
= control target key start
LH: loop header
LB: loop body
LE: loop exit
PB: predicated region body
PF: predicated region fallthrough
CT: control target
= control target key end

     0   :  { %12 = vsyncpa [#allocation3], 0  ;;  %s3695_s27 = smov [#allocation2]   ;;  %s3696_s29 = smov 64   ;;  %s4207_s0 = inlined_call_operand.vmem [shape: f32[16,32], index: 0, kind: input, shape index: {}]   ;;  %s4208_s1 = inlined_call_operand.vmem [shape: f32[20,32], index: 1, kind: input, shape index: {}]   ;;  %s4209_s2 = inlined_call_operand.vmem [shape: f32[16,16], index: 2, kind: input, shape index: {}]   ;;  %s4210_s3 = inlined_call_operand.vmem [shape: f32[16,20], index: 3, kind: input, shape index: {}]   ;;  %s4211_s4 = inlined_call_operand.hbm [shape: bf16[8,4,32,32], index: 4, kind: input, shape index: {}]   ;;  %s4212_s5 = inlined_call_operand.vmem [shape: bf16[224,128], index: 5, kind: input, shape index: {}]   ;;  %s4213_s6 = inlined_call_operand.vmem [shape: f32[18,64], index: 6, kind: input, shape index: {}]   ;;  %s4214_s7 = inlined_call_operand.vmem [shape: f32[16,128], index: 7, kind: output, shape index: {}]  }
   0x1   :  { %s25_s26 = sshll.u32 %s4211_s4, 4  ;;  %s27_s28 = sshll.u32 %s3695_s27, 4  ;;  %s26_s26 = int_to_ptr.hbm [resolvable:$true] %s25_s26  ;;  %s28_s28 = int_to_ptr.vmem [resolvable:$true] %s27_s28 }
   0x2   :  { %s3697_s30 = smov 4  }
   0x3   :  { %33 = dma.hbm_to_vmem [thread:$0]  %s26_s26, 8192, %s28_s28, [#allocation3], %s3696_s29, %s3696_s29, %s3697_s30  }
   0x4   :  { %3693 = dma.done.wait [#allocation3], 8192  }
   0x5   :  { %3694 = vsyncadd [#allocation3], 4294959104  ;;  %vm47_vm0 = vcmask 261120   ;;  %v43_v0 = vld [vmem:[%s4207_s0] sm:$0xff]  ;;  %v44_v2 = vld [vmem:[%s4207_s0 + $0x8] sm:$0xff]  ;;  %v3698_v4 = vmov 32.0  }
   0x6   :  { %v48_v1 = vsel %vm47_vm0, %v43_v0, 0.0  ;;  %v51_v3 = vsel %vm47_vm0, %v44_v2, 0.0  ;;  %3507 = vrcp.f32 %v3698_v4  ;;  %v3408_v23 = vld [vmem:[#allocation2 + $0x8] sm:$0xff]  ;;  %v3410_v24 = vld [vmem:[#allocation2 + $0x18] sm:$0xff]  ;;  %v3407_v28 = vld [vmem:[#allocation2] sm:$0xff]  ;;  %vm358_vm8 = vcmask 130048  }
   0x7   :  { %49 = vadd.xlane.f32.xlu0 %v48_v1  ;;  %v3412_v25 = vld [vmem:[#allocation2 + $0x28] sm:$0xff]  ;;  %v3414_v27 = vld [vmem:[#allocation2 + $0x38] sm:$0xff]  ;;  %176 = vmatpush.bf16.msra.mxu0 %v3408_v23  ;;  %v3409_v29 = vld [vmem:[#allocation2 + $0x10] sm:$0xff]  ;;  %vm1014_vm15 = vcmask 162816  }
   0x8   :  { %202 = vmatpush.bf16.msra.mxu1 %v3410_v24  ;;  %228 = vmatpush.bf16.msra.mxu2 %v3412_v25  ;;  %v3411_v30 = vld [vmem:[#allocation2 + $0x20] sm:$0xff]  ;;  %v3413_v31 = vld [vmem:[#allocation2 + $0x30] sm:$0xff] }
   0x9   :  { %254 = vmatpush.bf16.msra.mxu3 %v3414_v27  ;;  %v3489_v45 = vld [vmem:[%s4213_s6] ss:$0 sm:$0xff]  ;;  %v3490_v49 = vld [vmem:[%s4213_s6 + $0x1] ss:$0 sm:$0xff] }
   0xb   :  { %177 = vmatpush.bf16.msra.mxu0 %v3407_v28 }
   0xc   :  { %v3508_v5 = vpop.eup %3507  ;;  %203 = vmatpush.bf16.msra.mxu1 %v3409_v29  ;;  %229 = vmatpush.bf16.msra.mxu2 %v3411_v30  ;;  %v111_v29 = vld [vmem:[%s4209_s2] sm:$0xff] }
   0xd   :  { %v55_v6 = vmul.f32 32.0, %v3508_v5  ;;  %vm59_vm1 = vweird.f32 %v3508_v5  ;;  %255 = vmatpush.bf16.msra.mxu3 %v3413_v31 }
   0xf   :  { %52 = vadd.xlane.f32.xlu0 %v51_v3  ;;  %v56_v7 = vsub.f32 1.0, %v55_v6 }
  0x11   :  { %v57_v8 = vmul.f32 %v3508_v5, %v56_v7 }
  0x13   :  { %v58_v9 = vadd.f32 %v3508_v5, %v57_v8 }
  0x15   :  { %v3750_v10 = vsel %vm59_vm1, %v3508_v5, %v58_v9  ;;  %vm1120_vm1 = vcmask 1041408  }
  0x7a   :  { %v50_v11 = vpop.xlane.xlu0 %49 }
  0x7b   :  { %v61_v12 = vmul.f32 %v3750_v10, %v50_v11 }
  0x7d   :  { %v63_v13 = vsub.f32 %v43_v0, %v61_v12 }
  0x7f   :  { %v65_v14 = vmul.f32 %v63_v13, %v63_v13 }
  0x81   :  { %v67_v15 = vsel %vm47_vm0, %v65_v14, 0.0 }
  0x82   :  { %68 = vadd.xlane.f32.xlu1 %v67_v15  ;;  %v53_v16 = vpop.xlane.xlu0 %52 }
  0x83   :  { %v62_v17 = vmul.f32 %v3750_v10, %v53_v16 }
  0x85   :  { %v64_v18 = vsub.f32 %v44_v2, %v62_v17 }
  0x87   :  { %v66_v19 = vmul.f32 %v64_v18, %v64_v18 }
  0x89   :  { %v70_v20 = vsel %vm47_vm0, %v66_v19, 0.0 }
  0x8a   :  { %71 = vadd.xlane.f32.xlu1 %v70_v20 }
  0xf5   :  { %v69_v21 = vpop.xlane.xlu1 %68 }
  0xf6   :  { %v73_v22 = vmul.f32 %v69_v21, %v3750_v10 }
  0xf8   :  { %v75_v26 = vadd.f32 1e-06, %v73_v22 }
  0xfa   :  { %3509 = vrsqrt.f32 %v75_v26  ;;  %vm83_vm3 = vweird.f32 %v75_v26 }
  0xfd   :  { %v72_v32 = vpop.xlane.xlu1 %71 }
  0xfe   :  { %v74_v33 = vmul.f32 %v72_v32, %v3750_v10 }
 0x100   :  { %v3510_v34 = vpop.eup %3509  ;;  %v76_v35 = vadd.f32 1e-06, %v74_v33 }
 0x101   :  { %v78_v36 = vmul.f32 %v3510_v34, %v75_v26  ;;  %vm84_vm2 = vweird.f32 %v3510_v34 }
 0x102   :  { %3511 = vrsqrt.f32 %v76_v35  ;;  %vm85_vm4 = vmor %vm83_vm3, %vm84_vm2  ;;  %vm93_vm6 = vweird.f32 %v76_v35 }
 0x103   :  { %v79_v37 = vmul.f32 %v3510_v34, %v78_v36  ;;  %v112_v36 = vld [vmem:[%s4209_s2 + $0x8] sm:$0xff] }
 0x105   :  { %v80_v38 = vmul.f32 0.5, %v79_v37 }
 0x107   :  { %v81_v39 = vsub.f32 1.5, %v80_v38 }
 0x108   :  { %v3512_v40 = vpop.eup %3511 }
 0x109   :  { %v82_v41 = vmul.f32 %v3510_v34, %v81_v39  ;;  %v88_v42 = vmul.f32 %v3512_v40, %v76_v35  ;;  %vm94_vm5 = vweird.f32 %v3512_v40 }
 0x10a   :  { %vm95_vm7 = vmor %vm93_vm6, %vm94_vm5 }
 0x10b   :  { %v86_v43 = vsel %vm85_vm4, %v3510_v34, %v82_v41  ;;  %v89_v44 = vmul.f32 %v3512_v40, %v88_v42 }
 0x10c   :  { %v97_v46 = vmul.f32 %v86_v43, %v63_v13 }
 0x10d   :  { %v90_v47 = vmul.f32 0.5, %v89_v44 }
 0x10e   :  { %v100_v50 = vmul.f32 %v3489_v45, %v97_v46 }
 0x10f   :  { %v91_v48 = vsub.f32 1.5, %v90_v47 }
 0x110   :  { %v3764_v53 = vadd.f32 %v3490_v49, %v100_v50 }
 0x111   :  { %v92_v51 = vmul.f32 %v3512_v40, %v91_v48 }
 0x112   :  { %v115_v56 = vpack.c.bf16 %v3764_v53, %v3764_v53 }
 0x113   :  { %v96_v52 = vsel %vm95_vm7, %v3512_v40, %v92_v51 }
 0x114   :  { %v98_v54 = vmul.f32 %v96_v52, %v64_v18  ;;  %v152_v59 = vunpack.c.l.b16 %v115_v56 }
 0x116   :  { %v101_v55 = vmul.f32 %v3489_v45, %v98_v54 }
 0x118   :  { %v3768_v57 = vadd.f32 %v3490_v49, %v101_v55 }
 0x11a   :  { %v116_v58 = vpack.c.bf16 %v3768_v57, %v3768_v57 }
 0x11c   :  { %v153_v60 = vunpack.c.l.b16 %v116_v58 }
 0x11e   :  { %v154_v61 = vpack.c.b16 %v153_v60, %v152_v59 }
 0x120   :  { %3034 = vmatmul.msk.bf16.vlgmr.msra.gmra.mxu0 %vm47_vm0, %v154_v61  ;;  %3043 = vmatmul.msk.bf16.vlgmr.msra.gmra.mxu1 %vm47_vm0, %v154_v61  ;;  %v168_v62 = vsel %vm47_vm0, %v154_v61, 0 }
 0x121   :  { %3052 = vmatmul.msk.bf16.vlgmr.msra.gmra.mxu2 %vm47_vm0, %v154_v61  ;;  %3061 = vmatmul.msk.bf16.vlgmr.msra.gmra.mxu3 %vm47_vm0, %v154_v61 }
 0x122   :  { %285 = vmatpush.bf16.xpose.msrb.mxu0 %v168_v62  ;;  %307 = vmatpush.bf16.xpose.msrb.mxu1 %v168_v62 }
 0x123   :  { %329 = vmatpush.bf16.xpose.msrb.mxu2 %v168_v62  ;;  %351 = vmatpush.bf16.xpose.msrb.mxu3 %v168_v62 }
 0x12a   :  { %471 = vmatpush.bf16.msra.mxu0 %v154_v61  ;;  %493 = vmatpush.bf16.msra.mxu1 %v154_v61 }
 0x12b   :  { %515 = vmatpush.bf16.msra.mxu2 %v154_v61  ;;  %537 = vmatpush.bf16.msra.mxu3 %v154_v61 }
 0x19d   :  { %v179_v63 = vpop.f32.mrf.mxu0  ;;  %v205_v0 = vpop.f32.mrf.mxu1 }
 0x19e   :  { %v262_v1 = vpack.c.bf16 %v179_v63, %v179_v63  ;;  %v264_v2 = vpack.c.bf16 %v205_v0, %v205_v0 }
 0x1a0   :  { %v272_v9 = vunpack.c.l.b16 %v262_v1  ;;  %v294_v11 = vunpack.c.l.b16 %v264_v2 }
 0x1a4   :  { %v231_v3 = vpop.f32.mrf.mxu2  ;;  %v257_v4 = vpop.f32.mrf.mxu3 }
 0x1a5   :  { %v181_v5 = vpop.f32.mrf.mxu0  ;;  %v207_v6 = vpop.f32.mrf.mxu1  ;;  %v266_v16 = vpack.c.bf16 %v231_v3, %v231_v3  ;;  %v268_v17 = vpack.c.bf16 %v257_v4, %v257_v4 }
 0x1a6   :  { %v263_v7 = vpack.c.bf16 %v181_v5, %v181_v5  ;;  %v265_v8 = vpack.c.bf16 %v207_v6, %v207_v6 }
 0x1a7   :  { %v316_v22 = vunpack.c.l.b16 %v266_v16  ;;  %v338_v23 = vunpack.c.l.b16 %v268_v17 }
 0x1a8   :  { %v273_v12 = vunpack.c.l.b16 %v263_v7  ;;  %v295_v13 = vunpack.c.l.b16 %v265_v8 }
 0x1aa   :  { %v274_v14 = vpack.c.b16 %v273_v12, %v272_v9  ;;  %v296_v15 = vpack.c.b16 %v295_v13, %v294_v11 }
 0x1ac   :  { %v233_v18 = vpop.f32.mrf.mxu2  ;;  %v259_v19 = vpop.f32.mrf.mxu3  ;;  %3062 = vmatmul.msk.bf16.vlgmr.msrb.gmra.mxu0 %vm47_vm0, %v274_v14  ;;  %3063 = vmatmul.msk.bf16.vlgmr.msrb.gmra.mxu1 %vm47_vm0, %v296_v15 }
 0x1ad   :  { %v267_v20 = vpack.c.bf16 %v233_v18, %v233_v18  ;;  %v269_v21 = vpack.c.bf16 %v259_v19, %v259_v19 }
 0x1af   :  { %v317_v24 = vunpack.c.l.b16 %v267_v20  ;;  %v339_v25 = vunpack.c.l.b16 %v269_v21 }
 0x1b1   :  { %v318_v26 = vpack.c.b16 %v317_v24, %v316_v22  ;;  %v340_v27 = vpack.c.b16 %v339_v25, %v338_v23 }
 0x1b3   :  { %3064 = vmatmul.msk.bf16.vlgmr.msrb.gmra.mxu2 %vm47_vm0, %v318_v26  ;;  %3065 = vmatmul.msk.bf16.vlgmr.msrb.gmra.mxu3 %vm47_vm0, %v340_v27 }
 0x229   :  { %v287_v28 = vpop.f32.mrf.mxu0  ;;  %v309_v43 = vpop.f32.mrf.mxu1 }
 0x22a   :  { %v288_v47 = vadd.f32 %v287_v28, %v111_v29  ;;  %v310_v48 = vadd.f32 %v309_v43, %v111_v29 }
 0x22c   :  { %v365_v49 = vsel %vm358_vm8, %v310_v48, -inf  ;;  %v359_v50 = vsel %vm358_vm8, %v288_v47, -inf }
 0x231   :  { %v289_v37 = vpop.f32.mrf.mxu0  ;;  %v311_v51 = vpop.f32.mrf.mxu1 }
 0x232   :  { %v290_v38 = vadd.f32 %v289_v37, %v112_v36  ;;  %v312_v52 = vadd.f32 %v311_v51, %v112_v36 }
 0x234   :  { %v362_v46 = vsel %vm358_vm8, %v290_v38, -inf  ;;  %v368_v54 = vsel %vm358_vm8, %v312_v52, -inf }
 0x236   :  { %v331_v30 = vpop.f32.mrf.mxu2  ;;  %v353_v31 = vpop.f32.mrf.mxu3 }
 0x237   :  { %v332_v32 = vadd.f32 %v331_v30, %v111_v29  ;;  %v354_v33 = vadd.f32 %v353_v31, %v111_v29 }
 0x239   :  { %v377_v34 = vsel %vm358_vm8, %v354_v33, -inf  ;;  %v371_v35 = vsel %vm358_vm8, %v332_v32, -inf }
 0x23a   :  { %378 = vmax.xlane.f32.xlu0 %v377_v34  ;;  %372 = vmax.xlane.f32.xlu2 %v371_v35 }
 0x23e   :  { %v333_v39 = vpop.f32.mrf.mxu2  ;;  %v355_v40 = vpop.f32.mrf.mxu3 }
 0x23f   :  { %v334_v41 = vadd.f32 %v333_v39, %v112_v36  ;;  %v356_v42 = vadd.f32 %v355_v40, %v112_v36 }
 0x241   :  { %v380_v44 = vsel %vm358_vm8, %v356_v42, -inf  ;;  %v374_v45 = vsel %vm358_vm8, %v334_v41, -inf }
 0x242   :  { %381 = vmax.xlane.f32.xlu1 %v380_v44  ;;  %375 = vmax.xlane.f32.xlu2 %v374_v45 }
 0x243   :  { %363 = vmax.xlane.f32.xlu0 %v362_v46 }
 0x24a   :  { %366 = vmax.xlane.f32.xlu1 %v365_v49  ;;  %360 = vmax.xlane.f32.xlu2 %v359_v50 }
 0x252   :  { %369 = vmax.xlane.f32.xlu2 %v368_v54 }
 0x2ad   :  { %v379_v55 = vpop.xlane.xlu0 %378  ;;  %v373_v56 = vpop.xlane.xlu2 %372 }
 0x2ae   :  { %v389_v58 = vsub.f32 %v354_v33, %v379_v55  ;;  %v387_v59 = vsub.f32 %v332_v32, %v373_v56 }
 0x2b0   :  { %v403_v60 = vmul.f32 1.442695, %v389_v58  ;;  %v399_v61 = vmul.f32 1.442695, %v387_v59 }
 0x2b2   :  { %3513 = vpow2.f32 %v403_v60 }
 0x2b3   :  { %3515 = vpow2.f32 %v399_v61 }
 0x2b5   :  { %v382_v62 = vpop.xlane.xlu1 %381  ;;  %v376_v63 = vpop.xlane.xlu2 %375 }
 0x2b6   :  { %v390_v0 = vsub.f32 %v356_v42, %v382_v62  ;;  %v388_v1 = vsub.f32 %v334_v41, %v376_v63  ;;  %v364_v2 = vpop.xlane.xlu0 %363 }
 0x2b7   :  { %v384_v3 = vsub.f32 %v290_v38, %v364_v2 }
 0x2b8   :  { %v3514_v4 = vpop.eup %3513  ;;  %v405_v5 = vmul.f32 1.442695, %v390_v0  ;;  %v401_v6 = vmul.f32 1.442695, %v388_v1 }
 0x2b9   :  { %v3516_v7 = vpop.eup %3515  ;;  %v393_v8 = vmul.f32 1.442695, %v384_v3  ;;  %v425_v9 = vsel %vm358_vm8, %v3514_v4, 0.0 }
 0x2ba   :  { %3517 = vpow2.f32 %v405_v5  ;;  %v419_v11 = vsel %vm358_vm8, %v3516_v7, 0.0  ;;  %426 = vadd.xlane.f32.xlu2 %v425_v9 }
 0x2bb   :  { %3519 = vpow2.f32 %v401_v6  ;;  %420 = vadd.xlane.f32.xlu0 %v419_v11 }
 0x2bc   :  { %3521 = vpow2.f32 %v393_v8 }
 0x2bd   :  { %v367_v12 = vpop.xlane.xlu1 %366  ;;  %v361_v13 = vpop.xlane.xlu2 %360 }
 0x2be   :  { %v385_v14 = vsub.f32 %v310_v48, %v367_v12  ;;  %v383_v15 = vsub.f32 %v288_v47, %v361_v13 }
 0x2c0   :  { %v3518_v16 = vpop.eup %3517  ;;  %v395_v17 = vmul.f32 1.442695, %v385_v14  ;;  %v391_v18 = vmul.f32 1.442695, %v383_v15 }
 0x2c1   :  { %v3520_v19 = vpop.eup %3519  ;;  %v428_v20 = vsel %vm358_vm8, %v3518_v16, 0.0 }
 0x2c2   :  { %v3522_v21 = vpop.eup %3521  ;;  %3523 = vpow2.f32 %v395_v17  ;;  %v422_v22 = vsel %vm358_vm8, %v3520_v19, 0.0  ;;  %v3422_v17 = vld [vmem:[#allocation2 + $0x78] sm:$0xff] }
 0x2c3   :  { %3525 = vpow2.f32 %v391_v18  ;;  %423 = vadd.xlane.f32.xlu1 %v422_v22  ;;  %429 = vadd.xlane.f32.xlu0 %v428_v20  ;;  %v410_v23 = vsel %vm358_vm8, %v3522_v21, 0.0  ;;  %v3416_v18 = vld [vmem:[#allocation2 + $0x48] sm:$0xff]  ;;  %v3421_v20 = vld [vmem:[#allocation2 + $0x70] sm:$0xff]  ;;  %v3415_v22 = vld [vmem:[#allocation2 + $0x40] sm:$0xff] }
 0x2c4   :  { %411 = vadd.xlane.f32.xlu2 %v410_v23  ;;  %680 = vmatpush.bf16.msrb.mxu3 %v3422_v17  ;;  %v3417_v23 = vld [vmem:[#allocation2 + $0x50] sm:$0xff] }
 0x2c5   :  { %v370_v24 = vpop.xlane.xlu2 %369  ;;  %578 = vmatpush.bf16.msrb.mxu0 %v3416_v18 }
 0x2c6   :  { %v386_v25 = vsub.f32 %v312_v52, %v370_v24 }
 0x2c8   :  { %v3524_v26 = vpop.eup %3523  ;;  %v397_v27 = vmul.f32 1.442695, %v386_v25  ;;  %681 = vmatpush.bf16.msrb.mxu3 %v3421_v20 }
 0x2c9   :  { %v3526_v28 = vpop.eup %3525  ;;  %v413_v29 = vsel %vm358_vm8, %v3524_v26, 0.0  ;;  %579 = vmatpush.bf16.msrb.mxu0 %v3415_v22 }
 0x2ca   :  { %3527 = vpow2.f32 %v397_v27  ;;  %v407_v30 = vsel %vm358_vm8, %v3526_v28, 0.0 }
 0x2cb   :  { %414 = vadd.xlane.f32.xlu0 %v413_v29  ;;  %408 = vadd.xlane.f32.xlu1 %v407_v30 }
 0x2d0   :  { %v3528_v31 = vpop.eup %3527 }
 0x2d1   :  { %v416_v32 = vsel %vm358_vm8, %v3528_v31, 0.0 }
 0x2d3   :  { %417 = vadd.xlane.f32.xlu1 %v416_v32 }
 0x32d   :  { %v427_v33 = vpop.xlane.xlu2 %426 }
 0x32e   :  { %v421_v34 = vpop.xlane.xlu0 %420 }
 0x32f   :  { %3529 = vrcp.f32 %v421_v34 }
 0x330   :  { %3531 = vrcp.f32 %v427_v33 }
 0x335   :  { %v3530_v37 = vpop.eup %3529 }
 0x336   :  { %v424_v35 = vpop.xlane.xlu1 %423  ;;  %v430_v36 = vpop.xlane.xlu0 %429  ;;  %v443_v40 = vmul.f32 %v3530_v37, %v3516_v7 }
 0x337   :  { %3533 = vrcp.f32 %v424_v35  ;;  %v412_v38 = vpop.xlane.xlu2 %411  ;;  %v3532_v39 = vpop.eup %3531 }
 0x338   :  { %3535 = vrcp.f32 %v430_v36  ;;  %v445_v41 = vmul.f32 %v3532_v39, %v3514_v4  ;;  %v451_v44 = vpack.c.bf16 %v443_v40, %v443_v40 }
 0x339   :  { %3537 = vrcp.f32 %v412_v38 }
 0x33a   :  { %v453_v48 = vpack.c.bf16 %v445_v41, %v445_v41  ;;  %v502_v54 = vunpack.c.l.b16 %v451_v44 }
 0x33c   :  { %v524_v56 = vunpack.c.l.b16 %v453_v48 }
 0x33d   :  { %v3534_v42 = vpop.eup %3533 }
 0x33e   :  { %v3536_v43 = vpop.eup %3535  ;;  %v444_v45 = vmul.f32 %v3534_v42, %v3520_v19  ;;  %v415_v46 = vpop.xlane.xlu0 %414  ;;  %v3419_v19 = vld [vmem:[#allocation2 + $0x60] sm:$0xff] }
 0x33f   :  { %v409_v47 = vpop.xlane.xlu1 %408  ;;  %v446_v49 = vmul.f32 %v3536_v43, %v3518_v16  ;;  %v3538_v50 = vpop.eup %3537  ;;  %v3420_v16 = vld [vmem:[#allocation2 + $0x68] sm:$0xff] }
 0x340   :  { %v452_v51 = vpack.c.bf16 %v444_v45, %v444_v45  ;;  %3539 = vrcp.f32 %v409_v47  ;;  %v440_v59 = vmul.f32 %v3538_v50, %v3522_v21  ;;  %646 = vmatpush.bf16.msrb.mxu2 %v3420_v16  ;;  %v3418_v21 = vld [vmem:[#allocation2 + $0x58] sm:$0xff] }
 0x341   :  { %v454_v52 = vpack.c.bf16 %v446_v49, %v446_v49  ;;  %3541 = vrcp.f32 %v415_v46  ;;  %612 = vmatpush.bf16.msrb.mxu1 %v3418_v21 }
 0x342   :  { %v503_v55 = vunpack.c.l.b16 %v452_v51  ;;  %v448_v1 = vpack.c.bf16 %v440_v59, %v440_v59 }
 0x343   :  { %v525_v58 = vunpack.c.l.b16 %v454_v52 }
 0x344   :  { %v504_v60 = vpack.c.b16 %v503_v55, %v502_v54  ;;  %v458_v5 = vunpack.c.l.b16 %v448_v1  ;;  %647 = vmatpush.bf16.msrb.mxu2 %v3419_v19 }
 0x345   :  { %v526_v61 = vpack.c.b16 %v525_v58, %v524_v56  ;;  %613 = vmatpush.bf16.msrb.mxu1 %v3417_v23 }
 0x346   :  { %v3540_v62 = vpop.eup %3539  ;;  %3068 = vmatmul.msk.bf16.vlgmr.msra.gmra.mxu2 %vm358_vm8, %v504_v60 }
 0x347   :  { %v418_v63 = vpop.xlane.xlu1 %417  ;;  %v3542_v0 = vpop.eup %3541  ;;  %v439_v2 = vmul.f32 %v3540_v62, %v3526_v28  ;;  %3069 = vmatmul.msk.bf16.vlgmr.msra.gmra.mxu3 %vm358_vm8, %v526_v61 }
 0x348   :  { %3543 = vrcp.f32 %v418_v63  ;;  %v441_v4 = vmul.f32 %v3542_v0, %v3524_v26 }
 0x349   :  { %v447_v3 = vpack.c.bf16 %v439_v2, %v439_v2 }
 0x34a   :  { %v449_v9 = vpack.c.bf16 %v441_v4, %v441_v4 }
 0x34b   :  { %v457_v6 = vunpack.c.l.b16 %v447_v3 }
 0x34c   :  { %v480_v13 = vunpack.c.l.b16 %v449_v9 }
 0x34d   :  { %v459_v8 = vpack.c.b16 %v458_v5, %v457_v6 }
 0x34e   :  { %v3544_v7 = vpop.eup %3543 }
 0x34f   :  { %v442_v11 = vmul.f32 %v3544_v7, %v3528_v31  ;;  %3066 = vmatmul.msk.bf16.vlgmr.msra.gmra.mxu0 %vm358_vm8, %v459_v8 }
 0x351   :  { %v450_v12 = vpack.c.bf16 %v442_v11, %v442_v11 }
 0x353   :  { %v481_v14 = vunpack.c.l.b16 %v450_v12 }
 0x355   :  { %v482_v15 = vpack.c.b16 %v481_v14, %v480_v13 }
 0x357   :  { %3067 = vmatmul.msk.bf16.vlgmr.msra.gmra.mxu1 %vm358_vm8, %v482_v15 }
 0x3c9   :  { %v517_v24 = vpop.f32.mrf.mxu2 }
 0x3ca   :  { %v539_v25 = vpop.f32.mrf.mxu3  ;;  %v548_v27 = vpack.c.bf16 %v517_v24, %v517_v24 }
 0x3cb   :  { %v550_v28 = vpack.c.bf16 %v539_v25, %v539_v25 }
 0x3cc   :  { %v473_v26 = vpop.f32.mrf.mxu0  ;;  %v622_v35 = vunpack.c.l.b16 %v548_v27 }
 0x3cd   :  { %v544_v32 = vpack.c.bf16 %v473_v26, %v473_v26  ;;  %v656_v38 = vunpack.c.l.b16 %v550_v28  ;;  %v3428_v28 = vld [vmem:[#allocation2 + $0xa8] sm:$0xff] }
 0x3ce   :  { %870 = vmatpush.bf16.msra.mxu2 %v3428_v28 }
 0x3cf   :  { %v554_v42 = vunpack.c.l.b16 %v544_v32  ;;  %v3427_v32 = vld [vmem:[#allocation2 + $0xa0] sm:$0xff] }
 0x3d1   :  { %v519_v29 = vpop.f32.mrf.mxu2 }
 0x3d2   :  { %v549_v30 = vpack.c.bf16 %v519_v29, %v519_v29  ;;  %v541_v31 = vpop.f32.mrf.mxu3  ;;  %v3430_v29 = vld [vmem:[#allocation2 + $0xb8] sm:$0xff]  ;;  %871 = vmatpush.bf16.msra.mxu2 %v3427_v32 }
 0x3d3   :  { %v551_v33 = vpack.c.bf16 %v541_v31, %v541_v31  ;;  %v3426_v31 = vld [vmem:[#allocation2 + $0x98] sm:$0xff]  ;;  %896 = vmatpush.bf16.msra.mxu3 %v3430_v29 }
 0x3d4   :  { %v495_v34 = vpop.f32.mrf.mxu1  ;;  %v623_v36 = vunpack.c.l.b16 %v549_v30  ;;  %v475_v37 = vpop.f32.mrf.mxu0  ;;  %v3424_v30 = vld [vmem:[#allocation2 + $0x88] sm:$0xff]  ;;  %844 = vmatpush.bf16.msra.mxu1 %v3426_v31 }
 0x3d5   :  { %v657_v39 = vunpack.c.l.b16 %v551_v33  ;;  %v545_v40 = vpack.c.bf16 %v475_v37, %v475_v37  ;;  %v546_v46 = vpack.c.bf16 %v495_v34, %v495_v34  ;;  %v3429_v33 = vld [vmem:[#allocation2 + $0xb0] sm:$0xff]  ;;  %818 = vmatpush.bf16.msra.mxu0 %v3424_v30  ;;  %v3423_v34 = vld [vmem:[#allocation2 + $0x80] sm:$0xff] }
 0x3d6   :  { %v624_v41 = vpack.c.b16 %v623_v36, %v622_v35  ;;  %v3425_v35 = vld [vmem:[#allocation2 + $0x90] sm:$0xff] }
 0x3d7   :  { %v658_v43 = vpack.c.b16 %v657_v39, %v656_v38  ;;  %v555_v44 = vunpack.c.l.b16 %v545_v40  ;;  %v588_v49 = vunpack.c.l.b16 %v546_v46  ;;  %897 = vmatpush.bf16.msra.mxu3 %v3429_v33 }
 0x3d8   :  { %3096 = vmatmul.msk.bf16.vlgmr.msrb.gmra.mxu2 %vm47_vm0, %v624_v41  ;;  %845 = vmatpush.bf16.msra.mxu1 %v3425_v35 }
 0x3d9   :  { %v556_v45 = vpack.c.b16 %v555_v44, %v554_v42  ;;  %3105 = vmatmul.msk.bf16.vlgmr.msrb.gmra.mxu3 %vm47_vm0, %v658_v43  ;;  %819 = vmatpush.bf16.msra.mxu0 %v3423_v34 }
 0x3db   :  { %3078 = vmatmul.msk.bf16.vlgmr.msrb.gmra.mxu0 %vm47_vm0, %v556_v45 }
 0x3dc   :  { %v497_v47 = vpop.f32.mrf.mxu1 }
 0x3dd   :  { %v547_v48 = vpack.c.bf16 %v497_v47, %v497_v47 }
 0x3df   :  { %v589_v50 = vunpack.c.l.b16 %v547_v48 }
 0x3e1   :  { %v590_v51 = vpack.c.b16 %v589_v50, %v588_v49  ;;  %v3491_v49 = vld [vmem:[%s4213_s6 + $0x2] ss:$0 sm:$0xff] }
 0x3e3   :  { %3087 = vmatmul.msk.bf16.vlgmr.msrb.gmra.mxu1 %vm47_vm0, %v590_v51 }
 0x458   :  { %v581_v52 = vpop.f32.mrf.mxu0 }
 0x459   :  { %v688_v58 = vsel %vm47_vm0, %v581_v52, 0.0 }
 0x45b   :  { %v649_v54 = vpop.f32.mrf.mxu2 }
 0x45c   :  { %v683_v55 = vpop.f32.mrf.mxu3  ;;  %v691_v61 = vsel %vm47_vm0, %v649_v54, 0.0  ;;  %v3492_v54 = vld [vmem:[%s4213_s6 + $0x3] ss:$0 sm:$0xff] }
 0x45d   :  { %v693_v63 = vsel %vm47_vm0, %v683_v55, 0.0 }
 0x460   :  { %v615_v56 = vpop.f32.mrf.mxu1  ;;  %v583_v0 = vpop.f32.mrf.mxu0 }
 0x461   :  { %v689_v59 = vsel %vm47_vm0, %v615_v56, 0.0  ;;  %v695_v5 = vsel %vm47_vm0, %v583_v0, 0.0 }
 0x462   :  { %v690_v60 = vadd.f32 %v689_v59, %v688_v58 }
 0x463   :  { %v651_v2 = vpop.f32.mrf.mxu2 }
 0x464   :  { %v692_v62 = vadd.f32 %v691_v61, %v690_v60  ;;  %v685_v7 = vpop.f32.mrf.mxu3  ;;  %v698_v11 = vsel %vm47_vm0, %v651_v2, 0.0 }
 0x465   :  { %v700_v13 = vsel %vm47_vm0, %v685_v7, 0.0 }
 0x466   :  { %v694_v1 = vadd.f32 %v693_v63, %v692_v62 }
 0x468   :  { %v617_v3 = vpop.f32.mrf.mxu1  ;;  %v702_v4 = vadd.f32 %v694_v1, %v3764_v53 }
 0x469   :  { %v696_v6 = vsel %vm47_vm0, %v617_v3, 0.0 }
 0x46a   :  { %v697_v8 = vadd.f32 %v696_v6, %v695_v5  ;;  %v706_v9 = vsel %vm47_vm0, %v702_v4, 0.0 }
 0x46b   :  { %707 = vadd.xlane.f32.xlu2 %v706_v9  ;;  %v105_v9 = vld [vmem:[%s4208_s1] sm:$0xff] }
 0x46c   :  { %v699_v12 = vadd.f32 %v698_v11, %v697_v8  ;;  %v106_v11 = vld [vmem:[%s4208_s1 + $0x8] sm:$0xff] }
 0x46e   :  { %v701_v14 = vadd.f32 %v700_v13, %v699_v12  ;;  %v108_v12 = vpack.c.bf16 %v105_v9, %v105_v9  ;;  %v109_v13 = vpack.c.bf16 %v106_v11, %v106_v11 }
 0x470   :  { %v703_v15 = vadd.f32 %v701_v14, %v3768_v57  ;;  %v920_v14 = vunpack.c.l.b16 %v108_v12 }
 0x472   :  { %v709_v16 = vsel %vm47_vm0, %v703_v15, 0.0 }
 0x473   :  { %710 = vadd.xlane.f32.xlu0 %v709_v16 }
 0x4de   :  { %v708_v53 = vpop.xlane.xlu2 %707 }
 0x4df   :  { %v712_v17 = vmul.f32 %v708_v53, %v3750_v10 }
 0x4e1   :  { %v714_v18 = vsub.f32 %v702_v4, %v712_v17  ;;  %v107_v4 = vld [vmem:[%s4208_s1 + $0x10] sm:$0xf] }
 0x4e2   :  { %v110_v5 = vpack.c.bf16 %v107_v4, %v107_v4 }
 0x4e3   :  { %v716_v19 = vmul.f32 %v714_v18, %v714_v18 }
 0x4e4   :  { %v922_v6 = vunpack.c.l.b16 %v110_v5 }
 0x4e5   :  { %v718_v20 = vsel %vm47_vm0, %v716_v19, 0.0 }
 0x4e6   :  { %719 = vadd.xlane.f32.xlu1 %v718_v20  ;;  %v711_v21 = vpop.xlane.xlu0 %710  ;;  %v3850_v7 = vpack.c.b16 %v922_v6, %v922_v6 }
 0x4e7   :  { %v713_v22 = vmul.f32 %v711_v21, %v3750_v10 }
 0x4e8   :  { %v3854_v8 = vsel %vm47_vm0, %v3850_v7, 0 }
 0x4e9   :  { %v715_v23 = vsub.f32 %v703_v15, %v713_v22  ;;  %940 = vmatpush.bf16.xpose.msrb.mxu0 %v3854_v8  ;;  %962 = vmatpush.bf16.xpose.msrb.mxu1 %v3854_v8  ;;  %v921_v15 = vunpack.c.l.b16 %v109_v13 }
 0x4ea   :  { %984 = vmatpush.bf16.xpose.msrb.mxu2 %v3854_v8  ;;  %1006 = vmatpush.bf16.xpose.msrb.mxu3 %v3854_v8 }
 0x4eb   :  { %v717_v24 = vmul.f32 %v715_v23, %v715_v23  ;;  %v3866_v16 = vpack.c.b16 %v921_v15, %v920_v14 }
 0x4ed   :  { %v721_v25 = vsel %vm47_vm0, %v717_v24, 0.0  ;;  %v3870_v53 = vsel %vm47_vm0, %v3866_v16, 0 }
 0x4ee   :  { %722 = vadd.xlane.f32.xlu2 %v721_v25 }
 0x4f1   :  { %941 = vmatpush.bf16.xpose.msrb.mxu0 %v3870_v53  ;;  %963 = vmatpush.bf16.xpose.msrb.mxu1 %v3870_v53 }
 0x4f2   :  { %985 = vmatpush.bf16.xpose.msrb.mxu2 %v3870_v53  ;;  %1007 = vmatpush.bf16.xpose.msrb.mxu3 %v3870_v53 }
 0x559   :  { %v720_v57 = vpop.xlane.xlu1 %719 }
 0x55a   :  { %v724_v26 = vmul.f32 %v720_v57, %v3750_v10 }
 0x55c   :  { %v726_v27 = vadd.f32 1e-06, %v724_v26 }
 0x55e   :  { %3545 = vrsqrt.f32 %v726_v27  ;;  %vm734_vm10 = vweird.f32 %v726_v27 }
 0x561   :  { %v723_v36 = vpop.xlane.xlu2 %722 }
 0x562   :  { %v725_v37 = vmul.f32 %v723_v36, %v3750_v10 }
 0x564   :  { %v3546_v38 = vpop.eup %3545  ;;  %v727_v39 = vadd.f32 1e-06, %v725_v37 }
 0x565   :  { %v729_v40 = vmul.f32 %v3546_v38, %v726_v27  ;;  %vm735_vm9 = vweird.f32 %v3546_v38 }
 0x566   :  { %3547 = vrsqrt.f32 %v727_v39  ;;  %vm736_vm11 = vmor %vm734_vm10, %vm735_vm9  ;;  %vm744_vm13 = vweird.f32 %v727_v39  ;;  %vm1488_vm9 = vcmask 523264  }
 0x567   :  { %v730_v41 = vmul.f32 %v3546_v38, %v729_v40 }
 0x569   :  { %v731_v42 = vmul.f32 0.5, %v730_v41 }
 0x56b   :  { %v732_v43 = vsub.f32 1.5, %v731_v42 }
 0x56c   :  { %v3548_v44 = vpop.eup %3547 }
 0x56d   :  { %v733_v45 = vmul.f32 %v3546_v38, %v732_v43  ;;  %v739_v46 = vmul.f32 %v3548_v44, %v727_v39  ;;  %vm745_vm12 = vweird.f32 %v3548_v44 }
 0x56e   :  { %vm746_vm14 = vmor %vm744_vm13, %vm745_vm12 }
 0x56f   :  { %v737_v47 = vsel %vm736_vm11, %v3546_v38, %v733_v45  ;;  %v740_v48 = vmul.f32 %v3548_v44, %v739_v46  ;;  %v113_v45 = vld [vmem:[%s4210_s3] sm:$0xff] }
 0x570   :  { %v748_v50 = vmul.f32 %v737_v47, %v714_v18 }
 0x571   :  { %v741_v51 = vmul.f32 0.5, %v740_v48 }
 0x572   :  { %v751_v55 = vmul.f32 %v3491_v49, %v748_v50 }
 0x573   :  { %v742_v52 = vsub.f32 1.5, %v741_v51 }
 0x574   :  { %v3835_v59 = vadd.f32 %v3492_v54, %v751_v55 }
 0x575   :  { %v743_v56 = vmul.f32 %v3548_v44, %v742_v52  ;;  %v114_v52 = vld [vmem:[%s4210_s3 + $0x8] sm:$0xff] }
 0x576   :  { %v756_v63 = vpack.c.bf16 %v3835_v59, %v3835_v59 }
 0x577   :  { %v747_v58 = vsel %vm746_vm14, %v3548_v44, %v743_v56 }
 0x578   :  { %v749_v60 = vmul.f32 %v747_v58, %v715_v23  ;;  %v794_v1 = vunpack.c.l.b16 %v756_v63 }
 0x57a   :  { %v752_v61 = vmul.f32 %v3491_v49, %v749_v60 }
 0x57c   :  { %v3837_v62 = vadd.f32 %v3492_v54, %v752_v61 }
 0x57e   :  { %v757_v0 = vpack.c.bf16 %v3837_v62, %v3837_v62 }
 0x580   :  { %v795_v2 = vunpack.c.l.b16 %v757_v0 }
 0x582   :  { %v796_v3 = vpack.c.b16 %v795_v2, %v794_v1 }
 0x584   :  { %3114 = vmatmul.msk.bf16.vlgmr.msra.gmra.mxu0 %vm47_vm0, %v796_v3  ;;  %3123 = vmatmul.msk.bf16.vlgmr.msra.gmra.mxu1 %vm47_vm0, %v796_v3 }
 0x585   :  { %3132 = vmatmul.msk.bf16.vlgmr.msra.gmra.mxu2 %vm47_vm0, %v796_v3  ;;  %3141 = vmatmul.msk.bf16.vlgmr.msra.gmra.mxu3 %vm47_vm0, %v796_v3 }
 0x601   :  { %v821_v17 = vpop.f32.mrf.mxu0  ;;  %v847_v18 = vpop.f32.mrf.mxu1 }
 0x602   :  { %v904_v19 = vpack.c.bf16 %v821_v17, %v821_v17  ;;  %v906_v20 = vpack.c.bf16 %v847_v18, %v847_v18 }
 0x604   :  { %v914_v26 = vunpack.c.l.b16 %v904_v19  ;;  %v950_v27 = vunpack.c.l.b16 %v906_v20 }
 0x608   :  { %v873_v21 = vpop.f32.mrf.mxu2  ;;  %v899_v22 = vpop.f32.mrf.mxu3 }
 0x609   :  { %v823_v23 = vpop.f32.mrf.mxu0  ;;  %v849_v24 = vpop.f32.mrf.mxu1  ;;  %v908_v32 = vpack.c.bf16 %v873_v21, %v873_v21  ;;  %v910_v33 = vpack.c.bf16 %v899_v22, %v899_v22 }
 0x60a   :  { %v905_v25 = vpack.c.bf16 %v823_v23, %v823_v23  ;;  %v907_v57 = vpack.c.bf16 %v849_v24, %v849_v24 }
 0x60b   :  { %v972_v38 = vunpack.c.l.b16 %v908_v32  ;;  %v994_v39 = vunpack.c.l.b16 %v910_v33 }
 0x60c   :  { %v915_v28 = vunpack.c.l.b16 %v905_v25  ;;  %v951_v29 = vunpack.c.l.b16 %v907_v57 }
 0x60e   :  { %v916_v30 = vpack.c.b16 %v915_v28, %v914_v26  ;;  %v952_v31 = vpack.c.b16 %v951_v29, %v950_v27 }
 0x610   :  { %v875_v34 = vpop.f32.mrf.mxu2  ;;  %v901_v35 = vpop.f32.mrf.mxu3  ;;  %3142 = vmatmul.msk.bf16.vlgmr.msrb.gmra.mxu0 %vm47_vm0, %v916_v30  ;;  %3143 = vmatmul.msk.bf16.vlgmr.msrb.gmra.mxu1 %vm47_vm0, %v952_v31 }
 0x611   :  { %v909_v36 = vpack.c.bf16 %v875_v34, %v875_v34  ;;  %v911_v37 = vpack.c.bf16 %v901_v35, %v901_v35 }
 0x613   :  { %v973_v40 = vunpack.c.l.b16 %v909_v36  ;;  %v995_v41 = vunpack.c.l.b16 %v911_v37 }
 0x615   :  { %v974_v42 = vpack.c.b16 %v973_v40, %v972_v38  ;;  %v996_v43 = vpack.c.b16 %v995_v41, %v994_v39 }
 0x617   :  { %3144 = vmatmul.msk.bf16.vlgmr.msrb.gmra.mxu2 %vm47_vm0, %v974_v42  ;;  %3145 = vmatmul.msk.bf16.vlgmr.msrb.gmra.mxu3 %vm47_vm0, %v996_v43 }
 0x68d   :  { %v943_v44 = vpop.f32.mrf.mxu0  ;;  %v965_v63 = vpop.f32.mrf.mxu1 }
 0x68e   :  { %v944_v3 = vadd.f32 %v943_v44, %v113_v45  ;;  %v966_v4 = vadd.f32 %v965_v63, %v113_v45 }
 0x690   :  { %v1021_v5 = vsel %vm1014_vm15, %v966_v4, -inf  ;;  %v1015_v6 = vsel %vm1014_vm15, %v944_v3, -inf }
 0x695   :  { %v945_v54 = vpop.f32.mrf.mxu0  ;;  %v967_v9 = vpop.f32.mrf.mxu1 }
 0x696   :  { %v946_v55 = vadd.f32 %v945_v54, %v114_v52  ;;  %v968_v11 = vadd.f32 %v967_v9, %v114_v52  ;;  %v3912_v54 = vsel %vm1120_vm1, %v3850_v7, 0 }
 0x697   :  { %1173 = vmatpush.bf16.msra.mxu2 %v3912_v54  ;;  %1195 = vmatpush.bf16.msra.mxu3 %v3912_v54 }
 0x698   :  { %v1018_v2 = vsel %vm1014_vm15, %v946_v55, -inf  ;;  %v1024_v12 = vsel %vm1014_vm15, %v968_v11, -inf  ;;  %1129 = vmatpush.bf16.msra.mxu0 %v3912_v54  ;;  %1151 = vmatpush.bf16.msra.mxu1 %v3912_v54 }
 0x69a   :  { %v987_v46 = vpop.f32.mrf.mxu2  ;;  %v1009_v47 = vpop.f32.mrf.mxu3 }
 0x69b   :  { %v988_v48 = vadd.f32 %v987_v46, %v113_v45  ;;  %v1010_v49 = vadd.f32 %v1009_v47, %v113_v45  ;;  %1174 = vmatpush.bf16.msra.mxu2 %v3866_v16  ;;  %1196 = vmatpush.bf16.msra.mxu3 %v3866_v16 }
 0x69c   :  { %1130 = vmatpush.bf16.msra.mxu0 %v3866_v16  ;;  %1152 = vmatpush.bf16.msra.mxu1 %v3866_v16 }
 0x69d   :  { %v1033_v50 = vsel %vm1014_vm15, %v1010_v49, -inf  ;;  %v1027_v51 = vsel %vm1014_vm15, %v988_v48, -inf }
 0x69e   :  { %1034 = vmax.xlane.f32.xlu2 %v1033_v50  ;;  %1028 = vmax.xlane.f32.xlu0 %v1027_v51 }
 0x6a2   :  { %v989_v56 = vpop.f32.mrf.mxu2  ;;  %v1011_v58 = vpop.f32.mrf.mxu3 }
 0x6a3   :  { %v990_v60 = vadd.f32 %v989_v56, %v114_v52  ;;  %v1012_v61 = vadd.f32 %v1011_v58, %v114_v52 }
 0x6a5   :  { %v1030_v0 = vsel %vm1014_vm15, %v990_v60, -inf  ;;  %v1036_v1 = vsel %vm1014_vm15, %v1012_v61, -inf }
 0x6a6   :  { %1031 = vmax.xlane.f32.xlu1 %v1030_v0  ;;  %1037 = vmax.xlane.f32.xlu0 %v1036_v1 }
 0x6a7   :  { %1019 = vmax.xlane.f32.xlu2 %v1018_v2 }
 0x6ae   :  { %1022 = vmax.xlane.f32.xlu0 %v1021_v5  ;;  %1016 = vmax.xlane.f32.xlu1 %v1015_v6 }
 0x6b6   :  { %1025 = vmax.xlane.f32.xlu1 %v1024_v12 }
 0x711   :  { %v1035_v13 = vpop.xlane.xlu2 %1034  ;;  %v1029_v14 = vpop.xlane.xlu0 %1028 }
 0x712   :  { %v1045_v15 = vsub.f32 %v1010_v49, %v1035_v13  ;;  %v1043_v17 = vsub.f32 %v988_v48, %v1029_v14 }
 0x714   :  { %v1059_v18 = vmul.f32 1.442695, %v1045_v15  ;;  %v1055_v19 = vmul.f32 1.442695, %v1043_v17 }
 0x716   :  { %3549 = vpow2.f32 %v1059_v18 }
 0x717   :  { %3551 = vpow2.f32 %v1055_v19 }
 0x719   :  { %v1032_v20 = vpop.xlane.xlu1 %1031  ;;  %v1038_v21 = vpop.xlane.xlu0 %1037 }
 0x71a   :  { %v1044_v22 = vsub.f32 %v990_v60, %v1032_v20  ;;  %v1046_v23 = vsub.f32 %v1012_v61, %v1038_v21  ;;  %v1020_v24 = vpop.xlane.xlu2 %1019 }
 0x71b   :  { %v1040_v25 = vsub.f32 %v946_v55, %v1020_v24 }
 0x71c   :  { %v3894_v57 = vpop.eup %3549  ;;  %v1057_v26 = vmul.f32 1.442695, %v1044_v22  ;;  %v1061_v27 = vmul.f32 1.442695, %v1046_v23 }
 0x71d   :  { %v3552_v28 = vpop.eup %3551  ;;  %v1049_v29 = vmul.f32 1.442695, %v1040_v25  ;;  %v1081_v30 = vsel %vm1014_vm15, %v3894_v57, 0.0 }
 0x71e   :  { %3553 = vpow2.f32 %v1057_v26  ;;  %v1075_v31 = vsel %vm1014_vm15, %v3552_v28, 0.0  ;;  %1082 = vadd.xlane.f32.xlu1 %v1081_v30 }
 0x71f   :  { %3555 = vpow2.f32 %v1061_v27  ;;  %1076 = vadd.xlane.f32.xlu2 %v1075_v31 }
 0x720   :  { %3557 = vpow2.f32 %v1049_v29 }
 0x721   :  { %v1023_v32 = vpop.xlane.xlu0 %1022  ;;  %v1017_v33 = vpop.xlane.xlu1 %1016 }
 0x722   :  { %v1041_v34 = vsub.f32 %v966_v4, %v1023_v32  ;;  %v1039_v35 = vsub.f32 %v944_v3, %v1017_v33 }
 0x724   :  { %v3554_v36 = vpop.eup %3553  ;;  %v1051_v37 = vmul.f32 1.442695, %v1041_v34  ;;  %v1047_v38 = vmul.f32 1.442695, %v1039_v35 }
 0x725   :  { %v3556_v39 = vpop.eup %3555  ;;  %v1078_v40 = vsel %vm1014_vm15, %v3554_v36, 0.0 }
 0x726   :  { %v3900_v41 = vpop.eup %3557  ;;  %3559 = vpow2.f32 %v1051_v37  ;;  %1079 = vadd.xlane.f32.xlu0 %v1078_v40  ;;  %v1084_v42 = vsel %vm1014_vm15, %v3556_v39, 0.0  ;;  %v3436_v40 = vld [vmem:[#allocation2 + $0xe8] sm:$0xff] }
 0x727   :  { %3561 = vpow2.f32 %v1047_v38  ;;  %1085 = vadd.xlane.f32.xlu2 %v1084_v42  ;;  %v1066_v43 = vsel %vm1014_vm15, %v3900_v41, 0.0  ;;  %1305 = vmatpush.bf16.msrb.mxu2 %v3436_v40  ;;  %v3432_v42 = vld [vmem:[#allocation2 + $0xc8] sm:$0xff] }
 0x728   :  { %1067 = vadd.xlane.f32.xlu1 %v1066_v43  ;;  %1237 = vmatpush.bf16.msrb.mxu0 %v3432_v42  ;;  %v3435_v43 = vld [vmem:[#allocation2 + $0xe0] sm:$0xff] }
 0x729   :  { %v1026_v44 = vpop.xlane.xlu1 %1025 }
 0x72a   :  { %v1042_v45 = vsub.f32 %v968_v11, %v1026_v44  ;;  %v3437_v44 = vld [vmem:[#allocation2 + $0xf0] sm:$0xff] }
 0x72b   :  { %1306 = vmatpush.bf16.msrb.mxu2 %v3435_v43 }
 0x72c   :  { %v3905_v46 = vpop.eup %3559  ;;  %v1053_v47 = vmul.f32 1.442695, %v1042_v45  ;;  %v3434_v45 = vld [vmem:[#allocation2 + $0xd8] sm:$0xff] }
 0x72d   :  { %v3562_v48 = vpop.eup %3561  ;;  %v1069_v49 = vsel %vm1014_vm15, %v3905_v46, 0.0  ;;  %1271 = vmatpush.bf16.msrb.mxu1 %v3434_v45 }
 0x72e   :  { %3563 = vpow2.f32 %v1053_v47  ;;  %v1063_v50 = vsel %vm1014_vm15, %v3562_v48, 0.0  ;;  %v3433_v47 = vld [vmem:[#allocation2 + $0xd0] sm:$0xff] }
 0x72f   :  { %1070 = vadd.xlane.f32.xlu2 %v1069_v49  ;;  %1064 = vadd.xlane.f32.xlu0 %v1063_v50 }
 0x731   :  { %1272 = vmatpush.bf16.msrb.mxu1 %v3433_v47 }
 0x734   :  { %v3564_v51 = vpop.eup %3563 }
 0x735   :  { %v1072_v52 = vsel %vm1014_vm15, %v3564_v51, 0.0 }
 0x737   :  { %1073 = vadd.xlane.f32.xlu0 %v1072_v52 }
 0x791   :  { %v1083_v55 = vpop.xlane.xlu1 %1082 }
 0x792   :  { %v1077_v56 = vpop.xlane.xlu2 %1076 }
 0x793   :  { %3565 = vrcp.f32 %v1077_v56 }
 0x794   :  { %3567 = vrcp.f32 %v1083_v55 }
 0x799   :  { %v1080_v7 = vpop.xlane.xlu0 %1079  ;;  %v3566_v58 = vpop.eup %3565 }
 0x79a   :  { %3569 = vrcp.f32 %v1080_v7  ;;  %v1086_v60 = vpop.xlane.xlu2 %1085  ;;  %v3568_v61 = vpop.eup %3567  ;;  %v1099_v0 = vmul.f32 %v3566_v58, %v3552_v28 }
 0x79b   :  { %3571 = vrcp.f32 %v1086_v60  ;;  %v1068_v63 = vpop.xlane.xlu1 %1067  ;;  %v1101_v1 = vmul.f32 %v3568_v61, %v3894_v57 }
 0x79c   :  { %3573 = vrcp.f32 %v1068_v63  ;;  %v1107_v4 = vpack.c.bf16 %v1099_v0, %v1099_v0 }
 0x79d   :  { %v1109_v6 = vpack.c.bf16 %v1101_v1, %v1101_v1 }
 0x79e   :  { %v1161_v17 = vunpack.c.l.b16 %v1107_v4 }
 0x79f   :  { %v1183_v19 = vunpack.c.l.b16 %v1109_v6 }
 0x7a0   :  { %v3570_v2 = vpop.eup %3569 }
 0x7a1   :  { %v3572_v3 = vpop.eup %3571  ;;  %v1100_v5 = vmul.f32 %v3570_v2, %v3554_v36 }
 0x7a2   :  { %v1102_v9 = vmul.f32 %v3572_v3, %v3556_v39  ;;  %v1071_v11 = vpop.xlane.xlu2 %1070  ;;  %v1065_v12 = vpop.xlane.xlu0 %1064 }
 0x7a3   :  { %v1108_v13 = vpack.c.bf16 %v1100_v5, %v1100_v5  ;;  %v3574_v14 = vpop.eup %3573  ;;  %3575 = vrcp.f32 %v1065_v12 }
 0x7a4   :  { %v1110_v15 = vpack.c.bf16 %v1102_v9, %v1102_v9  ;;  %3577 = vrcp.f32 %v1071_v11  ;;  %v1096_v22 = vmul.f32 %v3574_v14, %v3900_v41  ;;  %v3438_v41 = vld [vmem:[#allocation2 + $0xf8] sm:$0xff] }
 0x7a5   :  { %v1162_v18 = vunpack.c.l.b16 %v1108_v13  ;;  %1339 = vmatpush.bf16.msrb.mxu3 %v3438_v41 }
 0x7a6   :  { %v1184_v20 = vunpack.c.l.b16 %v1110_v15  ;;  %v1104_v26 = vpack.c.bf16 %v1096_v22, %v1096_v22 }
 0x7a7   :  { %v1163_v21 = vpack.c.b16 %v1162_v18, %v1161_v17 }
 0x7a8   :  { %v1185_v23 = vpack.c.b16 %v1184_v20, %v1183_v19  ;;  %v1114_v30 = vunpack.c.l.b16 %v1104_v26 }
 0x7a9   :  { %3148 = vmatmul.msk.bf16.vlgmr.msra.gmra.mxu2 %vm1014_vm15, %v1163_v21  ;;  %v3576_v24 = vpop.eup %3575  ;;  %1340 = vmatpush.bf16.msrb.mxu3 %v3437_v44 }
 0x7aa   :  { %v1074_v25 = vpop.xlane.xlu0 %1073  ;;  %3149 = vmatmul.msk.bf16.vlgmr.msra.gmra.mxu3 %vm1014_vm15, %v1185_v23  ;;  %v3578_v57 = vpop.eup %3577  ;;  %v1095_v27 = vmul.f32 %v3576_v24, %v3562_v48 }
 0x7ab   :  { %3579 = vrcp.f32 %v1074_v25  ;;  %v1097_v29 = vmul.f32 %v3578_v57, %v3905_v46  ;;  %v3431_v46 = vld [vmem:[#allocation2 + $0xc0] sm:$0xff] }
 0x7ac   :  { %v1103_v28 = vpack.c.bf16 %v1095_v27, %v1095_v27  ;;  %1238 = vmatpush.bf16.msrb.mxu0 %v3431_v46 }
 0x7ad   :  { %v1105_v34 = vpack.c.bf16 %v1097_v29, %v1097_v29 }
 0x7ae   :  { %v1113_v31 = vunpack.c.l.b16 %v1103_v28 }
 0x7af   :  { %v1139_v37 = vunpack.c.l.b16 %v1105_v34 }
 0x7b0   :  { %v1115_v33 = vpack.c.b16 %v1114_v30, %v1113_v31 }
 0x7b1   :  { %v3580_v32 = vpop.eup %3579 }
 0x7b2   :  { %v1098_v35 = vmul.f32 %v3580_v32, %v3564_v51  ;;  %3146 = vmatmul.msk.bf16.vlgmr.msra.gmra.mxu0 %vm1014_vm15, %v1115_v33 }
 0x7b4   :  { %v1106_v36 = vpack.c.bf16 %v1098_v35, %v1098_v35 }
 0x7b6   :  { %v1140_v38 = vunpack.c.l.b16 %v1106_v36 }
 0x7b8   :  { %v1141_v39 = vpack.c.b16 %v1140_v38, %v1139_v37 }
 0x7ba   :  { %3147 = vmatmul.msk.bf16.vlgmr.msra.gmra.mxu1 %vm1014_vm15, %v1141_v39 }
 0x82c   :  { %v1176_v48 = vpop.f32.mrf.mxu2 }
 0x82d   :  { %v1198_v49 = vpop.f32.mrf.mxu3  ;;  %v1207_v51 = vpack.c.bf16 %v1176_v48, %v1176_v48 }
 0x82e   :  { %v1209_v52 = vpack.c.bf16 %v1198_v49, %v1198_v49 }
 0x82f   :  { %v1132_v50 = vpop.f32.mrf.mxu0  ;;  %v1281_v60 = vunpack.c.l.b16 %v1207_v51 }
 0x830   :  { %v1203_v61 = vpack.c.bf16 %v1132_v50, %v1132_v50  ;;  %v1315_v1 = vunpack.c.l.b16 %v1209_v52 }
 0x832   :  { %v1213_v9 = vunpack.c.l.b16 %v1203_v61  ;;  %v3444_v61 = vld [vmem:[%s4212_s5 + $0x28] sm:$0xff] }
 0x833   :  { %1496 = vmatpush.bf16.msra.mxu1 %v3444_v61 }
 0x834   :  { %v1178_v55 = vpop.f32.mrf.mxu2 }
 0x835   :  { %v1208_v56 = vpack.c.bf16 %v1178_v55, %v1178_v55  ;;  %v1200_v7 = vpop.f32.mrf.mxu3 }
 0x836   :  { %v1210_v58 = vpack.c.bf16 %v1200_v7, %v1200_v7 }
 0x837   :  { %v1282_v63 = vunpack.c.l.b16 %v1208_v56  ;;  %v1154_v0 = vpop.f32.mrf.mxu1  ;;  %v1134_v3 = vpop.f32.mrf.mxu0 }
 0x838   :  { %v1316_v2 = vunpack.c.l.b16 %v1210_v58  ;;  %v1204_v5 = vpack.c.bf16 %v1134_v3, %v1134_v3  ;;  %v1205_v13 = vpack.c.bf16 %v1154_v0, %v1154_v0 }
 0x839   :  { %v1283_v4 = vpack.c.b16 %v1282_v63, %v1281_v60  ;;  %v3439_v60 = vld [vmem:[%s4212_s5] sm:$0xff] }
 0x83a   :  { %v1317_v6 = vpack.c.b16 %v1316_v2, %v1315_v1  ;;  %v1214_v11 = vunpack.c.l.b16 %v1204_v5  ;;  %v1247_v17 = vunpack.c.l.b16 %v1205_v13 }
 0x83b   :  { %3176 = vmatmul.msk.bf16.vlgmr.msrb.gmra.mxu2 %vm47_vm0, %v1283_v4 }
 0x83c   :  { %3185 = vmatmul.msk.bf16.vlgmr.msrb.gmra.mxu3 %vm47_vm0, %v1317_v6  ;;  %v1215_v12 = vpack.c.b16 %v1214_v11, %v1213_v9 }
 0x83e   :  { %3158 = vmatmul.msk.bf16.vlgmr.msrb.gmra.mxu0 %vm47_vm0, %v1215_v12 }
 0x83f   :  { %v1156_v14 = vpop.f32.mrf.mxu1 }
 0x840   :  { %v1206_v15 = vpack.c.bf16 %v1156_v14, %v1156_v14 }
 0x842   :  { %v1248_v18 = vunpack.c.l.b16 %v1206_v15 }
 0x844   :  { %v1249_v19 = vpack.c.b16 %v1248_v18, %v1247_v17  ;;  %v3493_v18 = vld [vmem:[%s4213_s6 + $0x4] ss:$0 sm:$0xff] }
 0x846   :  { %3167 = vmatmul.msk.bf16.vlgmr.msrb.gmra.mxu1 %vm47_vm0, %v1249_v19 }
 0x8bb   :  { %v1240_v20 = vpop.f32.mrf.mxu0 }
 0x8bc   :  { %v1347_v24 = vsel %vm47_vm0, %v1240_v20, 0.0 }
 0x8be   :  { %v1308_v21 = vpop.f32.mrf.mxu2 }
 0x8bf   :  { %v1342_v22 = vpop.f32.mrf.mxu3  ;;  %v1350_v26 = vsel %vm47_vm0, %v1308_v21, 0.0 }
 0x8c0   :  { %v1352_v28 = vsel %vm47_vm0, %v1342_v22, 0.0  ;;  %v3494_v22 = vld [vmem:[%s4213_s6 + $0x5] ss:$0 sm:$0xff] }
 0x8c3   :  { %v1274_v23 = vpop.f32.mrf.mxu1  ;;  %v1242_v29 = vpop.f32.mrf.mxu0 }
 0x8c4   :  { %v1348_v25 = vsel %vm47_vm0, %v1274_v23, 0.0  ;;  %v1354_v34 = vsel %vm47_vm0, %v1242_v29, 0.0  ;;  %v3442_v29 = vld [vmem:[%s4212_s5 + $0x18] sm:$0xff] }
 0x8c5   :  { %v1349_v57 = vadd.f32 %v1348_v25, %v1347_v24 }
 0x8c6   :  { %v1310_v31 = vpop.f32.mrf.mxu2 }
 0x8c7   :  { %v1351_v27 = vadd.f32 %v1350_v26, %v1349_v57  ;;  %v1344_v36 = vpop.f32.mrf.mxu3  ;;  %v1357_v39 = vsel %vm47_vm0, %v1310_v31, 0.0 }
 0x8c8   :  { %v1359_v41 = vsel %vm47_vm0, %v1344_v36, 0.0 }
 0x8c9   :  { %v1353_v30 = vadd.f32 %v1352_v28, %v1351_v27  ;;  %v3443_v28 = vld [vmem:[%s4212_s5 + $0x20] sm:$0xff] }
 0x8ca   :  { %1497 = vmatpush.bf16.msra.mxu1 %v3443_v28 }
 0x8cb   :  { %v1276_v32 = vpop.f32.mrf.mxu1  ;;  %v1361_v33 = vadd.f32 %v1353_v30, %v3835_v59  ;;  %v3441_v30 = vld [vmem:[%s4212_s5 + $0x10] sm:$0xff] }
 0x8cc   :  { %v1355_v35 = vsel %vm47_vm0, %v1276_v32, 0.0  ;;  %v3495_v32 = vld [vmem:[%s4213_s6 + $0x9] ss:$0 sm:$0xff] }
 0x8cd   :  { %v1356_v37 = vadd.f32 %v1355_v35, %v1354_v34  ;;  %v1365_v38 = vsel %vm47_vm0, %v1361_v33, 0.0 }
 0x8ce   :  { %1366 = vadd.xlane.f32.xlu1 %v1365_v38  ;;  %1498 = vmatpush.bf16.msra.mxu1 %v3442_v29 }
 0x8cf   :  { %v1358_v40 = vadd.f32 %v1357_v39, %v1356_v37  ;;  %v3496_v39 = vld [vmem:[%s4213_s6 + $0x6] ss:$0 sm:$0xff] }
 0x8d1   :  { %v1360_v42 = vadd.f32 %v1359_v41, %v1358_v40 }
 0x8d2   :  { %1499 = vmatpush.bf16.msra.mxu1 %v3441_v30 }
 0x8d3   :  { %v1362_v43 = vadd.f32 %v1360_v42, %v3837_v62  ;;  %v3440_v62 = vld [vmem:[%s4212_s5 + $0x8] sm:$0xff] }
 0x8d4   :  { %1451 = vmatpush.bf16.msra.mxu0 %v3440_v62 }
 0x8d5   :  { %v1368_v44 = vsel %vm47_vm0, %v1362_v43, 0.0 }
 0x8d6   :  { %1369 = vadd.xlane.f32.xlu2 %v1368_v44 }
 0x8d8   :  { %1452 = vmatpush.bf16.msra.mxu0 %v3439_v60 }
 0x941   :  { %v1367_v59 = vpop.xlane.xlu1 %1366 }
 0x942   :  { %v1371_v45 = vmul.f32 %v1367_v59, %v3750_v10 }
 0x944   :  { %v1373_v46 = vsub.f32 %v1361_v33, %v1371_v45 }
 0x946   :  { %v1375_v47 = vmul.f32 %v1373_v46, %v1373_v46 }
 0x948   :  { %v1377_v48 = vsel %vm47_vm0, %v1375_v47, 0.0 }
 0x949   :  { %1378 = vadd.xlane.f32.xlu0 %v1377_v48  ;;  %v1370_v49 = vpop.xlane.xlu2 %1369 }
 0x94a   :  { %v1372_v50 = vmul.f32 %v1370_v49, %v3750_v10 }
 0x94c   :  { %v1374_v51 = vsub.f32 %v1362_v43, %v1372_v50 }
 0x94e   :  { %v1376_v52 = vmul.f32 %v1374_v51, %v1374_v51 }
 0x950   :  { %v1380_v55 = vsel %vm47_vm0, %v1376_v52, 0.0 }
 0x951   :  { %1381 = vadd.xlane.f32.xlu1 %v1380_v55 }
 0x9bc   :  { %v1379_v56 = vpop.xlane.xlu0 %1378 }
 0x9bd   :  { %v1383_v7 = vmul.f32 %v1379_v56, %v3750_v10 }
 0x9bf   :  { %v1385_v58 = vadd.f32 1e-06, %v1383_v7 }
 0x9c1   :  { %3581 = vrsqrt.f32 %v1385_v58  ;;  %vm1393_vm3 = vweird.f32 %v1385_v58 }
 0x9c4   :  { %v1382_v63 = vpop.xlane.xlu1 %1381 }
 0x9c5   :  { %v1384_v0 = vmul.f32 %v1382_v63, %v3750_v10  ;;  %v3446_v63 = vld [vmem:[#allocation2 + $0x108] sm:$0xff] }
 0x9c6   :  { %1622 = vmatpush.bf16.msra.mxu2 %v3446_v63 }
 0x9c7   :  { %v3582_v1 = vpop.eup %3581  ;;  %v1386_v2 = vadd.f32 1e-06, %v1384_v0  ;;  %v3448_v0 = vld [vmem:[#allocation2 + $0x118] sm:$0xff] }
 0x9c8   :  { %v1388_v3 = vmul.f32 %v3582_v1, %v1385_v58  ;;  %vm1394_vm2 = vweird.f32 %v3582_v1  ;;  %1648 = vmatpush.bf16.msra.mxu3 %v3448_v0 }
 0x9c9   :  { %3583 = vrsqrt.f32 %v1386_v2  ;;  %vm1395_vm4 = vmor %vm1393_vm3, %vm1394_vm2  ;;  %vm1403_vm6 = vweird.f32 %v1386_v2 }
 0x9ca   :  { %v1389_v4 = vmul.f32 %v3582_v1, %v1388_v3  ;;  %v3445_v3 = vld [vmem:[#allocation2 + $0x100] sm:$0xff] }
 0x9cb   :  { %1623 = vmatpush.bf16.msra.mxu2 %v3445_v3 }
 0x9cc   :  { %v1390_v5 = vmul.f32 0.5, %v1389_v4  ;;  %v3447_v4 = vld [vmem:[#allocation2 + $0x110] sm:$0xff] }
 0x9cd   :  { %1649 = vmatpush.bf16.msra.mxu3 %v3447_v4 }
 0x9ce   :  { %v1391_v6 = vsub.f32 1.5, %v1390_v5  ;;  %v3449_v5 = vld [vmem:[#allocation2 + $0x120] sm:$0xff] }
 0x9cf   :  { %v3584_v9 = vpop.eup %3583 }
 0x9d0   :  { %v1392_v11 = vmul.f32 %v3582_v1, %v1391_v6  ;;  %v1398_v12 = vmul.f32 %v3584_v9, %v1386_v2  ;;  %vm1404_vm5 = vweird.f32 %v3584_v9  ;;  %v3452_v2 = vld [vmem:[#allocation2 + $0x138] sm:$0xff] }
 0x9d1   :  { %vm1405_vm7 = vmor %vm1403_vm6, %vm1404_vm5  ;;  %1700 = vmatpush.bf16.msrb.mxu1 %v3452_v2 }
 0x9d2   :  { %v1399_v13 = vmul.f32 %v3584_v9, %v1398_v12  ;;  %v1396_v14 = vsel %vm1395_vm4, %v3582_v1, %v1392_v11  ;;  %v3450_v1 = vld [vmem:[#allocation2 + $0x128] sm:$0xff] }
 0x9d3   :  { %v1407_v19 = vmul.f32 %v1396_v14, %v1373_v46  ;;  %1674 = vmatpush.bf16.msrb.mxu0 %v3450_v1 }
 0x9d4   :  { %v1400_v15 = vmul.f32 0.5, %v1399_v13 }
 0x9d5   :  { %v1410_v23 = vmul.f32 %v3493_v18, %v1407_v19 }
 0x9d6   :  { %v1401_v17 = vsub.f32 1.5, %v1400_v15 }
 0x9d7   :  { %v1413_v57 = vadd.f32 %v3494_v22, %v1410_v23  ;;  %1675 = vmatpush.bf16.msrb.mxu0 %v3449_v5 }
 0x9d8   :  { %v1402_v20 = vmul.f32 %v3584_v9, %v1401_v17 }
 0x9da   :  { %v1406_v21 = vsel %vm1405_vm7, %v3584_v9, %v1402_v20  ;;  %v3451_v9 = vld [vmem:[#allocation2 + $0x130] sm:$0xff] }
 0x9db   :  { %v1408_v24 = vmul.f32 %v1406_v21, %v1374_v51  ;;  %1701 = vmatpush.bf16.msrb.mxu1 %v3451_v9 }
 0x9dd   :  { %v1411_v25 = vmul.f32 %v3493_v18, %v1408_v24  ;;  %v3497_v24 = vld [vmem:[%s4213_s6 + $0x7] ss:$0 sm:$0xff] }
 0x9df   :  { %v1414_v26 = vadd.f32 %v3494_v22, %v1411_v25 }
 0x9e1   :  { %v1427_v27 = vpack.c.bf16 %v1414_v26, %v1413_v57 }
 0x9e3   :  { %3194 = vmatmul.msk.bf16.vlgmr.msra.gmra.mxu0 %vm47_vm0, %v1427_v27  ;;  %v3498_v27 = vld [vmem:[%s4213_s6 + $0x8] ss:$0 sm:$0xff] }
 0xa60   :  { %v1454_v31 = vpop.f32.mrf.mxu0 }
 0xa61   :  { %v1455_v33 = vadd.f32 %v3495_v32, %v1454_v31 }
 0xa63   :  { %v1459_v36 = vmax.f32 %v1455_v33, 0.0 }
 0xa68   :  { %v1456_v34 = vpop.f32.mrf.mxu0 }
 0xa69   :  { %v1457_v35 = vadd.f32 %v3495_v32, %v1456_v34 }
 0xa6b   :  { %v1460_v37 = vmax.f32 %v1457_v35, 0.0 }
 0xa6d   :  { %v1461_v38 = vpack.c.bf16 %v1460_v37, %v1459_v36 }
 0xa6f   :  { %3211 = vmatmul.msk.bf16.vlgmr.msra.gmra.mxu1 %vm1488_vm9, %v1461_v38 }
 0xaec   :  { %v1501_v40 = vpop.f32.mrf.mxu1 }
 0xaed   :  { %v1502_v41 = vadd.f32 %v3496_v39, %v1501_v40 }
 0xaef   :  { %v1506_v42 = vadd.f32 %v1502_v41, %v1413_v57 }
 0xaf1   :  { %v1510_v43 = vsel %vm47_vm0, %v1506_v42, 0.0 }
 0xaf2   :  { %1511 = vadd.xlane.f32.xlu2 %v1510_v43 }
 0xaf4   :  { %v1503_v44 = vpop.f32.mrf.mxu1 }
 0xaf5   :  { %v1504_v59 = vadd.f32 %v3496_v39, %v1503_v44 }
 0xaf7   :  { %v1507_v45 = vadd.f32 %v1504_v59, %v1414_v26 }
 0xaf9   :  { %v1513_v46 = vsel %vm47_vm0, %v1507_v45, 0.0 }
 0xafa   :  { %1514 = vadd.xlane.f32.xlu0 %v1513_v46 }
 0xb65   :  { %v1512_v47 = vpop.xlane.xlu2 %1511 }
 0xb66   :  { %v1516_v48 = vmul.f32 %v1512_v47, %v3750_v10 }
 0xb68   :  { %v1518_v49 = vsub.f32 %v1506_v42, %v1516_v48 }
 0xb6a   :  { %v1520_v50 = vmul.f32 %v1518_v49, %v1518_v49 }
 0xb6c   :  { %v1522_v51 = vsel %vm47_vm0, %v1520_v50, 0.0 }
 0xb6d   :  { %v1515_v52 = vpop.xlane.xlu0 %1514  ;;  %1523 = vadd.xlane.f32.xlu1 %v1522_v51 }
 0xb6e   :  { %v1517_v55 = vmul.f32 %v1515_v52, %v3750_v10 }
 0xb70   :  { %v1519_v62 = vsub.f32 %v1507_v45, %v1517_v55 }
 0xb72   :  { %v1521_v56 = vmul.f32 %v1519_v62, %v1519_v62 }
 0xb74   :  { %v1525_v7 = vsel %vm47_vm0, %v1521_v56, 0.0 }
 0xb75   :  { %1526 = vadd.xlane.f32.xlu2 %v1525_v7 }
 0xbe0   :  { %v1524_v58 = vpop.xlane.xlu1 %1523 }
 0xbe1   :  { %v1528_v60 = vmul.f32 %v1524_v58, %v3750_v10 }
 0xbe3   :  { %v1530_v61 = vadd.f32 1e-06, %v1528_v60 }
 0xbe5   :  { %3585 = vrsqrt.f32 %v1530_v61  ;;  %vm1538_vm11 = vweird.f32 %v1530_v61 }
 0xbe8   :  { %v1527_v6 = vpop.xlane.xlu2 %1526 }
 0xbe9   :  { %v1529_v11 = vmul.f32 %v1527_v6, %v3750_v10 }
 0xbeb   :  { %v3586_v12 = vpop.eup %3585  ;;  %v1531_v13 = vadd.f32 1e-06, %v1529_v11 }
 0xbec   :  { %v1533_v14 = vmul.f32 %v3586_v12, %v1530_v61  ;;  %vm1539_vm10 = vweird.f32 %v3586_v12 }
 0xbed   :  { %3587 = vrsqrt.f32 %v1531_v13  ;;  %vm1540_vm12 = vmor %vm1538_vm11, %vm1539_vm10  ;;  %vm1548_vm14 = vweird.f32 %v1531_v13 }
 0xbee   :  { %v1534_v15 = vmul.f32 %v3586_v12, %v1533_v14 }
 0xbf0   :  { %v1535_v17 = vmul.f32 0.5, %v1534_v15 }
 0xbf2   :  { %v1536_v18 = vsub.f32 1.5, %v1535_v17 }
 0xbf3   :  { %v3588_v19 = vpop.eup %3587 }
 0xbf4   :  { %v1537_v20 = vmul.f32 %v3586_v12, %v1536_v18  ;;  %v1543_v21 = vmul.f32 %v3588_v19, %v1531_v13  ;;  %vm1549_vm13 = vweird.f32 %v3588_v19  ;;  %v3665_v13 = vld [vmem:[%s4209_s2] sm:$0xff] }
 0xbf5   :  { %vm1550_vm1 = vmor %vm1548_vm14, %vm1549_vm13 }
 0xbf6   :  { %v1541_v22 = vsel %vm1540_vm12, %v3586_v12, %v1537_v20  ;;  %v1544_v23 = vmul.f32 %v3588_v19, %v1543_v21  ;;  %v3666_v20 = vld [vmem:[%s4209_s2 + $0x8] sm:$0xff] }
 0xbf7   :  { %v1552_v25 = vmul.f32 %v1541_v22, %v1518_v49 }
 0xbf8   :  { %v1545_v57 = vmul.f32 0.5, %v1544_v23 }
 0xbf9   :  { %v1555_v28 = vmul.f32 %v3497_v24, %v1552_v25 }
 0xbfa   :  { %v1546_v26 = vsub.f32 1.5, %v1545_v57 }
 0xbfb   :  { %v3997_v31 = vadd.f32 %v3498_v27, %v1555_v28 }
 0xbfc   :  { %v1547_v29 = vmul.f32 %v3588_v19, %v1546_v26 }
 0xbfd   :  { %v1560_v34 = vpack.c.bf16 %v3997_v31, %v3997_v31 }
 0xbfe   :  { %v1551_v30 = vsel %vm1550_vm1, %v3588_v19, %v1547_v29 }
 0xbff   :  { %v1553_v32 = vmul.f32 %v1551_v30, %v1519_v62  ;;  %v1598_v37 = vunpack.c.l.b16 %v1560_v34 }
 0xc01   :  { %v1556_v33 = vmul.f32 %v3497_v24, %v1553_v32 }
 0xc03   :  { %v4001_v35 = vadd.f32 %v3498_v27, %v1556_v33 }
 0xc05   :  { %v1561_v36 = vpack.c.bf16 %v4001_v35, %v4001_v35 }
 0xc07   :  { %v1599_v38 = vunpack.c.l.b16 %v1561_v36 }
 0xc09   :  { %v1600_v39 = vpack.c.b16 %v1599_v38, %v1598_v37 }
 0xc0b   :  { %3220 = vmatmul.msk.bf16.vlgmr.msra.gmra.mxu2 %vm47_vm0, %v1600_v39  ;;  %3229 = vmatmul.msk.bf16.vlgmr.msra.gmra.mxu3 %vm47_vm0, %v1600_v39  ;;  %v1614_v40 = vsel %vm47_vm0, %v1600_v39, 0 }
 0xc0c   :  { %3238 = vmatmul.msk.bf16.vlgmr.msrb.gmra.mxu0 %vm47_vm0, %v1600_v39  ;;  %3247 = vmatmul.msk.bf16.vlgmr.msrb.gmra.mxu1 %vm47_vm0, %v1600_v39 }
 0xc0d   :  { %1731 = vmatpush.bf16.xpose.msrb.mxu2 %v1614_v40  ;;  %1753 = vmatpush.bf16.xpose.msrb.mxu3 %v1614_v40 }
 0xc0e   :  { %1775 = vmatpush.bf16.xpose.msra.mxu0 %v1614_v40  ;;  %1797 = vmatpush.bf16.xpose.msra.mxu1 %v1614_v40 }
 0xc15   :  { %1916 = vmatpush.bf16.msra.mxu2 %v1600_v39  ;;  %1938 = vmatpush.bf16.msra.mxu3 %v1600_v39 }
 0xc16   :  { %1960 = vmatpush.bf16.msrb.mxu0 %v1600_v39  ;;  %1982 = vmatpush.bf16.msrb.mxu1 %v1600_v39 }
 0xc89   :  { %v1677_v41 = vpop.f32.mrf.mxu0  ;;  %v1703_v42 = vpop.f32.mrf.mxu1 }
 0xc8a   :  { %v1712_v59 = vpack.c.bf16 %v1677_v41, %v1677_v41  ;;  %v1714_v45 = vpack.c.bf16 %v1703_v42, %v1703_v42 }
 0xc8c   :  { %v1762_v50 = vunpack.c.l.b16 %v1712_v59  ;;  %v1784_v51 = vunpack.c.l.b16 %v1714_v45 }
 0xc8e   :  { %v1625_v43 = vpop.f32.mrf.mxu2  ;;  %v1651_v44 = vpop.f32.mrf.mxu3 }
 0xc8f   :  { %v1708_v62 = vpack.c.bf16 %v1625_v43, %v1625_v43  ;;  %v1710_v56 = vpack.c.bf16 %v1651_v44, %v1651_v44 }
 0xc91   :  { %v1679_v46 = vpop.f32.mrf.mxu0  ;;  %v1705_v47 = vpop.f32.mrf.mxu1  ;;  %v1718_v1 = vunpack.c.l.b16 %v1708_v62  ;;  %v1740_v2 = vunpack.c.l.b16 %v1710_v56 }
 0xc92   :  { %v1713_v48 = vpack.c.bf16 %v1679_v46, %v1679_v46  ;;  %v1715_v49 = vpack.c.bf16 %v1705_v47, %v1705_v47 }
 0xc94   :  { %v1763_v52 = vunpack.c.l.b16 %v1713_v48  ;;  %v1785_v55 = vunpack.c.l.b16 %v1715_v49 }
 0xc96   :  { %v1764_v7 = vpack.c.b16 %v1763_v52, %v1762_v50  ;;  %v1786_v58 = vpack.c.b16 %v1785_v55, %v1784_v51  ;;  %v1627_v60 = vpop.f32.mrf.mxu2  ;;  %v1653_v61 = vpop.f32.mrf.mxu3 }
 0xc97   :  { %v1709_v63 = vpack.c.bf16 %v1627_v60, %v1627_v60  ;;  %v1711_v0 = vpack.c.bf16 %v1653_v61, %v1653_v61 }
 0xc98   :  { %3250 = vmatmul.msk.bf16.vlgmr.msra.gmra.mxu0 %vm47_vm0, %v1764_v7  ;;  %3251 = vmatmul.msk.bf16.vlgmr.msra.gmra.mxu1 %vm47_vm0, %v1786_v58 }
 0xc99   :  { %v1719_v3 = vunpack.c.l.b16 %v1709_v63  ;;  %v1741_v4 = vunpack.c.l.b16 %v1711_v0 }
 0xc9b   :  { %v1720_v5 = vpack.c.b16 %v1719_v3, %v1718_v1  ;;  %v1742_v6 = vpack.c.b16 %v1741_v4, %v1740_v2 }
 0xc9d   :  { %3248 = vmatmul.msk.bf16.vlgmr.msrb.gmra.mxu2 %vm47_vm0, %v1720_v5  ;;  %3249 = vmatmul.msk.bf16.vlgmr.msrb.gmra.mxu3 %vm47_vm0, %v1742_v6 }
 0xd15   :  { %v1777_v9 = vpop.f32.mrf.mxu0  ;;  %v1799_v57 = vpop.f32.mrf.mxu1 }
 0xd16   :  { %v1778_v29 = vadd.f32 %v3665_v13, %v1777_v9  ;;  %v1800_v30 = vadd.f32 %v3665_v13, %v1799_v57 }
 0xd18   :  { %v1816_v32 = vsel %vm358_vm8, %v1778_v29, -inf  ;;  %v1822_v34 = vsel %vm358_vm8, %v1800_v30, -inf }
 0xd1d   :  { %v1779_v19 = vpop.f32.mrf.mxu0  ;;  %v1801_v33 = vpop.f32.mrf.mxu1 }
 0xd1e   :  { %v1780_v21 = vadd.f32 %v3666_v20, %v1779_v19  ;;  %v1802_v36 = vadd.f32 %v3666_v20, %v1801_v33 }
 0xd20   :  { %v1733_v11 = vpop.f32.mrf.mxu2  ;;  %v1755_v12 = vpop.f32.mrf.mxu3  ;;  %v1819_v26 = vsel %vm358_vm8, %v1780_v21, -inf  ;;  %v1825_v37 = vsel %vm358_vm8, %v1802_v36, -inf }
 0xd21   :  { %v1734_v14 = vadd.f32 %v3665_v13, %v1733_v11  ;;  %v1756_v15 = vadd.f32 %v3665_v13, %v1755_v12 }
 0xd23   :  { %v1810_v17 = vsel %vm358_vm8, %v1756_v15, -inf  ;;  %v1804_v18 = vsel %vm358_vm8, %v1734_v14, -inf }
 0xd24   :  { %1811 = vmax.xlane.f32.xlu2 %v1810_v17  ;;  %1805 = vmax.xlane.f32.xlu0 %v1804_v18 }
 0xd28   :  { %v1735_v22 = vpop.f32.mrf.mxu2  ;;  %v1757_v23 = vpop.f32.mrf.mxu3 }
 0xd29   :  { %v1736_v24 = vadd.f32 %v3666_v20, %v1735_v22  ;;  %v1758_v25 = vadd.f32 %v3666_v20, %v1757_v23 }
 0xd2b   :  { %v1807_v27 = vsel %vm358_vm8, %v1736_v24, -inf  ;;  %v1813_v28 = vsel %vm358_vm8, %v1758_v25, -inf }
 0xd2c   :  { %1820 = vmax.xlane.f32.xlu2 %v1819_v26  ;;  %1808 = vmax.xlane.f32.xlu1 %v1807_v27 }
 0xd2d   :  { %1814 = vmax.xlane.f32.xlu0 %v1813_v28 }
 0xd34   :  { %1817 = vmax.xlane.f32.xlu1 %v1816_v32 }
 0xd35   :  { %1823 = vmax.xlane.f32.xlu0 %v1822_v34 }
 0xd3c   :  { %1826 = vmax.xlane.f32.xlu1 %v1825_v37 }
 0xd97   :  { %v1812_v38 = vpop.xlane.xlu2 %1811  ;;  %v1806_v39 = vpop.xlane.xlu0 %1805 }
 0xd98   :  { %v1830_v40 = vsub.f32 %v1756_v15, %v1812_v38  ;;  %v1828_v41 = vsub.f32 %v1734_v14, %v1806_v39 }
 0xd9a   :  { %v1840_v42 = vmul.f32 1.442695, %v1830_v40  ;;  %v1836_v43 = vmul.f32 1.442695, %v1828_v41 }
 0xd9c   :  { %3589 = vpow2.f32 %v1840_v42 }
 0xd9d   :  { %3591 = vpow2.f32 %v1836_v43 }
 0xd9f   :  { %v1821_v44 = vpop.xlane.xlu2 %1820  ;;  %v1809_v59 = vpop.xlane.xlu1 %1808 }
 0xda0   :  { %v1833_v45 = vsub.f32 %v1780_v21, %v1821_v44  ;;  %v1829_v46 = vsub.f32 %v1736_v24, %v1809_v59  ;;  %v1815_v47 = vpop.xlane.xlu0 %1814  ;;  %v3454_v24 = vld [vmem:[#allocation2 + $0x148] sm:$0xff] }
 0xda1   :  { %v1831_v48 = vsub.f32 %v1758_v25, %v1815_v47  ;;  %v3456_v25 = vld [vmem:[#allocation2 + $0x158] sm:$0xff]  ;;  %2023 = vmatpush.bf16.msrb.mxu2 %v3454_v24 }
 0xda2   :  { %v3590_v49 = vpop.eup %3589  ;;  %v1846_v50 = vmul.f32 1.442695, %v1833_v45  ;;  %v1838_v51 = vmul.f32 1.442695, %v1829_v46  ;;  %2057 = vmatpush.bf16.msrb.mxu3 %v3456_v25 }
 0xda3   :  { %v3592_v52 = vpop.eup %3591  ;;  %v1842_v55 = vmul.f32 1.442695, %v1831_v48  ;;  %v1858_v62 = vsel %vm358_vm8, %v3590_v49, 0.0 }
 0xda4   :  { %3593 = vpow2.f32 %v1846_v50  ;;  %1859 = vadd.xlane.f32.xlu1 %v1858_v62  ;;  %v1852_v56 = vsel %vm358_vm8, %v3592_v52, 0.0 }
 0xda5   :  { %3595 = vpow2.f32 %v1838_v51  ;;  %1853 = vadd.xlane.f32.xlu2 %v1852_v56 }
 0xda6   :  { %3597 = vpow2.f32 %v1842_v55 }
 0xda7   :  { %v1818_v7 = vpop.xlane.xlu1 %1817 }
 0xda8   :  { %v1832_v58 = vsub.f32 %v1778_v29, %v1818_v7  ;;  %v1824_v60 = vpop.xlane.xlu0 %1823 }
 0xda9   :  { %v1834_v61 = vsub.f32 %v1800_v30, %v1824_v60 }
 0xdaa   :  { %v3594_v63 = vpop.eup %3593  ;;  %v1844_v0 = vmul.f32 1.442695, %v1832_v58 }
 0xdab   :  { %v3596_v1 = vpop.eup %3595  ;;  %v1848_v2 = vmul.f32 1.442695, %v1834_v61  ;;  %v1867_v3 = vsel %vm358_vm8, %v3594_v63, 0.0 }
 0xdac   :  { %v3598_v4 = vpop.eup %3597  ;;  %3599 = vpow2.f32 %v1844_v0  ;;  %1868 = vadd.xlane.f32.xlu1 %v1867_v3  ;;  %v1855_v5 = vsel %vm358_vm8, %v3596_v1, 0.0 }
 0xdad   :  { %3601 = vpow2.f32 %v1848_v2  ;;  %1856 = vadd.xlane.f32.xlu0 %v1855_v5  ;;  %v1861_v6 = vsel %vm358_vm8, %v3598_v4, 0.0  ;;  %v3453_v5 = vld [vmem:[#allocation2 + $0x140] sm:$0xff] }
 0xdae   :  { %1862 = vadd.xlane.f32.xlu2 %v1861_v6  ;;  %v3455_v6 = vld [vmem:[#allocation2 + $0x150] sm:$0xff]  ;;  %2024 = vmatpush.bf16.msrb.mxu2 %v3453_v5 }
 0xdaf   :  { %v1827_v9 = vpop.xlane.xlu1 %1826  ;;  %2058 = vmatpush.bf16.msrb.mxu3 %v3455_v6 }
 0xdb0   :  { %v1835_v11 = vsub.f32 %v1802_v36, %v1827_v9  ;;  %v3458_v9 = vld [vmem:[#allocation2 + $0x168] sm:$0xff] }
 0xdb1   :  { %2091 = vmatpush.bf16.msra.mxu0 %v3458_v9 }
 0xdb2   :  { %v3600_v12 = vpop.eup %3599  ;;  %v1850_v13 = vmul.f32 1.442695, %v1835_v11  ;;  %v3460_v11 = vld [vmem:[#allocation2 + $0x178] sm:$0xff] }
 0xdb3   :  { %v3602_v14 = vpop.eup %3601  ;;  %v1864_v15 = vsel %vm358_vm8, %v3600_v12, 0.0  ;;  %2125 = vmatpush.bf16.msra.mxu1 %v3460_v11 }
 0xdb4   :  { %3603 = vpow2.f32 %v1850_v13  ;;  %v1870_v17 = vsel %vm358_vm8, %v3602_v14, 0.0  ;;  %v3459_v13 = vld [vmem:[#allocation2 + $0x170] sm:$0xff] }
 0xdb5   :  { %1865 = vadd.xlane.f32.xlu0 %v1864_v15 }
 0xdb6   :  { %1871 = vadd.xlane.f32.xlu2 %v1870_v17 }
 0xdb7   :  { %2126 = vmatpush.bf16.msra.mxu1 %v3459_v13 }
 0xdba   :  { %v3604_v18 = vpop.eup %3603 }
 0xdbb   :  { %v1873_v19 = vsel %vm358_vm8, %v3604_v18, 0.0 }
 0xdbd   :  { %1874 = vadd.xlane.f32.xlu0 %v1873_v19 }
 0xe17   :  { %v1860_v20 = vpop.xlane.xlu1 %1859 }
 0xe18   :  { %v1854_v21 = vpop.xlane.xlu2 %1853 }
 0xe19   :  { %3605 = vrcp.f32 %v1854_v21 }
 0xe1a   :  { %3607 = vrcp.f32 %v1860_v20 }
 0xe1f   :  { %v1869_v22 = vpop.xlane.xlu1 %1868  ;;  %v3606_v57 = vpop.eup %3605 }
 0xe20   :  { %v1857_v23 = vpop.xlane.xlu0 %1856  ;;  %v3608_v27 = vpop.eup %3607  ;;  %v1884_v28 = vmul.f32 %v3606_v57, %v3592_v52 }
 0xe21   :  { %v1863_v26 = vpop.xlane.xlu2 %1862  ;;  %3609 = vrcp.f32 %v1857_v23  ;;  %v1886_v29 = vmul.f32 %v3608_v27, %v3590_v49 }
 0xe22   :  { %3611 = vrcp.f32 %v1863_v26  ;;  %v1892_v33 = vpack.c.bf16 %v1884_v28, %v1884_v28 }
 0xe23   :  { %3613 = vrcp.f32 %v1869_v22  ;;  %v1894_v38 = vpack.c.bf16 %v1886_v29, %v1886_v29 }
 0xe24   :  { %v1902_v43 = vunpack.c.l.b16 %v1892_v33 }
 0xe25   :  { %v1925_v45 = vunpack.c.l.b16 %v1894_v38 }
 0xe27   :  { %v3610_v30 = vpop.eup %3609 }
 0xe28   :  { %v3612_v32 = vpop.eup %3611  ;;  %v1885_v34 = vmul.f32 %v3610_v30, %v3596_v1  ;;  %v1866_v36 = vpop.xlane.xlu0 %1865 }
 0xe29   :  { %v3614_v37 = vpop.eup %3613  ;;  %v1887_v39 = vmul.f32 %v3612_v32, %v3598_v4  ;;  %v1872_v40 = vpop.xlane.xlu2 %1871  ;;  %3615 = vrcp.f32 %v1866_v36 }
 0xe2a   :  { %v1893_v41 = vpack.c.bf16 %v1885_v34, %v1885_v34  ;;  %3617 = vrcp.f32 %v1872_v40  ;;  %v1889_v44 = vmul.f32 %v3614_v37, %v3594_v63 }
 0xe2b   :  { %v1895_v42 = vpack.c.bf16 %v1887_v39, %v1887_v39 }
 0xe2c   :  { %v1903_v59 = vunpack.c.l.b16 %v1893_v41  ;;  %v1897_v50 = vpack.c.bf16 %v1889_v44, %v1889_v44 }
 0xe2d   :  { %v1926_v46 = vunpack.c.l.b16 %v1895_v42 }
 0xe2e   :  { %v1904_v47 = vpack.c.b16 %v1903_v59, %v1902_v43  ;;  %v1948_v56 = vunpack.c.l.b16 %v1897_v50 }
 0xe2f   :  { %v3616_v48 = vpop.eup %3615  ;;  %v1927_v49 = vpack.c.b16 %v1926_v46, %v1925_v45 }
 0xe30   :  { %v1888_v51 = vmul.f32 %v3616_v48, %v3600_v12  ;;  %3252 = vmatmul.msk.bf16.vlgmr.msra.gmra.mxu2 %vm358_vm8, %v1904_v47  ;;  %v1875_v52 = vpop.xlane.xlu0 %1874  ;;  %v3618_v55 = vpop.eup %3617  ;;  %v3457_v12 = vld [vmem:[#allocation2 + $0x160] sm:$0xff] }
 0xe31   :  { %3253 = vmatmul.msk.bf16.vlgmr.msra.gmra.mxu3 %vm358_vm8, %v1927_v49  ;;  %3619 = vrcp.f32 %v1875_v52  ;;  %v1890_v7 = vmul.f32 %v3618_v55, %v3602_v14  ;;  %2092 = vmatpush.bf16.msra.mxu0 %v3457_v12 }
 0xe32   :  { %v1896_v62 = vpack.c.bf16 %v1888_v51, %v1888_v51 }
 0xe33   :  { %v1898_v63 = vpack.c.bf16 %v1890_v7, %v1890_v7 }
 0xe34   :  { %v1947_v58 = vunpack.c.l.b16 %v1896_v62 }
 0xe35   :  { %v1969_v2 = vunpack.c.l.b16 %v1898_v63 }
 0xe36   :  { %v1949_v60 = vpack.c.b16 %v1948_v56, %v1947_v58 }
 0xe37   :  { %v3620_v61 = vpop.eup %3619 }
 0xe38   :  { %v1891_v0 = vmul.f32 %v3620_v61, %v3604_v18  ;;  %3254 = vmatmul.msk.bf16.vlgmr.msrb.gmra.mxu0 %vm358_vm8, %v1949_v60 }
 0xe3a   :  { %v1899_v1 = vpack.c.bf16 %v1891_v0, %v1891_v0 }
 0xe3c   :  { %v1970_v3 = vunpack.c.l.b16 %v1899_v1 }
 0xe3e   :  { %v1971_v4 = vpack.c.b16 %v1970_v3, %v1969_v2 }
 0xe40   :  { %3255 = vmatmul.msk.bf16.vlgmr.msrb.gmra.mxu1 %vm358_vm8, %v1971_v4 }
 0xeb3   :  { %v1918_v14 = vpop.f32.mrf.mxu2 }
 0xeb4   :  { %v1940_v15 = vpop.f32.mrf.mxu3  ;;  %v1989_v18 = vpack.c.bf16 %v1918_v14, %v1918_v14 }
 0xeb5   :  { %v1962_v17 = vpop.f32.mrf.mxu0  ;;  %v1991_v19 = vpack.c.bf16 %v1940_v15, %v1940_v15 }
 0xeb6   :  { %v1993_v21 = vpack.c.bf16 %v1962_v17, %v1962_v17  ;;  %v1999_v26 = vunpack.c.l.b16 %v1989_v18 }
 0xeb7   :  { %v2033_v29 = vunpack.c.l.b16 %v1991_v19 }
 0xeb8   :  { %v2067_v32 = vunpack.c.l.b16 %v1993_v21 }
 0xebb   :  { %v1920_v20 = vpop.f32.mrf.mxu2 }
 0xebc   :  { %v1990_v22 = vpack.c.bf16 %v1920_v20, %v1920_v20  ;;  %v1942_v23 = vpop.f32.mrf.mxu3 }
 0xebd   :  { %v1992_v24 = vpack.c.bf16 %v1942_v23, %v1942_v23  ;;  %v1964_v25 = vpop.f32.mrf.mxu0  ;;  %v1984_v57 = vpop.f32.mrf.mxu1  ;;  %v3462_v23 = vld [vmem:[#allocation2 + $0x188] sm:$0xff] }
 0xebe   :  { %v2000_v27 = vunpack.c.l.b16 %v1990_v22  ;;  %v1994_v28 = vpack.c.bf16 %v1964_v25, %v1964_v25  ;;  %v1995_v38 = vpack.c.bf16 %v1984_v57, %v1984_v57  ;;  %v3466_v25 = vld [vmem:[#allocation2 + $0x1a8] sm:$0xff]  ;;  %v3468_v57 = vld [vmem:[#allocation2 + $0x1b8] sm:$0xff]  ;;  %2263 = vmatpush.bf16.msra.mxu2 %v3462_v23 }
 0xebf   :  { %v2034_v30 = vunpack.c.l.b16 %v1992_v24  ;;  %v3464_v24 = vld [vmem:[#allocation2 + $0x198] sm:$0xff]  ;;  %2315 = vmatpush.bf16.msrb.mxu0 %v3466_v25  ;;  %2341 = vmatpush.bf16.msrb.mxu1 %v3468_v57 }
 0xec0   :  { %v2001_v33 = vpack.c.b16 %v2000_v27, %v1999_v26  ;;  %v2068_v34 = vunpack.c.l.b16 %v1994_v28  ;;  %v2101_v41 = vunpack.c.l.b16 %v1995_v38  ;;  %2289 = vmatpush.bf16.msra.mxu3 %v3464_v24  ;;  %v3461_v26 = vld [vmem:[#allocation2 + $0x180] sm:$0xff]  ;;  %v3463_v27 = vld [vmem:[#allocation2 + $0x190] sm:$0xff] }
 0xec1   :  { %v2035_v36 = vpack.c.b16 %v2034_v30, %v2033_v29  ;;  %v3465_v28 = vld [vmem:[#allocation2 + $0x1a0] sm:$0xff]  ;;  %v3467_v30 = vld [vmem:[#allocation2 + $0x1b0] sm:$0xff] }
 0xec2   :  { %v2069_v37 = vpack.c.b16 %v2068_v34, %v2067_v32  ;;  %3264 = vmatmul.msk.bf16.vlgmr.msrb.gmra.mxu2 %vm47_vm0, %v2001_v33 }
 0xec3   :  { %3273 = vmatmul.msk.bf16.vlgmr.msrb.gmra.mxu3 %vm47_vm0, %v2035_v36  ;;  %2264 = vmatpush.bf16.msra.mxu2 %v3461_v26 }
 0xec4   :  { %3282 = vmatmul.msk.bf16.vlgmr.msra.gmra.mxu0 %vm47_vm0, %v2069_v37  ;;  %2290 = vmatpush.bf16.msra.mxu3 %v3463_v27 }
 0xec5   :  { %v1986_v39 = vpop.f32.mrf.mxu1  ;;  %2316 = vmatpush.bf16.msrb.mxu0 %v3465_v28  ;;  %2342 = vmatpush.bf16.msrb.mxu1 %v3467_v30  ;;  %v3667_v28 = vld [vmem:[%s4210_s3] sm:$0xff] }
 0xec6   :  { %v1996_v40 = vpack.c.bf16 %v1986_v39, %v1986_v39 }
 0xec7   :  { %2371 = vmatpush.bf16.xpose.msrb.mxu2 %v3854_v8 }
 0xec8   :  { %v2102_v42 = vunpack.c.l.b16 %v1996_v40  ;;  %2393 = vmatpush.bf16.xpose.msrb.mxu3 %v3854_v8 }
 0xec9   :  { %2415 = vmatpush.bf16.xpose.msra.mxu0 %v3854_v8 }
 0xeca   :  { %v2103_v43 = vpack.c.b16 %v2102_v42, %v2101_v41 }
 0xecc   :  { %3291 = vmatmul.msk.bf16.vlgmr.msra.gmra.mxu1 %vm47_vm0, %v2103_v43 }
 0xecd   :  { %2437 = vmatpush.bf16.xpose.msra.mxu1 %v3854_v8 }
 0xecf   :  { %2372 = vmatpush.bf16.xpose.msrb.mxu2 %v3870_v53 }
 0xed0   :  { %2394 = vmatpush.bf16.xpose.msrb.mxu3 %v3870_v53 }
 0xed1   :  { %2416 = vmatpush.bf16.xpose.msra.mxu0 %v3870_v53 }
 0xed5   :  { %2438 = vmatpush.bf16.xpose.msra.mxu1 %v3870_v53 }
 0xf41   :  { %v2094_v44 = vpop.f32.mrf.mxu0 }
 0xf42   :  { %v2136_v49 = vsel %vm47_vm0, %v2094_v44, 0.0  ;;  %v3499_v44 = vld [vmem:[%s4213_s6 + $0xa] ss:$0 sm:$0xff] }
 0xf45   :  { %v2026_v59 = vpop.f32.mrf.mxu2 }
 0xf46   :  { %v2133_v45 = vsel %vm47_vm0, %v2026_v59, 0.0  ;;  %v2060_v46 = vpop.f32.mrf.mxu3 }
 0xf47   :  { %v2134_v47 = vsel %vm47_vm0, %v2060_v46, 0.0 }
 0xf48   :  { %v2135_v48 = vadd.f32 %v2134_v47, %v2133_v45  ;;  %v3500_v47 = vld [vmem:[%s4213_s6 + $0xb] ss:$0 sm:$0xff] }
 0xf49   :  { %v2128_v50 = vpop.f32.mrf.mxu1  ;;  %v2096_v56 = vpop.f32.mrf.mxu0 }
 0xf4a   :  { %v2137_v51 = vadd.f32 %v2136_v49, %v2135_v48  ;;  %v2138_v52 = vsel %vm47_vm0, %v2128_v50, 0.0  ;;  %v2143_v1 = vsel %vm47_vm0, %v2096_v56, 0.0 }
 0xf4c   :  { %v2139_v55 = vadd.f32 %v2138_v52, %v2137_v51 }
 0xf4d   :  { %v2028_v62 = vpop.f32.mrf.mxu2 }
 0xf4e   :  { %v2140_v7 = vsel %vm47_vm0, %v2028_v62, 0.0  ;;  %v2062_v58 = vpop.f32.mrf.mxu3  ;;  %v2147_v60 = vadd.f32 %v2139_v55, %v3997_v31 }
 0xf4f   :  { %v2141_v61 = vsel %vm47_vm0, %v2062_v58, 0.0 }
 0xf50   :  { %v2142_v63 = vadd.f32 %v2141_v61, %v2140_v7  ;;  %v2151_v0 = vsel %vm47_vm0, %v2147_v60, 0.0 }
 0xf51   :  { %2152 = vadd.xlane.f32.xlu1 %v2151_v0  ;;  %v2130_v2 = vpop.f32.mrf.mxu1 }
 0xf52   :  { %v2144_v3 = vadd.f32 %v2143_v1, %v2142_v63  ;;  %v2145_v4 = vsel %vm47_vm0, %v2130_v2, 0.0 }
 0xf54   :  { %v2146_v5 = vadd.f32 %v2145_v4, %v2144_v3 }
 0xf56   :  { %v2148_v6 = vadd.f32 %v2146_v5, %v4001_v35 }
 0xf58   :  { %v2154_v9 = vsel %vm47_vm0, %v2148_v6, 0.0 }
 0xf59   :  { %2155 = vadd.xlane.f32.xlu2 %v2154_v9 }
 0xfc4   :  { %v2153_v11 = vpop.xlane.xlu1 %2152 }
 0xfc5   :  { %v2157_v31 = vmul.f32 %v2153_v11, %v3750_v10 }
 0xfc7   :  { %v2159_v12 = vsub.f32 %v2147_v60, %v2157_v31 }
 0xfc9   :  { %v2161_v13 = vmul.f32 %v2159_v12, %v2159_v12 }
 0xfcb   :  { %v2163_v14 = vsel %vm47_vm0, %v2161_v13, 0.0 }
 0xfcc   :  { %2164 = vadd.xlane.f32.xlu0 %v2163_v14  ;;  %v2156_v15 = vpop.xlane.xlu2 %2155 }
 0xfcd   :  { %v2158_v17 = vmul.f32 %v2156_v15, %v3750_v10 }
 0xfcf   :  { %v2160_v18 = vsub.f32 %v2148_v6, %v2158_v17 }
 0xfd1   :  { %v2162_v19 = vmul.f32 %v2160_v18, %v2160_v18 }
 0xfd3   :  { %v2166_v20 = vsel %vm47_vm0, %v2162_v19, 0.0 }
 0xfd4   :  { %2167 = vadd.xlane.f32.xlu1 %v2166_v20 }
0x103f   :  { %v2165_v35 = vpop.xlane.xlu0 %2164 }
0x1040   :  { %v2169_v21 = vmul.f32 %v2165_v35, %v3750_v10 }
0x1042   :  { %v2171_v22 = vadd.f32 1e-06, %v2169_v21 }
0x1044   :  { %3621 = vrsqrt.f32 %v2171_v22  ;;  %vm2179_vm2 = vweird.f32 %v2171_v22 }
0x1047   :  { %v2168_v29 = vpop.xlane.xlu1 %2167 }
0x1048   :  { %v2170_v32 = vmul.f32 %v2168_v29, %v3750_v10 }
0x104a   :  { %v3622_v33 = vpop.eup %3621  ;;  %v2172_v34 = vadd.f32 1e-06, %v2170_v32 }
0x104b   :  { %v2174_v36 = vmul.f32 %v3622_v33, %v2171_v22  ;;  %vm2180_vm8 = vweird.f32 %v3622_v33 }
0x104c   :  { %3623 = vrsqrt.f32 %v2172_v34  ;;  %vm2181_vm3 = vmor %vm2179_vm2, %vm2180_vm8  ;;  %vm2189_vm5 = vweird.f32 %v2172_v34 }
0x104d   :  { %v2175_v37 = vmul.f32 %v3622_v33, %v2174_v36  ;;  %v3668_v36 = vld [vmem:[%s4210_s3 + $0x8] sm:$0xff] }
0x104f   :  { %v2176_v38 = vmul.f32 0.5, %v2175_v37 }
0x1051   :  { %v2177_v39 = vsub.f32 1.5, %v2176_v38 }
0x1052   :  { %v3624_v40 = vpop.eup %3623 }
0x1053   :  { %v2178_v41 = vmul.f32 %v3622_v33, %v2177_v39  ;;  %v2184_v42 = vmul.f32 %v3624_v40, %v2172_v34  ;;  %vm2190_vm4 = vweird.f32 %v3624_v40 }
0x1054   :  { %vm2191_vm6 = vmor %vm2189_vm5, %vm2190_vm4 }
0x1055   :  { %v2182_v43 = vsel %vm2181_vm3, %v3622_v33, %v2178_v41  ;;  %v2185_v8 = vmul.f32 %v3624_v40, %v2184_v42 }
0x1056   :  { %v2193_v59 = vmul.f32 %v2182_v43, %v2159_v12 }
0x1057   :  { %v2186_v45 = vmul.f32 0.5, %v2185_v8 }
0x1058   :  { %v2196_v48 = vmul.f32 %v3499_v44, %v2193_v59 }
0x1059   :  { %v2187_v46 = vsub.f32 1.5, %v2186_v45 }
0x105a   :  { %v4076_v50 = vadd.f32 %v3500_v47, %v2196_v48 }
0x105b   :  { %v2188_v49 = vmul.f32 %v3624_v40, %v2187_v46 }
0x105c   :  { %v2201_v55 = vpack.c.bf16 %v4076_v50, %v4076_v50 }
0x105d   :  { %v2192_v53 = vsel %vm2191_vm6, %v3624_v40, %v2188_v49 }
0x105e   :  { %v2194_v51 = vmul.f32 %v2192_v53, %v2160_v18  ;;  %v2239_v7 = vunpack.c.l.b16 %v2201_v55 }
0x1060   :  { %v2197_v52 = vmul.f32 %v3499_v44, %v2194_v51 }
0x1062   :  { %v4080_v62 = vadd.f32 %v3500_v47, %v2197_v52 }
0x1064   :  { %v2202_v56 = vpack.c.bf16 %v4080_v62, %v4080_v62 }
0x1066   :  { %v2240_v58 = vunpack.c.l.b16 %v2202_v56 }
0x1068   :  { %v2241_v60 = vpack.c.b16 %v2240_v58, %v2239_v7 }
0x106a   :  { %3300 = vmatmul.msk.bf16.vlgmr.msra.gmra.mxu2 %vm47_vm0, %v2241_v60  ;;  %3309 = vmatmul.msk.bf16.vlgmr.msra.gmra.mxu3 %vm47_vm0, %v2241_v60 }
0x106b   :  { %3318 = vmatmul.msk.bf16.vlgmr.msrb.gmra.mxu0 %vm47_vm0, %v2241_v60  ;;  %3327 = vmatmul.msk.bf16.vlgmr.msrb.gmra.mxu1 %vm47_vm0, %v2241_v60 }
0x106c   :  { %2555 = vmatpush.bf16.msra.mxu2 %v3912_v54  ;;  %2577 = vmatpush.bf16.msra.mxu3 %v3912_v54 }
0x106d   :  { %2599 = vmatpush.bf16.msrb.mxu0 %v3912_v54  ;;  %2621 = vmatpush.bf16.msrb.mxu1 %v3912_v54 }
0x1070   :  { %2556 = vmatpush.bf16.msra.mxu2 %v3866_v16  ;;  %2578 = vmatpush.bf16.msra.mxu3 %v3866_v16 }
0x1071   :  { %2600 = vmatpush.bf16.msrb.mxu0 %v3866_v16  ;;  %2622 = vmatpush.bf16.msrb.mxu1 %v3866_v16 }
0x10e8   :  { %v2318_v61 = vpop.f32.mrf.mxu0  ;;  %v2344_v63 = vpop.f32.mrf.mxu1 }
0x10e9   :  { %v2353_v2 = vpack.c.bf16 %v2318_v61, %v2318_v61  ;;  %v2355_v3 = vpack.c.bf16 %v2344_v63, %v2344_v63 }
0x10eb   :  { %v2403_v11 = vunpack.c.l.b16 %v2353_v2  ;;  %v2425_v54 = vunpack.c.l.b16 %v2355_v3 }
0x10ed   :  { %v2266_v0 = vpop.f32.mrf.mxu2  ;;  %v2292_v1 = vpop.f32.mrf.mxu3 }
0x10ee   :  { %v2349_v13 = vpack.c.bf16 %v2266_v0, %v2266_v0  ;;  %v2351_v14 = vpack.c.bf16 %v2292_v1, %v2292_v1 }
0x10f0   :  { %v2320_v4 = vpop.f32.mrf.mxu0  ;;  %v2346_v5 = vpop.f32.mrf.mxu1  ;;  %v2359_v35 = vunpack.c.l.b16 %v2349_v13  ;;  %v2381_v21 = vunpack.c.l.b16 %v2351_v14 }
0x10f1   :  { %v2354_v6 = vpack.c.bf16 %v2320_v4, %v2320_v4  ;;  %v2356_v9 = vpack.c.bf16 %v2346_v5, %v2346_v5 }
0x10f3   :  { %v2404_v31 = vunpack.c.l.b16 %v2354_v6  ;;  %v2426_v12 = vunpack.c.l.b16 %v2356_v9 }
0x10f5   :  { %v2405_v15 = vpack.c.b16 %v2404_v31, %v2403_v11  ;;  %v2427_v17 = vpack.c.b16 %v2426_v12, %v2425_v54  ;;  %v2268_v18 = vpop.f32.mrf.mxu2  ;;  %v2294_v16 = vpop.f32.mrf.mxu3 }
0x10f6   :  { %v2350_v19 = vpack.c.bf16 %v2268_v18, %v2268_v18  ;;  %v2352_v20 = vpack.c.bf16 %v2294_v16, %v2294_v16 }
0x10f7   :  { %3330 = vmatmul.msk.bf16.vlgmr.msra.gmra.mxu0 %vm47_vm0, %v2405_v15  ;;  %3331 = vmatmul.msk.bf16.vlgmr.msra.gmra.mxu1 %vm47_vm0, %v2427_v17 }
0x10f8   :  { %v2360_v22 = vunpack.c.l.b16 %v2350_v19  ;;  %v2382_v23 = vunpack.c.l.b16 %v2352_v20 }
0x10fa   :  { %v2361_v24 = vpack.c.b16 %v2360_v22, %v2359_v35  ;;  %v2383_v25 = vpack.c.b16 %v2382_v23, %v2381_v21 }
0x10fc   :  { %3328 = vmatmul.msk.bf16.vlgmr.msrb.gmra.mxu2 %vm47_vm0, %v2361_v24  ;;  %3329 = vmatmul.msk.bf16.vlgmr.msrb.gmra.mxu3 %vm47_vm0, %v2383_v25 }
0x1174   :  { %v2418_v57 = vpop.f32.mrf.mxu0  ;;  %v2440_v42 = vpop.f32.mrf.mxu1 }
0x1175   :  { %v2419_v59 = vadd.f32 %v3667_v28, %v2418_v57  ;;  %v2441_v45 = vadd.f32 %v3667_v28, %v2440_v42 }
0x1177   :  { %v2457_v46 = vsel %vm1014_vm15, %v2419_v59, -inf  ;;  %v2463_v48 = vsel %vm1014_vm15, %v2441_v45, -inf }
0x117c   :  { %v2420_v34 = vpop.f32.mrf.mxu0  ;;  %v2442_v47 = vpop.f32.mrf.mxu1 }
0x117d   :  { %v2421_v37 = vadd.f32 %v3668_v36, %v2420_v34  ;;  %v2443_v49 = vadd.f32 %v3668_v36, %v2442_v47 }
0x117f   :  { %v2374_v26 = vpop.f32.mrf.mxu2  ;;  %v2396_v27 = vpop.f32.mrf.mxu3  ;;  %v2460_v43 = vsel %vm1014_vm15, %v2421_v37, -inf  ;;  %v2466_v53 = vsel %vm1014_vm15, %v2443_v49, -inf }
0x1180   :  { %v2375_v29 = vadd.f32 %v3667_v28, %v2374_v26  ;;  %v2397_v30 = vadd.f32 %v3667_v28, %v2396_v27 }
0x1182   :  { %v2451_v32 = vsel %vm1014_vm15, %v2397_v30, -inf  ;;  %v2445_v33 = vsel %vm1014_vm15, %v2375_v29, -inf }
0x1183   :  { %2452 = vmax.xlane.f32.xlu1 %v2451_v32  ;;  %2446 = vmax.xlane.f32.xlu2 %v2445_v33 }
0x1187   :  { %v2376_v38 = vpop.f32.mrf.mxu2  ;;  %v2398_v39 = vpop.f32.mrf.mxu3 }
0x1188   :  { %v2377_v40 = vadd.f32 %v3668_v36, %v2376_v38  ;;  %v2399_v41 = vadd.f32 %v3668_v36, %v2398_v39  ;;  %v3470_v36 = vld [vmem:[#allocation2 + $0x1c8] sm:$0xff] }
0x1189   :  { %2663 = vmatpush.bf16.msrb.mxu2 %v3470_v36 }
0x118a   :  { %v2448_v8 = vsel %vm1014_vm15, %v2377_v40, -inf  ;;  %v2454_v44 = vsel %vm1014_vm15, %v2399_v41, -inf }
0x118b   :  { %2461 = vmax.xlane.f32.xlu1 %v2460_v43  ;;  %2449 = vmax.xlane.f32.xlu0 %v2448_v8 }
0x118c   :  { %2455 = vmax.xlane.f32.xlu2 %v2454_v44 }
0x1193   :  { %2458 = vmax.xlane.f32.xlu0 %v2457_v46 }
0x1194   :  { %2464 = vmax.xlane.f32.xlu2 %v2463_v48 }
0x119b   :  { %2467 = vmax.xlane.f32.xlu0 %v2466_v53 }
0x11f6   :  { %v2453_v51 = vpop.xlane.xlu1 %2452  ;;  %v2447_v52 = vpop.xlane.xlu2 %2446 }
0x11f7   :  { %v2471_v55 = vsub.f32 %v2397_v30, %v2453_v51  ;;  %v2469_v56 = vsub.f32 %v2375_v29, %v2447_v52 }
0x11f9   :  { %v2481_v7 = vmul.f32 1.442695, %v2471_v55  ;;  %v2477_v58 = vmul.f32 1.442695, %v2469_v56 }
0x11fb   :  { %3625 = vpow2.f32 %v2481_v7 }
0x11fc   :  { %3627 = vpow2.f32 %v2477_v58 }
0x11fe   :  { %v2462_v60 = vpop.xlane.xlu1 %2461  ;;  %v2450_v61 = vpop.xlane.xlu0 %2449 }
0x11ff   :  { %v2474_v63 = vsub.f32 %v2421_v37, %v2462_v60  ;;  %v2470_v0 = vsub.f32 %v2377_v40, %v2450_v61  ;;  %v2456_v1 = vpop.xlane.xlu2 %2455  ;;  %v3472_v37 = vld [vmem:[#allocation2 + $0x1d8] sm:$0xff] }
0x1200   :  { %v2472_v2 = vsub.f32 %v2399_v41, %v2456_v1  ;;  %2697 = vmatpush.bf16.msrb.mxu3 %v3472_v37 }
0x1201   :  { %v3626_v3 = vpop.eup %3625  ;;  %v2487_v4 = vmul.f32 1.442695, %v2474_v63  ;;  %v2479_v5 = vmul.f32 1.442695, %v2470_v0 }
0x1202   :  { %v3628_v6 = vpop.eup %3627  ;;  %v2483_v9 = vmul.f32 1.442695, %v2472_v2  ;;  %v2499_v11 = vsel %vm1014_vm15, %v3626_v3, 0.0 }
0x1203   :  { %3629 = vpow2.f32 %v2487_v4  ;;  %2500 = vadd.xlane.f32.xlu0 %v2499_v11  ;;  %v2493_v54 = vsel %vm1014_vm15, %v3628_v6, 0.0 }
0x1204   :  { %3631 = vpow2.f32 %v2479_v5  ;;  %2494 = vadd.xlane.f32.xlu1 %v2493_v54 }
0x1205   :  { %3633 = vpow2.f32 %v2483_v9 }
0x1206   :  { %v2459_v31 = vpop.xlane.xlu0 %2458 }
0x1207   :  { %v2473_v12 = vsub.f32 %v2419_v59, %v2459_v31  ;;  %v2465_v13 = vpop.xlane.xlu2 %2464 }
0x1208   :  { %v2475_v14 = vsub.f32 %v2441_v45, %v2465_v13 }
0x1209   :  { %v3630_v15 = vpop.eup %3629  ;;  %v2485_v17 = vmul.f32 1.442695, %v2473_v12 }
0x120a   :  { %v3632_v18 = vpop.eup %3631  ;;  %v2489_v16 = vmul.f32 1.442695, %v2475_v14  ;;  %v2508_v19 = vsel %vm1014_vm15, %v3630_v15, 0.0 }
0x120b   :  { %v3634_v20 = vpop.eup %3633  ;;  %3635 = vpow2.f32 %v2485_v17  ;;  %2509 = vadd.xlane.f32.xlu0 %v2508_v19  ;;  %v2496_v35 = vsel %vm1014_vm15, %v3632_v18, 0.0  ;;  %v3474_v19 = vld [vmem:[#allocation2 + $0x1e8] sm:$0xff] }
0x120c   :  { %3637 = vpow2.f32 %v2489_v16  ;;  %2497 = vadd.xlane.f32.xlu2 %v2496_v35  ;;  %v2502_v21 = vsel %vm1014_vm15, %v3634_v20, 0.0  ;;  %v3471_v16 = vld [vmem:[#allocation2 + $0x1d0] sm:$0xff]  ;;  %2731 = vmatpush.bf16.msra.mxu0 %v3474_v19  ;;  %v3476_v35 = vld [vmem:[#allocation2 + $0x1f8] sm:$0xff] }
0x120d   :  { %2503 = vadd.xlane.f32.xlu1 %v2502_v21  ;;  %2698 = vmatpush.bf16.msrb.mxu3 %v3471_v16  ;;  %v3475_v21 = vld [vmem:[#allocation2 + $0x1f0] sm:$0xff] }
0x120e   :  { %v2468_v22 = vpop.xlane.xlu0 %2467  ;;  %2765 = vmatpush.bf16.msra.mxu1 %v3476_v35 }
0x120f   :  { %v2476_v23 = vsub.f32 %v2443_v49, %v2468_v22 }
0x1211   :  { %v3636_v24 = vpop.eup %3635  ;;  %v2491_v25 = vmul.f32 1.442695, %v2476_v23 }
0x1212   :  { %v3638_v57 = vpop.eup %3637  ;;  %v2505_v26 = vsel %vm1014_vm15, %v3636_v24, 0.0  ;;  %2766 = vmatpush.bf16.msra.mxu1 %v3475_v21 }
0x1213   :  { %3639 = vpow2.f32 %v2491_v25  ;;  %v2511_v27 = vsel %vm1014_vm15, %v3638_v57, 0.0 }
0x1214   :  { %2506 = vadd.xlane.f32.xlu2 %v2505_v26 }
0x1215   :  { %2512 = vadd.xlane.f32.xlu1 %v2511_v27 }
0x1219   :  { %v3640_v28 = vpop.eup %3639 }
0x121a   :  { %v2514_v29 = vsel %vm1014_vm15, %v3640_v28, 0.0 }
0x121c   :  { %2515 = vadd.xlane.f32.xlu2 %v2514_v29 }
0x1276   :  { %v2501_v30 = vpop.xlane.xlu0 %2500 }
0x1277   :  { %v2495_v32 = vpop.xlane.xlu1 %2494 }
0x1278   :  { %3641 = vrcp.f32 %v2495_v32 }
0x1279   :  { %3643 = vrcp.f32 %v2501_v30 }
0x127e   :  { %v2510_v33 = vpop.xlane.xlu0 %2509  ;;  %v3642_v38 = vpop.eup %3641 }
0x127f   :  { %v2498_v34 = vpop.xlane.xlu2 %2497  ;;  %v3644_v40 = vpop.eup %3643  ;;  %v2525_v41 = vmul.f32 %v3642_v38, %v3628_v6 }
0x1280   :  { %v2504_v39 = vpop.xlane.xlu1 %2503  ;;  %3645 = vrcp.f32 %v2498_v34  ;;  %v2527_v42 = vmul.f32 %v3644_v40, %v3626_v3 }
0x1281   :  { %3647 = vrcp.f32 %v2504_v39  ;;  %v2533_v44 = vpack.c.bf16 %v2525_v41, %v2525_v41 }
0x1282   :  { %3649 = vrcp.f32 %v2510_v33  ;;  %v2535_v47 = vpack.c.bf16 %v2527_v42, %v2527_v42 }
0x1283   :  { %v2543_v52 = vunpack.c.l.b16 %v2533_v44 }
0x1284   :  { %v2565_v7 = vunpack.c.l.b16 %v2535_v47 }
0x1286   :  { %v3646_v43 = vpop.eup %3645 }
0x1287   :  { %v3648_v8 = vpop.eup %3647  ;;  %v2526_v59 = vmul.f32 %v3646_v43, %v3632_v18  ;;  %v2507_v45 = vpop.xlane.xlu2 %2506  ;;  %v3469_v18 = vld [vmem:[#allocation2 + $0x1c0] sm:$0xff] }
0x1288   :  { %v3650_v46 = vpop.eup %3649  ;;  %v2528_v48 = vmul.f32 %v3648_v8, %v3634_v20  ;;  %v2513_v49 = vpop.xlane.xlu1 %2512  ;;  %3651 = vrcp.f32 %v2507_v45  ;;  %2664 = vmatpush.bf16.msrb.mxu2 %v3469_v18  ;;  %v3473_v20 = vld [vmem:[#allocation2 + $0x1e0] sm:$0xff] }
0x1289   :  { %v2534_v53 = vpack.c.bf16 %v2526_v59, %v2526_v59  ;;  %3653 = vrcp.f32 %v2513_v49  ;;  %v2530_v55 = vmul.f32 %v3650_v46, %v3630_v15  ;;  %2732 = vmatpush.bf16.msra.mxu0 %v3473_v20 }
0x128a   :  { %v2536_v51 = vpack.c.bf16 %v2528_v48, %v2528_v48 }
0x128b   :  { %v2544_v56 = vunpack.c.l.b16 %v2534_v53  ;;  %v2538_v0 = vpack.c.bf16 %v2530_v55, %v2530_v55 }
0x128c   :  { %v2566_v58 = vunpack.c.l.b16 %v2536_v51 }
0x128d   :  { %v2545_v60 = vpack.c.b16 %v2544_v56, %v2543_v52  ;;  %v2588_v5 = vunpack.c.l.b16 %v2538_v0 }
0x128e   :  { %v3652_v61 = vpop.eup %3651  ;;  %v2567_v63 = vpack.c.b16 %v2566_v58, %v2565_v7 }
0x128f   :  { %v2529_v1 = vmul.f32 %v3652_v61, %v3636_v24  ;;  %3332 = vmatmul.msk.bf16.vlgmr.msra.gmra.mxu2 %vm1014_vm15, %v2545_v60  ;;  %v2516_v2 = vpop.xlane.xlu2 %2515  ;;  %v3654_v3 = vpop.eup %3653 }
0x1290   :  { %3333 = vmatmul.msk.bf16.vlgmr.msra.gmra.mxu3 %vm1014_vm15, %v2567_v63  ;;  %3655 = vrcp.f32 %v2516_v2  ;;  %v2531_v6 = vmul.f32 %v3654_v3, %v3638_v57 }
0x1291   :  { %v2537_v4 = vpack.c.bf16 %v2529_v1, %v2529_v1 }
0x1292   :  { %v2539_v31 = vpack.c.bf16 %v2531_v6, %v2531_v6 }
0x1293   :  { %v2587_v9 = vunpack.c.l.b16 %v2537_v4 }
0x1294   :  { %v2609_v14 = vunpack.c.l.b16 %v2539_v31 }
0x1295   :  { %v2589_v11 = vpack.c.b16 %v2588_v5, %v2587_v9 }
0x1296   :  { %v3656_v54 = vpop.eup %3655 }
0x1297   :  { %v2532_v12 = vmul.f32 %v3656_v54, %v3640_v28  ;;  %3334 = vmatmul.msk.bf16.vlgmr.msrb.gmra.mxu0 %vm1014_vm15, %v2589_v11 }
0x1299   :  { %v2540_v13 = vpack.c.bf16 %v2532_v12, %v2532_v12 }
0x129b   :  { %v2610_v15 = vunpack.c.l.b16 %v2540_v13 }
0x129d   :  { %v2611_v17 = vpack.c.b16 %v2610_v15, %v2609_v14 }
0x129f   :  { %3335 = vmatmul.msk.bf16.vlgmr.msrb.gmra.mxu1 %vm1014_vm15, %v2611_v17 }
0x1312   :  { %v2558_v22 = vpop.f32.mrf.mxu2 }
0x1313   :  { %v2580_v23 = vpop.f32.mrf.mxu3  ;;  %v2629_v25 = vpack.c.bf16 %v2558_v22, %v2558_v22 }
0x1314   :  { %v2602_v24 = vpop.f32.mrf.mxu0  ;;  %v2631_v57 = vpack.c.bf16 %v2580_v23, %v2580_v23 }
0x1315   :  { %v2633_v27 = vpack.c.bf16 %v2602_v24, %v2602_v24  ;;  %v2639_v34 = vunpack.c.l.b16 %v2629_v25 }
0x1316   :  { %v2673_v38 = vunpack.c.l.b16 %v2631_v57  ;;  %v3477_v57 = vld [vmem:[%s4212_s5 + $0x30] sm:$0xff] }
0x1317   :  { %v2707_v40 = vunpack.c.l.b16 %v2633_v27  ;;  %v3482_v27 = vld [vmem:[%s4212_s5 + $0x58] sm:$0xff] }
0x1318   :  { %2921 = vmatpush.bf16.msra.mxu3 %v3482_v27 }
0x131a   :  { %v2560_v26 = vpop.f32.mrf.mxu2 }
0x131b   :  { %v2630_v28 = vpack.c.bf16 %v2560_v26, %v2560_v26  ;;  %v2582_v29 = vpop.f32.mrf.mxu3 }
0x131c   :  { %v2632_v30 = vpack.c.bf16 %v2582_v29, %v2582_v29  ;;  %v2604_v32 = vpop.f32.mrf.mxu0  ;;  %v2624_v33 = vpop.f32.mrf.mxu1 }
0x131d   :  { %v2640_v36 = vunpack.c.l.b16 %v2630_v28  ;;  %v2634_v37 = vpack.c.bf16 %v2604_v32, %v2604_v32  ;;  %v2635_v44 = vpack.c.bf16 %v2624_v33, %v2624_v33 }
0x131e   :  { %v2674_v39 = vunpack.c.l.b16 %v2632_v30 }
0x131f   :  { %v2641_v41 = vpack.c.b16 %v2640_v36, %v2639_v34  ;;  %v2708_v42 = vunpack.c.l.b16 %v2634_v37  ;;  %v2741_v46 = vunpack.c.l.b16 %v2635_v44  ;;  %v3501_v44 = vld [vmem:[%s4213_s6 + $0xc] ss:$0 sm:$0xff] }
0x1320   :  { %v2675_v43 = vpack.c.b16 %v2674_v39, %v2673_v38 }
0x1321   :  { %v2709_v8 = vpack.c.b16 %v2708_v42, %v2707_v40  ;;  %3344 = vmatmul.msk.bf16.vlgmr.msrb.gmra.mxu2 %vm47_vm0, %v2641_v41 }
0x1322   :  { %3353 = vmatmul.msk.bf16.vlgmr.msrb.gmra.mxu3 %vm47_vm0, %v2675_v43 }
0x1323   :  { %3362 = vmatmul.msk.bf16.vlgmr.msra.gmra.mxu0 %vm47_vm0, %v2709_v8 }
0x1324   :  { %v2626_v59 = vpop.f32.mrf.mxu1 }
0x1325   :  { %v2636_v45 = vpack.c.bf16 %v2626_v59, %v2626_v59 }
0x1327   :  { %v2742_v47 = vunpack.c.l.b16 %v2636_v45 }
0x1329   :  { %v2743_v48 = vpack.c.b16 %v2742_v47, %v2741_v46  ;;  %v3502_v47 = vld [vmem:[%s4213_s6 + $0xd] ss:$0 sm:$0xff] }
0x132b   :  { %3371 = vmatmul.msk.bf16.vlgmr.msra.gmra.mxu1 %vm47_vm0, %v2743_v48 }
0x13a0   :  { %v2734_v49 = vpop.f32.mrf.mxu0 }
0x13a1   :  { %v2776_v7 = vsel %vm47_vm0, %v2734_v49, 0.0 }
0x13a4   :  { %v2666_v53 = vpop.f32.mrf.mxu2 }
0x13a5   :  { %v2773_v51 = vsel %vm47_vm0, %v2666_v53, 0.0  ;;  %v2700_v52 = vpop.f32.mrf.mxu3 }
0x13a6   :  { %v2774_v55 = vsel %vm47_vm0, %v2700_v52, 0.0 }
0x13a7   :  { %v2775_v56 = vadd.f32 %v2774_v55, %v2773_v51 }
0x13a8   :  { %v2768_v58 = vpop.f32.mrf.mxu1  ;;  %v2736_v1 = vpop.f32.mrf.mxu0 }
0x13a9   :  { %v2777_v60 = vadd.f32 %v2776_v7, %v2775_v56  ;;  %v2778_v61 = vsel %vm47_vm0, %v2768_v58, 0.0  ;;  %v2783_v11 = vsel %vm47_vm0, %v2736_v1, 0.0  ;;  %v3481_v56 = vld [vmem:[%s4212_s5 + $0x50] sm:$0xff]  ;;  %v3480_v7 = vld [vmem:[%s4212_s5 + $0x48] sm:$0xff]  ;;  %v3479_v58 = vld [vmem:[%s4212_s5 + $0x40] sm:$0xff] }
0x13aa   :  { %2922 = vmatpush.bf16.msra.mxu3 %v3481_v56 }
0x13ab   :  { %v2779_v63 = vadd.f32 %v2778_v61, %v2777_v60  ;;  %v3503_v61 = vld [vmem:[%s4213_s6 + $0x11] ss:$0 sm:$0xff] }
0x13ac   :  { %v2668_v0 = vpop.f32.mrf.mxu2 }
0x13ad   :  { %v2780_v2 = vsel %vm47_vm0, %v2668_v0, 0.0  ;;  %v2702_v3 = vpop.f32.mrf.mxu3  ;;  %v2787_v4 = vadd.f32 %v2779_v63, %v4076_v50 }
0x13ae   :  { %v2781_v5 = vsel %vm47_vm0, %v2702_v3, 0.0  ;;  %2923 = vmatpush.bf16.msra.mxu3 %v3480_v7 }
0x13af   :  { %v2782_v6 = vadd.f32 %v2781_v5, %v2780_v2  ;;  %v2791_v9 = vsel %vm47_vm0, %v2787_v4, 0.0  ;;  %v3504_v5 = vld [vmem:[%s4213_s6 + $0xe] ss:$0 sm:$0xff] }
0x13b0   :  { %2792 = vadd.xlane.f32.xlu0 %v2791_v9  ;;  %v2770_v54 = vpop.f32.mrf.mxu1 }
0x13b1   :  { %v2784_v31 = vadd.f32 %v2783_v11, %v2782_v6  ;;  %v2785_v12 = vsel %vm47_vm0, %v2770_v54, 0.0 }
0x13b2   :  { %2924 = vmatpush.bf16.msra.mxu3 %v3479_v58 }
0x13b3   :  { %v2786_v13 = vadd.f32 %v2785_v12, %v2784_v31 }
0x13b5   :  { %v2788_v14 = vadd.f32 %v2786_v13, %v4080_v62  ;;  %v3478_v62 = vld [vmem:[%s4212_s5 + $0x38] sm:$0xff] }
0x13b6   :  { %2877 = vmatpush.bf16.msra.mxu2 %v3478_v62 }
0x13b7   :  { %v2794_v15 = vsel %vm47_vm0, %v2788_v14, 0.0 }
0x13b8   :  { %2795 = vadd.xlane.f32.xlu1 %v2794_v15 }
0x13ba   :  { %2878 = vmatpush.bf16.msra.mxu2 %v3477_v57 }
0x1423   :  { %v2793_v17 = vpop.xlane.xlu0 %2792 }
0x1424   :  { %v2797_v50 = vmul.f32 %v2793_v17, %v3750_v10 }
0x1426   :  { %v2799_v18 = vsub.f32 %v2787_v4, %v2797_v50 }
0x1428   :  { %v2801_v16 = vmul.f32 %v2799_v18, %v2799_v18 }
0x142a   :  { %v2803_v19 = vsel %vm47_vm0, %v2801_v16, 0.0 }
0x142b   :  { %2804 = vadd.xlane.f32.xlu2 %v2803_v19  ;;  %v2796_v20 = vpop.xlane.xlu1 %2795 }
0x142c   :  { %v2798_v35 = vmul.f32 %v2796_v20, %v3750_v10 }
0x142e   :  { %v2800_v21 = vsub.f32 %v2788_v14, %v2798_v35 }
0x1430   :  { %v2802_v22 = vmul.f32 %v2800_v21, %v2800_v21 }
0x1432   :  { %v2806_v23 = vsel %vm47_vm0, %v2802_v22, 0.0 }
0x1433   :  { %2807 = vadd.xlane.f32.xlu0 %v2806_v23  ;;  %v3484_v23 = vld [vmem:[%s4212_s5 + $0x68] sm:$0xff] }
0x1434   :  { %3011 = vmatpush.bf16.msrb.mxu0 %v3484_v23 }
0x149e   :  { %v2805_v24 = vpop.xlane.xlu2 %2804 }
0x149f   :  { %v2809_v25 = vmul.f32 %v2805_v24, %v3750_v10 }
0x14a1   :  { %v2811_v26 = vadd.f32 1e-06, %v2809_v25  ;;  %v3483_v25 = vld [vmem:[%s4212_s5 + $0x60] sm:$0xff] }
0x14a2   :  { %3012 = vmatpush.bf16.msrb.mxu0 %v3483_v25 }
0x14a3   :  { %3657 = vrsqrt.f32 %v2811_v26  ;;  %vm2819_vm7 = vweird.f32 %v2811_v26 }
0x14a6   :  { %v2808_v28 = vpop.xlane.xlu0 %2807 }
0x14a7   :  { %v2810_v29 = vmul.f32 %v2808_v28, %v3750_v10 }
0x14a9   :  { %v3658_v30 = vpop.eup %3657  ;;  %v2812_v32 = vadd.f32 1e-06, %v2810_v29 }
0x14aa   :  { %v2814_v33 = vmul.f32 %v3658_v30, %v2811_v26  ;;  %vm2820_vm15 = vweird.f32 %v3658_v30 }
0x14ab   :  { %3659 = vrsqrt.f32 %v2812_v32  ;;  %vm2821_vm10 = vmor %vm2819_vm7, %vm2820_vm15  ;;  %vm2829_vm12 = vweird.f32 %v2812_v32 }
0x14ac   :  { %v2815_v34 = vmul.f32 %v3658_v30, %v2814_v33 }
0x14ae   :  { %v2816_v36 = vmul.f32 0.5, %v2815_v34 }
0x14b0   :  { %v2817_v37 = vsub.f32 1.5, %v2816_v36 }
0x14b1   :  { %v3660_v38 = vpop.eup %3659 }
0x14b2   :  { %v2818_v39 = vmul.f32 %v3658_v30, %v2817_v37  ;;  %v2824_v40 = vmul.f32 %v3660_v38, %v2812_v32  ;;  %vm2830_vm11 = vweird.f32 %v3660_v38 }
0x14b3   :  { %vm2831_vm13 = vmor %vm2829_vm12, %vm2830_vm11 }
0x14b4   :  { %v2825_v41 = vmul.f32 %v3660_v38, %v2824_v40  ;;  %v2822_v42 = vsel %vm2821_vm10, %v3658_v30, %v2818_v39 }
0x14b5   :  { %v2833_v59 = vmul.f32 %v2822_v42, %v2799_v18 }
0x14b6   :  { %v2826_v43 = vmul.f32 0.5, %v2825_v41 }
0x14b7   :  { %v2836_v48 = vmul.f32 %v3501_v44, %v2833_v59  ;;  %v3506_v59 = vld [vmem:[%s4213_s6 + $0x10] ss:$0 sm:$0xff] }
0x14b8   :  { %v2827_v8 = vsub.f32 1.5, %v2826_v43 }
0x14b9   :  { %v2839_v51 = vadd.f32 %v3502_v47, %v2836_v48 }
0x14ba   :  { %v2828_v45 = vmul.f32 %v3660_v38, %v2827_v8 }
0x14bc   :  { %v2832_v46 = vsel %vm2831_vm13, %v3660_v38, %v2828_v45 }
0x14bd   :  { %v2834_v49 = vmul.f32 %v2832_v46, %v2800_v21 }
0x14bf   :  { %v2837_v53 = vmul.f32 %v3501_v44, %v2834_v49 }
0x14c1   :  { %v2840_v52 = vadd.f32 %v3502_v47, %v2837_v53 }
0x14c3   :  { %v2853_v55 = vpack.c.bf16 %v2840_v52, %v2839_v51 }
0x14c5   :  { %3380 = vmatmul.msk.bf16.vlgmr.msra.gmra.mxu2 %vm47_vm0, %v2853_v55 }
0x1548   :  { %v2880_v60 = vpop.f32.mrf.mxu2 }
0x1549   :  { %v2881_v63 = vadd.f32 %v3503_v61, %v2880_v60 }
0x154b   :  { %v2885_v2 = vmax.f32 %v2881_v63, 0.0 }
0x1550   :  { %v2882_v0 = vpop.f32.mrf.mxu2 }
0x1551   :  { %v2883_v1 = vadd.f32 %v3503_v61, %v2882_v0 }
0x1553   :  { %v2886_v3 = vmax.f32 %v2883_v1, 0.0 }
0x1555   :  { %v2887_v4 = vpack.c.bf16 %v2886_v3, %v2885_v2 }
0x1557   :  { %3397 = vmatmul.msk.bf16.vlgmr.msra.gmra.mxu3 %vm1488_vm9, %v2887_v4 }
0x15da   :  { %v2926_v6 = vpop.f32.mrf.mxu3 }
0x15db   :  { %v2927_v9 = vadd.f32 %v3504_v5, %v2926_v6 }
0x15dd   :  { %v2931_v11 = vadd.f32 %v2927_v9, %v2839_v51 }
0x15df   :  { %v2935_v54 = vsel %vm47_vm0, %v2931_v11, 0.0 }
0x15e0   :  { %2936 = vadd.xlane.f32.xlu1 %v2935_v54 }
0x15e2   :  { %v2928_v31 = vpop.f32.mrf.mxu3 }
0x15e3   :  { %v2929_v12 = vadd.f32 %v3504_v5, %v2928_v31 }
0x15e5   :  { %v2932_v13 = vadd.f32 %v2929_v12, %v2840_v52 }
0x15e7   :  { %v2938_v14 = vsel %vm47_vm0, %v2932_v13, 0.0 }
0x15e8   :  { %2939 = vadd.xlane.f32.xlu2 %v2938_v14 }
0x1653   :  { %v2937_v15 = vpop.xlane.xlu1 %2936 }
0x1654   :  { %v2941_v17 = vmul.f32 %v2937_v15, %v3750_v10 }
0x1656   :  { %v2943_v50 = vsub.f32 %v2931_v11, %v2941_v17 }
0x1658   :  { %v2945_v18 = vmul.f32 %v2943_v50, %v2943_v50 }
0x165a   :  { %v2947_v16 = vsel %vm47_vm0, %v2945_v18, 0.0 }
0x165b   :  { %v2940_v19 = vpop.xlane.xlu2 %2939  ;;  %2948 = vadd.xlane.f32.xlu0 %v2947_v16 }
0x165c   :  { %v2942_v20 = vmul.f32 %v2940_v19, %v3750_v10 }
0x165e   :  { %v2944_v35 = vsub.f32 %v2932_v13, %v2942_v20 }
0x1660   :  { %v2946_v21 = vmul.f32 %v2944_v35, %v2944_v35 }
0x1662   :  { %v2950_v22 = vsel %vm47_vm0, %v2946_v21, 0.0 }
0x1663   :  { %2951 = vadd.xlane.f32.xlu1 %v2950_v22 }
0x16ce   :  { %v2949_v62 = vpop.xlane.xlu0 %2948 }
0x16cf   :  { %v2953_v24 = vmul.f32 %v2949_v62, %v3750_v10 }
0x16d1   :  { %v2955_v57 = vadd.f32 1e-06, %v2953_v24 }
0x16d3   :  { %3661 = vrsqrt.f32 %v2955_v57  ;;  %vm2963_vm14 = vweird.f32 %v2955_v57 }
0x16d6   :  { %v2952_v26 = vpop.xlane.xlu1 %2951 }
0x16d7   :  { %v2954_v27 = vmul.f32 %v2952_v26, %v3750_v10  ;;  %v3505_v10 = vld [vmem:[%s4213_s6 + $0xf] ss:$0 sm:$0xff] }
0x16d9   :  { %v3662_v28 = vpop.eup %3661  ;;  %v2956_v29 = vadd.f32 1e-06, %v2954_v27 }
0x16da   :  { %v2958_v30 = vmul.f32 %v3662_v28, %v2955_v57  ;;  %vm2964_vm9 = vweird.f32 %v3662_v28 }
0x16db   :  { %3663 = vrsqrt.f32 %v2956_v29  ;;  %vm2965_vm1 = vmor %vm2963_vm14, %vm2964_vm9  ;;  %vm2973_vm2 = vweird.f32 %v2956_v29 }
0x16dc   :  { %v2959_v32 = vmul.f32 %v3662_v28, %v2958_v30 }
0x16de   :  { %v2960_v33 = vmul.f32 0.5, %v2959_v32 }
0x16e0   :  { %v2961_v34 = vsub.f32 1.5, %v2960_v33 }
0x16e1   :  { %v3664_v36 = vpop.eup %3663 }
0x16e2   :  { %v2962_v37 = vmul.f32 %v3662_v28, %v2961_v34  ;;  %v2968_v38 = vmul.f32 %v3664_v36, %v2956_v29  ;;  %vm2974_vm8 = vweird.f32 %v3664_v36 }
0x16e3   :  { %vm2975_vm3 = vmor %vm2973_vm2, %vm2974_vm8 }
0x16e4   :  { %v2969_v39 = vmul.f32 %v3664_v36, %v2968_v38  ;;  %v2966_v40 = vsel %vm2965_vm1, %v3662_v28, %v2962_v37 }
0x16e5   :  { %v2977_v43 = vmul.f32 %v2966_v40, %v2943_v50 }
0x16e6   :  { %v2970_v41 = vmul.f32 0.5, %v2969_v39 }
0x16e7   :  { %v2980_v45 = vmul.f32 %v3505_v10, %v2977_v43 }
0x16e8   :  { %v2971_v42 = vsub.f32 1.5, %v2970_v41 }
0x16e9   :  { %v2983_v48 = vadd.f32 %v3506_v59, %v2980_v45 }
0x16ea   :  { %v2972_v8 = vmul.f32 %v3664_v36, %v2971_v42 }
0x16ec   :  { %v2976_v44 = vsel %vm2975_vm3, %v3664_v36, %v2972_v8 }
0x16ed   :  { %v2978_v46 = vmul.f32 %v2976_v44, %v2944_v35 }
0x16ef   :  { %v2981_v47 = vmul.f32 %v3505_v10, %v2978_v46 }
0x16f1   :  { %v2984_v49 = vadd.f32 %v3506_v59, %v2981_v47 }
0x16f3   :  { %v2989_v53 = vpack.c.bf16 %v2984_v49, %v2983_v48 }
0x16f5   :  { %3406 = vmatmul.msk.bf16.vlgmr.msrb.gmra.mxu0 %vm47_vm0, %v2989_v53 }
0x1772   :  { %v3014_v51 = vpop.f32.mrf.mxu0 }
0x1773   :  { %3019 = vst [vmem:[%s4214_s7] sm:$0xff] %v3014_v51 }
0x177a   :  { %v3016_v52 = vpop.f32.mrf.mxu0 }
0x177b   :  { %3020 = vst [vmem:[%s4214_s7 + $0x8] sm:$0xff] %v3016_v52 }
0x177c   :  { %3025 = vsyncpa [#allocation3], 1 }

</bundles_post_ra>
